<compile_context>
chip_gen: v6e
topology: v6e:2x2x1
jax: 0.10.0
libtpu: 0.0.40
codegen_flags: <defaults>
</compile_context>

<pallas_src>
import jax
import jax.numpy as jnp
from jax.experimental import pallas as pl
from jax.experimental.pallas import tpu as pltpu

# ---------------- small, module-consistent configuration ----------------
INPUT_DIM = 100                    # (reference uses 10000; scaled down)
PAD_ID = INPUT_DIM + 1             # 101  (pad_token_id = (input_dim + 1,))
MASK_ID = INPUT_DIM + 2            # 102  (mask_token_id = input_dim + 2)
NPOS = INPUT_DIM + 3               # pos_emb table rows
ENCODER_DIM = 32
DECODER_DIM = 32                   # == ENCODER_DIM (shared head indicators)
OUTPUT_DIM = 10
BIN_NUM = 8
BIN_ALPHA = 1.0
NUM_ENC_LAYERS = 2                 # (reference: 12; scaled down)
NUM_DEC_LAYERS = 2                 # (reference: 6;  scaled down)
NUM_ENC_HEADS = 4
NUM_DEC_HEADS = 4                  # == NUM_ENC_HEADS (shared head indicators)
HEAD_DIM = ENCODER_DIM // NUM_ENC_HEADS
FF_ENC = 4 * ENCODER_DIM
FF_DEC = 4 * DECODER_DIM           # performer ff_mult = 4
B = 2
L_ENC = 8                          # encoder_len
L_FULL = 16                        # full (decoder) sequence length
_BLOB_LANES = 128


def _vmem_spec():
    return pl.BlockSpec(memory_space=pltpu.MemorySpace.VMEM)


# ---------------- static weight-blob layouts (shared by packer and kernel) ----------------
def _build_layout(entries):
    layout, off = {}, 0
    for name, rows, cols in entries:
        layout[name] = (off, rows, cols)
        off += rows
    return layout, off


def _w_entries():
    # bf16 matmul weights.  All entries except `pos` have 8-aligned row counts,
    # so `pos` (103 rows) goes last to keep every offset sublane-aligned.
    e = [("tok_emb", BIN_NUM, ENCODER_DIM)]
    for i in range(NUM_ENC_LAYERS):
        p = "e%d" % i
        e += [(p + "_wq", ENCODER_DIM, ENCODER_DIM), (p + "_wk", ENCODER_DIM, ENCODER_DIM),
              (p + "_wv", ENCODER_DIM, ENCODER_DIM), (p + "_wo", ENCODER_DIM, ENCODER_DIM),
              (p + "_w1", ENCODER_DIM, FF_ENC), (p + "_w2", FF_ENC, ENCODER_DIM)]
    for i in range(NUM_DEC_LAYERS):
        p = "d%d" % i
        e += [(p + "_wq", DECODER_DIM, DECODER_DIM), (p + "_wk", DECODER_DIM, DECODER_DIM),
              (p + "_wv", DECODER_DIM, DECODER_DIM), (p + "_wo", DECODER_DIM, DECODER_DIM),
              (p + "_w1", DECODER_DIM, FF_DEC), (p + "_w2", FF_DEC, DECODER_DIM)]
    e += [("to_out_w", ENCODER_DIM, DECODER_DIM),
          ("out_w", DECODER_DIM, OUTPUT_DIM),
          ("pos", NPOS, ENCODER_DIM)]
    return e


def _f_entries():
    # f32 biases, LayerNorm params, token-mlp weights and head-indicator constants.
    e = [("tok_w1", 1, BIN_NUM), ("tok_b1", 1, BIN_NUM), ("tok_w2t", BIN_NUM, BIN_NUM),
         ("tok_b2", 1, BIN_NUM), ("mask_emb", 1, ENCODER_DIM), ("pad_emb", 1, ENCODER_DIM)]
    for i in range(NUM_ENC_LAYERS):
        p = "e%d" % i
        e += [(p + "_bq", 1, ENCODER_DIM), (p + "_bk", 1, ENCODER_DIM), (p + "_bv", 1, ENCODER_DIM),
              (p + "_bo", 1, ENCODER_DIM), (p + "_ln1w", 1, ENCODER_DIM), (p + "_ln1b", 1, ENCODER_DIM),
              (p + "_b1", 1, FF_ENC), (p + "_b2", 1, ENCODER_DIM),
              (p + "_ln2w", 1, ENCODER_DIM), (p + "_ln2b", 1, ENCODER_DIM)]
    for i in range(NUM_DEC_LAYERS):
        p = "d%d" % i
        e += [(p + "_bo", 1, DECODER_DIM), (p + "_ln1w", 1, DECODER_DIM), (p + "_ln1b", 1, DECODER_DIM),
              (p + "_ln2w", 1, DECODER_DIM), (p + "_ln2b", 1, DECODER_DIM),
              (p + "_b1", 1, FF_DEC), (p + "_b2", 1, DECODER_DIM)]
    e += [("to_out_b", 1, DECODER_DIM), ("out_b", 1, OUTPUT_DIM),
          ("seg_dh", ENCODER_DIM, NUM_ENC_HEADS),       # (D,H) head-membership indicator
          ("seg_hd", NUM_ENC_HEADS, ENCODER_DIM),       # (H,D) per-head broadcast indicator
          ("blockmask", ENCODER_DIM, ENCODER_DIM)]      # (D,D) same-head-block mask
    return e


_W_LAYOUT, _W_ROWS = _build_layout(_w_entries())
_F_LAYOUT, _F_ROWS = _build_layout(_f_entries())


# ---------------- in-kernel helpers (operate on VMEM values) ----------------
def _layernorm(x, w, b, eps=1e-5):
    # x: (N, D), w/b: (1, D) -- matches torch.nn.LayerNorm (biased variance)
    mu = jnp.mean(x, axis=-1, keepdims=True)
    var = jnp.mean(jnp.square(x - mu), axis=-1, keepdims=True)
    return (x - mu) * jax.lax.rsqrt(var + eps) * w + b


def _autodisc(vals, F, W):
    # AutoDiscretizationEmbedding2 on a flat batch of scalar values: vals (N, 1).
    h = vals * F("tok_w1") + F("tok_b1")                      # Linear(1, bin) -> (N, bin)
    h = jnp.where(h >= 0.0, h, 0.1 * h)                       # LeakyReLU(0.1)
    cross = jnp.dot(h, F("tok_w2t"), preferred_element_type=jnp.float32) + F("tok_b2")
    h = BIN_ALPHA * h + cross
    h = h - jnp.max(h, axis=-1, keepdims=True)                # exact softmax over bins
    e = jnp.exp(h)
    weight = e / jnp.sum(e, axis=-1, keepdims=True)
    out = jnp.dot(weight.astype(jnp.bfloat16), W("tok_emb"),
                  preferred_element_type=jnp.float32)         # (N, D)
    out = jnp.where(vals == float(MASK_ID), F("mask_emb"), out)
    out = jnp.where(vals == float(PAD_ID), F("pad_emb"), out)  # pad applied last
    return out


def _encoder_layer(x, W, F, p, seg_dh, seg_hd):
    # x: (S*G, D) flat activations, rows ordered (s, g).  The torch module feeds
    # (B, L, D) to a batch_first=False nn.TransformerEncoder, so self-attention
    # runs over the batch axis (S=B) for every position g — preserved here.
    # Heads are handled with indicator matmuls: no head-axis slicing/relayouts.
    S, G = B, L_ENC
    xb = x.astype(jnp.bfloat16)
    q = jnp.dot(xb, W(p + "_wq"), preferred_element_type=jnp.float32) + F(p + "_bq")  # scale pre-folded
    k = jnp.dot(xb, W(p + "_wk"), preferred_element_type=jnp.float32) + F(p + "_bk")
    v = jnp.dot(xb, W(p + "_wv"), preferred_element_type=jnp.float32) + F(p + "_bv")
    qs = [q[a * G:(a + 1) * G, :] for a in range(S)]
    ks = [k[a * G:(a + 1) * G, :] for a in range(S)]
    vs = [v[a * G:(a + 1) * G, :] for a in range(S)]
    outs = []
    for a in range(S):
        # per-head scores s[a][b]: (G, H) = segmented lane-sum of q_a * k_b
        sc = [jnp.dot(qs[a] * ks[b], seg_dh, preferred_element_type=jnp.float32)
              for b in range(S)]
        m = sc[0]
        for b in range(1, S):
            m = jnp.maximum(m, sc[b])
        es = [jnp.exp(sc[b] - m) for b in range(S)]
        den = es[0]
        for b in range(1, S):
            den = den + es[b]
        inv = 1.0 / den                                        # exact softmax division
        ctx = jnp.dot(es[0] * inv, seg_hd, preferred_element_type=jnp.float32) * vs[0]
        for b in range(1, S):
            ctx = ctx + jnp.dot(es[b] * inv, seg_hd, preferred_element_type=jnp.float32) * vs[b]
        outs.append(ctx)                                       # (G, D)
    attn = jnp.concatenate(outs, axis=0)                       # (S*G, D), rows (s, g)
    attn = jnp.dot(attn.astype(jnp.bfloat16), W(p + "_wo"),
                   preferred_element_type=jnp.float32) + F(p + "_bo")
    h1 = _layernorm(x + attn, F(p + "_ln1w"), F(p + "_ln1b"))  # post-norm
    ff = jnp.dot(h1.astype(jnp.bfloat16), W(p + "_w1"),
                 preferred_element_type=jnp.float32) + F(p + "_b1")
    ff = jnp.maximum(ff, 0.0)                                  # ReLU
    ff = jnp.dot(ff.astype(jnp.bfloat16), W(p + "_w2"),
                 preferred_element_type=jnp.float32) + F(p + "_b2")
    return _layernorm(h1 + ff, F(p + "_ln2w"), F(p + "_ln2b"))


# TODO(synk): performer_pytorch's FAVOR+ softmax-kernel random-feature attention is
# re-implemented as ReLU-kernel linear attention (generalized-attention style);
# the exact third-party Performer has no in-script definition to translate.
def _performer_layer(x, W, F, p, blockmask, seg_dh, seg_hd):
    # x: (Bn*Ln, D) flat, rows ordered (b, l); pre-norm, linear attention over l.
    # Per-head attention is computed block-diagonally over the full D so heads
    # never leave the lane dimension.
    Bn, Ln, D = B, L_FULL, DECODER_DIM
    xn = _layernorm(x, F(p + "_ln1w"), F(p + "_ln1b"))
    xb = xn.astype(jnp.bfloat16)
    q = jnp.maximum(jnp.dot(xb, W(p + "_wq"), preferred_element_type=jnp.float32), 0.0)  # phi = ReLU
    k = jnp.maximum(jnp.dot(xb, W(p + "_wk"), preferred_element_type=jnp.float32), 0.0)
    v = jnp.dot(xb, W(p + "_wv"), preferred_element_type=jnp.float32)                    # qkv_bias=False
    q3 = q.reshape(Bn, Ln, D)
    k3 = k.reshape(Bn, Ln, D)
    v3 = v.reshape(Bn, Ln, D)
    kt = jnp.swapaxes(k3, 1, 2)                                        # (Bn, D, Ln)
    kv = jnp.einsum("bdl,ble->bde", kt, v3, preferred_element_type=jnp.float32)
    kv = kv * blockmask                                                # keep within-head blocks only
    num = jnp.einsum("bld,bde->ble", q3, kv,
                     preferred_element_type=jnp.float32).reshape(Bn * Ln, D)
    ksum = jnp.sum(k3, axis=1, keepdims=True)                          # (Bn, 1, D)
    denh = jnp.dot((q3 * ksum).reshape(Bn * Ln, D), seg_dh,
                   preferred_element_type=jnp.float32)                 # (Bn*Ln, H) per-head denom
    den = jnp.dot(denh, seg_hd, preferred_element_type=jnp.float32) + 1e-6
    o = num * pl.reciprocal(den, approx=True)
    attn = jnp.dot(o.astype(jnp.bfloat16), W(p + "_wo"),
                   preferred_element_type=jnp.float32) + F(p + "_bo")
    x1 = x + attn                                                      # residual 1
    xn2 = _layernorm(x1, F(p + "_ln2w"), F(p + "_ln2b"))
    ff = jnp.dot(xn2.astype(jnp.bfloat16), W(p + "_w1"),
                 preferred_element_type=jnp.float32) + F(p + "_b1")
    # GELU (tanh approximation; torch default is erf-based)
    ff = 0.5 * ff * (1.0 + jnp.tanh(0.7978845608028654 * (ff + 0.044715 * ff * ff * ff)))
    ff = jnp.dot(ff.astype(jnp.bfloat16), W(p + "_w2"),
                 preferred_element_type=jnp.float32) + F(p + "_b2")
    return x1 + ff                                                     # residual 2


# ---------------- fully fused forward kernel ----------------
def _fused_forward_kernel(vals_ref, gid_ref, tgt_ref, w_ref, f_ref, o_ref):
    def W(name):
        off, r, c = _W_LAYOUT[name]
        return w_ref[off:off + r, 0:c]

    def F(name):
        off, r, c = _F_LAYOUT[name]
        return f_ref[off:off + r, 0:c]

    n_enc = B * L_ENC
    n_full = B * L_FULL

    seg_dh = F("seg_dh")            # (D, H)
    seg_hd = F("seg_hd")            # (H, D)
    blockmask = F("blockmask")      # (D, D)

    # --- merged AutoDiscretizationEmbedding2 over encoder + full sequences ---
    vals = vals_ref[...]                                     # (n_enc + n_full, 1)
    tok = _autodisc(vals, F, W)
    enc_emb = tok[0:n_enc]                                   # (n_enc, D), rows (b, l)
    full_emb = tok[n_enc:n_enc + n_full]                     # (n_full, D), rows (b, l)

    # --- positional embedding gather (exact one-hot matmul on the MXU) ---
    gid = gid_ref[...]                                       # (n_enc, 1) int32
    onehot = (jax.lax.broadcasted_iota(jnp.int32, (n_enc, NPOS), 1) == gid
              ).astype(jnp.float32).astype(jnp.bfloat16)
    h = enc_emb + jnp.dot(onehot, W("pos"), preferred_element_type=jnp.float32)
    # nn.Dropout -> identity (eval)

    # --- transformer encoder stack (attention over the batch axis) ---
    for i in range(NUM_ENC_LAYERS):
        h = _encoder_layer(h, W, F, "e%d" % i, seg_dh, seg_hd)

    # --- get_full_seq scatter as ONE one-hot matmul; last encoder position to
    #     write a slot wins (matches the reference sequential python loop);
    #     pad entries carry target -1 and never match ---
    tgt = tgt_ref[...]                                       # (1, n_enc) int32
    p_iota = jax.lax.broadcasted_iota(jnp.int32, (n_full, n_enc), 0)
    r_iota = jax.lax.broadcasted_iota(jnp.int32, (n_full, n_enc), 1).astype(jnp.float32)
    match = p_iota == tgt                                    # (n_full, n_enc) bool
    r_val = jnp.where(match, r_iota, -1.0)
    r_max = jnp.max(r_val, axis=1, keepdims=True)            # (n_full, 1)
    scatter_m = jnp.logical_and(match, r_val == r_max).astype(jnp.float32)
    scattered = jnp.dot(scatter_m, h, preferred_element_type=jnp.float32)
    dec = jnp.where(r_max >= 0.0, scattered, full_emb)       # (n_full, D)

    # --- to_out projection ---
    dec = jnp.dot(dec.astype(jnp.bfloat16), W("to_out_w"),
                  preferred_element_type=jnp.float32) + F("to_out_b")

    # --- performer decoder stack ---
    for i in range(NUM_DEC_LAYERS):
        dec = _performer_layer(dec, W, F, "d%d" % i, blockmask, seg_dh, seg_hd)

    # --- output head (2-D slab; wrapper reshapes to (B, L_FULL, OUTPUT_DIM)) ---
    o_ref[...] = jnp.dot(dec.astype(jnp.bfloat16), W("out_w"),
                         preferred_element_type=jnp.float32) + F("out_b")


# ---------------- full model forward (single pallas_call) ----------------
def sc_model_forward(wblob, fblob, input_seq, full_seq, encoder_position_gene_ids):
    Bn, Le = input_seq.shape
    _, Lf = full_seq.shape
    assert (Bn, Le, Lf) == (B, L_ENC, L_FULL)
    # Only tiny index/value plumbing happens outside the kernel (layout prep).
    vals = jnp.concatenate([input_seq.reshape(Bn * Le, 1),
                            full_seq.reshape(Bn * Lf, 1)], axis=0).astype(jnp.float32)
    gid2d = encoder_position_gene_ids.astype(jnp.int32)
    gid_col = gid2d.reshape(Bn * Le, 1)                       # for pos-emb one-hot
    tgt_row = jnp.where(gid2d == PAD_ID, -1,
                        gid2d + (jnp.arange(Bn, dtype=jnp.int32) * Lf)[:, None]
                        ).reshape(1, Bn * Le)                 # flat scatter targets
    out2d = pl.pallas_call(
        _fused_forward_kernel,
        out_shape=jax.ShapeDtypeStruct((Bn * Lf, OUTPUT_DIM), jnp.float32),
        in_specs=[_vmem_spec()] * 5,
        out_specs=_vmem_spec(),
    )(vals, gid_col, tgt_row, wblob, fblob)
    return out2d.reshape(Bn, Lf, OUTPUT_DIM)


# ---------------- deterministic parameter init ----------------
def init_params(key):
    keys = iter(jax.random.split(key, 128))

    def nrm(shape, scale=0.02):
        return (scale * jax.random.normal(next(keys), shape)).astype(jnp.float32)

    def zeros(shape):
        return jnp.zeros(shape, jnp.float32)

    def ones(shape):
        return jnp.ones(shape, jnp.float32)

    D, FD = ENCODER_DIM, DECODER_DIM
    params = {
        "tok": dict(w1=nrm((1, BIN_NUM), 0.5), b1=nrm((1, BIN_NUM), 0.5),
                    w2t=nrm((BIN_NUM, BIN_NUM), 0.5), b2=nrm((1, BIN_NUM), 0.5),
                    emb=nrm((BIN_NUM, D)), mask_emb=nrm((1, D)), pad_emb=nrm((1, D))),
        "pos_emb": nrm((NPOS, D)),
        "enc": [dict(wq=nrm((D, D)), wk=nrm((D, D)), wv=nrm((D, D)), wo=nrm((D, D)),
                     bq=zeros((1, D)), bk=zeros((1, D)), bv=zeros((1, D)), bo=zeros((1, D)),
                     ln1w=ones((1, D)), ln1b=zeros((1, D)),
                     w1=nrm((D, FF_ENC)), b1=zeros((1, FF_ENC)),
                     w2=nrm((FF_ENC, D)), b2=zeros((1, D)),
                     ln2w=ones((1, D)), ln2b=zeros((1, D)))
                for _ in range(NUM_ENC_LAYERS)],
        "dec": [dict(wq=nrm((FD, FD)), wk=nrm((FD, FD)), wv=nrm((FD, FD)), wo=nrm((FD, FD)),
                     bo=zeros((1, FD)),
                     ln1w=ones((1, FD)), ln1b=zeros((1, FD)),
                     w1=nrm((FD, FF_DEC)), b1=zeros((1, FF_DEC)),
                     w2=nrm((FF_DEC, FD)), b2=zeros((1, FD)),
                     ln2w=ones((1, FD)), ln2b=zeros((1, FD)))
                for _ in range(NUM_DEC_LAYERS)],
        "to_out_w": nrm((D, FD)), "to_out_b": zeros((1, FD)),
        "out_w": nrm((FD, OUTPUT_DIM)), "out_b": zeros((1, OUTPUT_DIM)),
    }
    return params


def pack_params(params):
    """Fold the 1/sqrt(dh) attention scale into the encoder q projections, cast
    matmul weights to bf16, precompute head-indicator constants and pack
    everything into two contiguous 128-lane blobs (2 weight DMAs instead of ~37)."""
    wvals, fvals = {}, {}
    tok = params["tok"]
    wvals["tok_emb"] = tok["emb"]
    wvals["pos"] = params["pos_emb"]
    fvals.update(tok_w1=tok["w1"], tok_b1=tok["b1"], tok_w2t=tok["w2t"], tok_b2=tok["b2"],
                 mask_emb=tok["mask_emb"], pad_emb=tok["pad_emb"])
    scale = 1.0 / (HEAD_DIM ** 0.5)
    for i, lyr in enumerate(params["enc"]):
        p = "e%d" % i
        wvals[p + "_wq"] = lyr["wq"] * scale                 # fold attention scale
        fvals[p + "_bq"] = lyr["bq"] * scale
        wvals[p + "_wk"] = lyr["wk"]; fvals[p + "_bk"] = lyr["bk"]
        wvals[p + "_wv"] = lyr["wv"]; fvals[p + "_bv"] = lyr["bv"]
        wvals[p + "_wo"] = lyr["wo"]; fvals[p + "_bo"] = lyr["bo"]
        wvals[p + "_w1"] = lyr["w1"]; fvals[p + "_b1"] = lyr["b1"]
        wvals[p + "_w2"] = lyr["w2"]; fvals[p + "_b2"] = lyr["b2"]
        fvals[p + "_ln1w"] = lyr["ln1w"]; fvals[p + "_ln1b"] = lyr["ln1b"]
        fvals[p + "_ln2w"] = lyr["ln2w"]; fvals[p + "_ln2b"] = lyr["ln2b"]
    for i, lyr in enumerate(params["dec"]):
        p = "d%d" % i
        wvals[p + "_wq"] = lyr["wq"]; wvals[p + "_wk"] = lyr["wk"]; wvals[p + "_wv"] = lyr["wv"]
        wvals[p + "_wo"] = lyr["wo"]; fvals[p + "_bo"] = lyr["bo"]
        wvals[p + "_w1"] = lyr["w1"]; fvals[p + "_b1"] = lyr["b1"]
        wvals[p + "_w2"] = lyr["w2"]; fvals[p + "_b2"] = lyr["b2"]
        fvals[p + "_ln1w"] = lyr["ln1w"]; fvals[p + "_ln1b"] = lyr["ln1b"]
        fvals[p + "_ln2w"] = lyr["ln2w"]; fvals[p + "_ln2b"] = lyr["ln2b"]
    wvals["to_out_w"] = params["to_out_w"]; fvals["to_out_b"] = params["to_out_b"]
    wvals["out_w"] = params["out_w"]; fvals["out_b"] = params["out_b"]

    # head-block indicator constants (exact 0/1 matrices)
    d_idx = jnp.arange(ENCODER_DIM)
    h_idx = jnp.arange(NUM_ENC_HEADS)
    seg = (d_idx[:, None] // HEAD_DIM == h_idx[None, :]).astype(jnp.float32)   # (D, H)
    fvals["seg_dh"] = seg
    fvals["seg_hd"] = seg.T
    fvals["blockmask"] = (d_idx[:, None] // HEAD_DIM ==
                          d_idx[None, :] // HEAD_DIM).astype(jnp.float32)

    wblob = jnp.zeros((_W_ROWS, _BLOB_LANES), jnp.float32)
    for name, arr in wvals.items():
        off, r, c = _W_LAYOUT[name]
        wblob = wblob.at[off:off + r, 0:c].set(arr.astype(jnp.float32))
    fblob = jnp.zeros((_F_ROWS, _BLOB_LANES), jnp.float32)
    for name, arr in fvals.items():
        off, r, c = _F_LAYOUT[name]
        fblob = fblob.at[off:off + r, 0:c].set(arr.astype(jnp.float32))
    return wblob.astype(jnp.bfloat16), fblob


if __name__ == "__main__":
    key = jax.random.PRNGKey(0)
    pkey, k1, k2 = jax.random.split(key, 3)
    params = init_params(pkey)
    wblob, fblob = pack_params(params)

    # encoder input values (float gene expressions) with mask / pad token ids injected
    input_seq = jax.random.uniform(k1, (B, L_ENC), dtype=jnp.float32, minval=0.0, maxval=5.0)
    input_seq = input_seq.at[0, 3].set(float(MASK_ID))
    input_seq = input_seq.at[1, 5].set(float(MASK_ID))
    input_seq = input_seq.at[1, 7].set(float(PAD_ID))

    full_seq = jax.random.uniform(k2, (B, L_FULL), dtype=jnp.float32, minval=0.0, maxval=5.0)
    full_seq = full_seq.at[0, 10].set(float(MASK_ID))

    # gene-id positions: indices into the full sequence (and pos_emb table); one pad slot
    base = jnp.arange(L_ENC, dtype=jnp.int32)
    gene_ids = jnp.stack([2 * base, 2 * base + 1]).astype(jnp.int32)   # values in [0, L_FULL)
    gene_ids = gene_ids.at[1, 7].set(PAD_ID)

    fwd = jax.jit(sc_model_forward)
    out = fwd(wblob, fblob, input_seq, full_seq, gene_ids)
    out = jax.block_until_ready(out)
    assert out.shape == (B, L_FULL, OUTPUT_DIM), out.shape
    assert bool(jnp.all(jnp.isfinite(out)))
    print("KERNEL_OK")
</pallas_src>

<mosaic_0001>
module attributes {stable_mosaic.version = 11 : i64} {
  func.func @_fused_forward_kernel(%arg0: memref<48x1xf32, #tpu.memory_space<vmem>>, %arg1: memref<16x1xi32, #tpu.memory_space<vmem>>, %arg2: memref<1x16xi32, #tpu.memory_space<vmem>>, %arg3: memref<1327x128xbf16, #tpu.memory_space<vmem>>, %arg4: memref<117x128xf32, #tpu.memory_space<vmem>>, %arg5: memref<32x10xf32, #tpu.memory_space<vmem>>) attributes {dimension_semantics = [], scalar_prefetch = 0 : i64, scratch_operands = 0 : i64, tpu.core_type = #tpu.core_type<tc>} {
    %c49 = arith.constant 49 : index
    %c0 = arith.constant 0 : index
    %0 = vector.load %arg4[%c49, %c0] : memref<117x128xf32, #tpu.memory_space<vmem>>, vector<32x4xf32>
    %c81 = arith.constant 81 : index
    %c0_0 = arith.constant 0 : index
    %1 = vector.load %arg4[%c81, %c0_0] : memref<117x128xf32, #tpu.memory_space<vmem>>, vector<4x32xf32>
    %c85 = arith.constant 85 : index
    %c0_1 = arith.constant 0 : index
    %2 = vector.load %arg4[%c85, %c0_1] : memref<117x128xf32, #tpu.memory_space<vmem>>, vector<32x32xf32>
    %c0_2 = arith.constant 0 : index
    %c0_3 = arith.constant 0 : index
    %3 = vector.load %arg0[%c0_2, %c0_3] : memref<48x1xf32, #tpu.memory_space<vmem>>, vector<48x1xf32>
    %c0_4 = arith.constant 0 : index
    %c0_5 = arith.constant 0 : index
    %4 = vector.load %arg4[%c0_4, %c0_5] : memref<117x128xf32, #tpu.memory_space<vmem>>, vector<1x8xf32>
    %5 = vector.broadcast %3 : vector<48x1xf32> to vector<48x8xf32>
    %6 = vector.broadcast %4 : vector<1x8xf32> to vector<48x8xf32>
    %7 = arith.mulf %5, %6 : vector<48x8xf32>
    %c1 = arith.constant 1 : index
    %c0_6 = arith.constant 0 : index
    %8 = vector.load %arg4[%c1, %c0_6] : memref<117x128xf32, #tpu.memory_space<vmem>>, vector<1x8xf32>
    %9 = vector.broadcast %8 : vector<1x8xf32> to vector<48x8xf32>
    %10 = arith.addf %7, %9 : vector<48x8xf32>
    %cst = arith.constant 0.000000e+00 : f32
    %11 = vector.broadcast %cst : f32 to vector<48x8xf32>
    %12 = arith.cmpf oge, %10, %11 : vector<48x8xf32>
    %cst_7 = arith.constant 1.000000e-01 : f32
    %13 = vector.broadcast %cst_7 : f32 to vector<48x8xf32>
    %14 = arith.mulf %13, %10 : vector<48x8xf32>
    %15 = arith.select %12, %10, %14 : vector<48x8xi1>, vector<48x8xf32>
    %c2 = arith.constant 2 : index
    %c0_8 = arith.constant 0 : index
    %16 = vector.load %arg4[%c2, %c0_8] : memref<117x128xf32, #tpu.memory_space<vmem>>, vector<8x8xf32>
    %cst_9 = arith.constant dense<0.000000e+00> : vector<48x8xf32>
    %17 = tpu.matmul %15, %16, %cst_9 {dimension_numbers = #tpu.dot_dimension_numbers<[1], [0], [0], [1], [0, 0, 1, 1], [], []>} : vector<48x8xf32>, vector<8x8xf32>, vector<48x8xf32> -> vector<48x8xf32>
    %c10 = arith.constant 10 : index
    %c0_10 = arith.constant 0 : index
    %18 = vector.load %arg4[%c10, %c0_10] : memref<117x128xf32, #tpu.memory_space<vmem>>, vector<1x8xf32>
    %19 = vector.broadcast %18 : vector<1x8xf32> to vector<48x8xf32>
    %20 = arith.addf %17, %19 : vector<48x8xf32>
    %cst_11 = arith.constant 1.000000e+00 : f32
    %21 = vector.broadcast %cst_11 : f32 to vector<48x8xf32>
    %22 = arith.mulf %21, %15 : vector<48x8xf32>
    %23 = arith.addf %22, %20 : vector<48x8xf32>
    %cst_12 = arith.constant dense<0xFF800000> : vector<48xf32>
    %24 = vector.multi_reduction <maximumf>, %23, %cst_12 [1] : vector<48x8xf32> to vector<48xf32>
    %25 = vector.shape_cast %24 : vector<48xf32> to vector<48x1xf32>
    %26 = vector.broadcast %25 : vector<48x1xf32> to vector<48x8xf32>
    %27 = arith.subf %23, %26 : vector<48x8xf32>
    %28 = math.exp %27 : vector<48x8xf32>
    %cst_13 = arith.constant dense<0.000000e+00> : vector<48xf32>
    %29 = vector.multi_reduction <add>, %28, %cst_13 [1] : vector<48x8xf32> to vector<48xf32>
    %30 = vector.shape_cast %29 : vector<48xf32> to vector<48x1xf32>
    %31 = vector.broadcast %30 : vector<48x1xf32> to vector<48x8xf32>
    %32 = arith.divf %28, %31 : vector<48x8xf32>
    %33 = arith.truncf %32 : vector<48x8xf32> to vector<48x8xbf16>
    %c0_14 = arith.constant 0 : index
    %c0_15 = arith.constant 0 : index
    %34 = vector.load %arg3[%c0_14, %c0_15] : memref<1327x128xbf16, #tpu.memory_space<vmem>>, vector<8x32xbf16>
    %cst_16 = arith.constant dense<0.000000e+00> : vector<48x32xf32>
    %35 = tpu.matmul %33, %34, %cst_16 {dimension_numbers = #tpu.dot_dimension_numbers<[1], [0], [0], [1], [0, 0, 1, 1], [], []>} : vector<48x8xbf16>, vector<8x32xbf16>, vector<48x32xf32> -> vector<48x32xf32>
    %cst_17 = arith.constant 1.020000e+02 : f32
    %36 = vector.broadcast %cst_17 : f32 to vector<48x1xf32>
    %37 = arith.cmpf oeq, %3, %36 : vector<48x1xf32>
    %c11 = arith.constant 11 : index
    %c0_18 = arith.constant 0 : index
    %38 = vector.load %arg4[%c11, %c0_18] : memref<117x128xf32, #tpu.memory_space<vmem>>, vector<1x32xf32>
    %39 = vector.shape_cast %37 : vector<48x1xi1> to vector<48x1xi1>
    %40 = vector.broadcast %39 : vector<48x1xi1> to vector<48x32xi1>
    %41 = vector.shape_cast %38 : vector<1x32xf32> to vector<1x32xf32>
    %42 = vector.broadcast %41 : vector<1x32xf32> to vector<48x32xf32>
    %43 = arith.select %40, %42, %35 : vector<48x32xi1>, vector<48x32xf32>
    %cst_19 = arith.constant 1.010000e+02 : f32
    %44 = vector.broadcast %cst_19 : f32 to vector<48x1xf32>
    %45 = arith.cmpf oeq, %3, %44 : vector<48x1xf32>
    %c12 = arith.constant 12 : index
    %c0_20 = arith.constant 0 : index
    %46 = vector.load %arg4[%c12, %c0_20] : memref<117x128xf32, #tpu.memory_space<vmem>>, vector<1x32xf32>
    %47 = vector.shape_cast %45 : vector<48x1xi1> to vector<48x1xi1>
    %48 = vector.broadcast %47 : vector<48x1xi1> to vector<48x32xi1>
    %49 = vector.shape_cast %46 : vector<1x32xf32> to vector<1x32xf32>
    %50 = vector.broadcast %49 : vector<1x32xf32> to vector<48x32xf32>
    %51 = arith.select %48, %50, %43 : vector<48x32xi1>, vector<48x32xf32>
    %52 = vector.extract_strided_slice %51 {offsets = [0, 0], sizes = [16, 32], strides = [1, 1]} : vector<48x32xf32> to vector<16x32xf32>
    %53 = vector.extract_strided_slice %51 {offsets = [16, 0], sizes = [32, 32], strides = [1, 1]} : vector<48x32xf32> to vector<32x32xf32>
    %c0_21 = arith.constant 0 : index
    %c0_22 = arith.constant 0 : index
    %54 = vector.load %arg1[%c0_21, %c0_22] : memref<16x1xi32, #tpu.memory_space<vmem>>, vector<16x1xi32>
    %55 = tpu.iota {dimensions = array<i32: 1>} : vector<16x103xi32>
    %56 = vector.broadcast %54 : vector<16x1xi32> to vector<16x103xi32>
    %57 = arith.cmpi eq, %55, %56 : vector<16x103xi32>
    %58 = arith.extui %57 : vector<16x103xi1> to vector<16x103xi32>
    %59 = arith.sitofp %58 : vector<16x103xi32> to vector<16x103xf32>
    %60 = arith.truncf %59 : vector<16x103xf32> to vector<16x103xbf16>
    %c1224 = arith.constant 1224 : index
    %c0_23 = arith.constant 0 : index
    %61 = vector.load %arg3[%c1224, %c0_23] : memref<1327x128xbf16, #tpu.memory_space<vmem>>, vector<103x32xbf16>
    %cst_24 = arith.constant dense<0.000000e+00> : vector<16x32xf32>
    %62 = tpu.matmul %60, %61, %cst_24 {dimension_numbers = #tpu.dot_dimension_numbers<[1], [0], [0], [1], [0, 0, 1, 1], [], []>} : vector<16x103xbf16>, vector<103x32xbf16>, vector<16x32xf32> -> vector<16x32xf32>
    %63 = arith.addf %52, %62 : vector<16x32xf32>
    %64 = arith.truncf %63 : vector<16x32xf32> to vector<16x32xbf16>
    %c8 = arith.constant 8 : index
    %c0_25 = arith.constant 0 : index
    %65 = vector.load %arg3[%c8, %c0_25] : memref<1327x128xbf16, #tpu.memory_space<vmem>>, vector<32x32xbf16>
    %cst_26 = arith.constant dense<0.000000e+00> : vector<16x32xf32>
    %66 = tpu.matmul %64, %65, %cst_26 {dimension_numbers = #tpu.dot_dimension_numbers<[1], [0], [0], [1], [0, 0, 1, 1], [], []>} : vector<16x32xbf16>, vector<32x32xbf16>, vector<16x32xf32> -> vector<16x32xf32>
    %c13 = arith.constant 13 : index
    %c0_27 = arith.constant 0 : index
    %67 = vector.load %arg4[%c13, %c0_27] : memref<117x128xf32, #tpu.memory_space<vmem>>, vector<1x32xf32>
    %68 = vector.broadcast %67 : vector<1x32xf32> to vector<16x32xf32>
    %69 = arith.addf %66, %68 : vector<16x32xf32>
    %c40 = arith.constant 40 : index
    %c0_28 = arith.constant 0 : index
    %70 = vector.load %arg3[%c40, %c0_28] : memref<1327x128xbf16, #tpu.memory_space<vmem>>, vector<32x32xbf16>
    %cst_29 = arith.constant dense<0.000000e+00> : vector<16x32xf32>
    %71 = tpu.matmul %64, %70, %cst_29 {dimension_numbers = #tpu.dot_dimension_numbers<[1], [0], [0], [1], [0, 0, 1, 1], [], []>} : vector<16x32xbf16>, vector<32x32xbf16>, vector<16x32xf32> -> vector<16x32xf32>
    %c14 = arith.constant 14 : index
    %c0_30 = arith.constant 0 : index
    %72 = vector.load %arg4[%c14, %c0_30] : memref<117x128xf32, #tpu.memory_space<vmem>>, vector<1x32xf32>
    %73 = vector.broadcast %72 : vector<1x32xf32> to vector<16x32xf32>
    %74 = arith.addf %71, %73 : vector<16x32xf32>
    %c72 = arith.constant 72 : index
    %c0_31 = arith.constant 0 : index
    %75 = vector.load %arg3[%c72, %c0_31] : memref<1327x128xbf16, #tpu.memory_space<vmem>>, vector<32x32xbf16>
    %cst_32 = arith.constant dense<0.000000e+00> : vector<16x32xf32>
    %76 = tpu.matmul %64, %75, %cst_32 {dimension_numbers = #tpu.dot_dimension_numbers<[1], [0], [0], [1], [0, 0, 1, 1], [], []>} : vector<16x32xbf16>, vector<32x32xbf16>, vector<16x32xf32> -> vector<16x32xf32>
    %c15 = arith.constant 15 : index
    %c0_33 = arith.constant 0 : index
    %77 = vector.load %arg4[%c15, %c0_33] : memref<117x128xf32, #tpu.memory_space<vmem>>, vector<1x32xf32>
    %78 = vector.broadcast %77 : vector<1x32xf32> to vector<16x32xf32>
    %79 = arith.addf %76, %78 : vector<16x32xf32>
    %80 = vector.extract_strided_slice %69 {offsets = [0, 0], sizes = [8, 32], strides = [1, 1]} : vector<16x32xf32> to vector<8x32xf32>
    %81 = vector.extract_strided_slice %69 {offsets = [8, 0], sizes = [8, 32], strides = [1, 1]} : vector<16x32xf32> to vector<8x32xf32>
    %82 = vector.extract_strided_slice %74 {offsets = [0, 0], sizes = [8, 32], strides = [1, 1]} : vector<16x32xf32> to vector<8x32xf32>
    %83 = vector.extract_strided_slice %74 {offsets = [8, 0], sizes = [8, 32], strides = [1, 1]} : vector<16x32xf32> to vector<8x32xf32>
    %84 = vector.extract_strided_slice %79 {offsets = [0, 0], sizes = [8, 32], strides = [1, 1]} : vector<16x32xf32> to vector<8x32xf32>
    %85 = vector.extract_strided_slice %79 {offsets = [8, 0], sizes = [8, 32], strides = [1, 1]} : vector<16x32xf32> to vector<8x32xf32>
    %86 = arith.mulf %80, %82 : vector<8x32xf32>
    %cst_34 = arith.constant dense<0.000000e+00> : vector<8x4xf32>
    %87 = tpu.matmul %86, %0, %cst_34 {dimension_numbers = #tpu.dot_dimension_numbers<[1], [0], [0], [1], [0, 0, 1, 1], [], []>} : vector<8x32xf32>, vector<32x4xf32>, vector<8x4xf32> -> vector<8x4xf32>
    %88 = arith.mulf %80, %83 : vector<8x32xf32>
    %cst_35 = arith.constant dense<0.000000e+00> : vector<8x4xf32>
    %89 = tpu.matmul %88, %0, %cst_35 {dimension_numbers = #tpu.dot_dimension_numbers<[1], [0], [0], [1], [0, 0, 1, 1], [], []>} : vector<8x32xf32>, vector<32x4xf32>, vector<8x4xf32> -> vector<8x4xf32>
    %90 = arith.maximumf %87, %89 : vector<8x4xf32>
    %91 = arith.subf %87, %90 : vector<8x4xf32>
    %92 = math.exp %91 : vector<8x4xf32>
    %93 = arith.subf %89, %90 : vector<8x4xf32>
    %94 = math.exp %93 : vector<8x4xf32>
    %95 = arith.addf %92, %94 : vector<8x4xf32>
    %cst_36 = arith.constant 1.000000e+00 : f32
    %96 = vector.broadcast %cst_36 : f32 to vector<8x4xf32>
    %97 = arith.divf %96, %95 : vector<8x4xf32>
    %98 = arith.mulf %92, %97 : vector<8x4xf32>
    %cst_37 = arith.constant dense<0.000000e+00> : vector<8x32xf32>
    %99 = tpu.matmul %98, %1, %cst_37 {dimension_numbers = #tpu.dot_dimension_numbers<[1], [0], [0], [1], [0, 0, 1, 1], [], []>} : vector<8x4xf32>, vector<4x32xf32>, vector<8x32xf32> -> vector<8x32xf32>
    %100 = arith.mulf %99, %84 : vector<8x32xf32>
    %101 = arith.mulf %94, %97 : vector<8x4xf32>
    %cst_38 = arith.constant dense<0.000000e+00> : vector<8x32xf32>
    %102 = tpu.matmul %101, %1, %cst_38 {dimension_numbers = #tpu.dot_dimension_numbers<[1], [0], [0], [1], [0, 0, 1, 1], [], []>} : vector<8x4xf32>, vector<4x32xf32>, vector<8x32xf32> -> vector<8x32xf32>
    %103 = arith.mulf %102, %85 : vector<8x32xf32>
    %104 = arith.addf %100, %103 : vector<8x32xf32>
    %105 = arith.mulf %81, %82 : vector<8x32xf32>
    %cst_39 = arith.constant dense<0.000000e+00> : vector<8x4xf32>
    %106 = tpu.matmul %105, %0, %cst_39 {dimension_numbers = #tpu.dot_dimension_numbers<[1], [0], [0], [1], [0, 0, 1, 1], [], []>} : vector<8x32xf32>, vector<32x4xf32>, vector<8x4xf32> -> vector<8x4xf32>
    %107 = arith.mulf %81, %83 : vector<8x32xf32>
    %cst_40 = arith.constant dense<0.000000e+00> : vector<8x4xf32>
    %108 = tpu.matmul %107, %0, %cst_40 {dimension_numbers = #tpu.dot_dimension_numbers<[1], [0], [0], [1], [0, 0, 1, 1], [], []>} : vector<8x32xf32>, vector<32x4xf32>, vector<8x4xf32> -> vector<8x4xf32>
    %109 = arith.maximumf %106, %108 : vector<8x4xf32>
    %110 = arith.subf %106, %109 : vector<8x4xf32>
    %111 = math.exp %110 : vector<8x4xf32>
    %112 = arith.subf %108, %109 : vector<8x4xf32>
    %113 = math.exp %112 : vector<8x4xf32>
    %114 = arith.addf %111, %113 : vector<8x4xf32>
    %cst_41 = arith.constant 1.000000e+00 : f32
    %115 = vector.broadcast %cst_41 : f32 to vector<8x4xf32>
    %116 = arith.divf %115, %114 : vector<8x4xf32>
    %117 = arith.mulf %111, %116 : vector<8x4xf32>
    %cst_42 = arith.constant dense<0.000000e+00> : vector<8x32xf32>
    %118 = tpu.matmul %117, %1, %cst_42 {dimension_numbers = #tpu.dot_dimension_numbers<[1], [0], [0], [1], [0, 0, 1, 1], [], []>} : vector<8x4xf32>, vector<4x32xf32>, vector<8x32xf32> -> vector<8x32xf32>
    %119 = arith.mulf %118, %84 : vector<8x32xf32>
    %120 = arith.mulf %113, %116 : vector<8x4xf32>
    %cst_43 = arith.constant dense<0.000000e+00> : vector<8x32xf32>
    %121 = tpu.matmul %120, %1, %cst_43 {dimension_numbers = #tpu.dot_dimension_numbers<[1], [0], [0], [1], [0, 0, 1, 1], [], []>} : vector<8x4xf32>, vector<4x32xf32>, vector<8x32xf32> -> vector<8x32xf32>
    %122 = arith.mulf %121, %85 : vector<8x32xf32>
    %123 = arith.addf %119, %122 : vector<8x32xf32>
    %124 = tpu.concatenate %104, %123 in 0 : vector<8x32xf32>, vector<8x32xf32> -> vector<16x32xf32>
    %125 = arith.truncf %124 : vector<16x32xf32> to vector<16x32xbf16>
    %c104 = arith.constant 104 : index
    %c0_44 = arith.constant 0 : index
    %126 = vector.load %arg3[%c104, %c0_44] : memref<1327x128xbf16, #tpu.memory_space<vmem>>, vector<32x32xbf16>
    %cst_45 = arith.constant dense<0.000000e+00> : vector<16x32xf32>
    %127 = tpu.matmul %125, %126, %cst_45 {dimension_numbers = #tpu.dot_dimension_numbers<[1], [0], [0], [1], [0, 0, 1, 1], [], []>} : vector<16x32xbf16>, vector<32x32xbf16>, vector<16x32xf32> -> vector<16x32xf32>
    %c16 = arith.constant 16 : index
    %c0_46 = arith.constant 0 : index
    %128 = vector.load %arg4[%c16, %c0_46] : memref<117x128xf32, #tpu.memory_space<vmem>>, vector<1x32xf32>
    %129 = vector.broadcast %128 : vector<1x32xf32> to vector<16x32xf32>
    %130 = arith.addf %127, %129 : vector<16x32xf32>
    %131 = arith.addf %63, %130 : vector<16x32xf32>
    %c17 = arith.constant 17 : index
    %c0_47 = arith.constant 0 : index
    %132 = vector.load %arg4[%c17, %c0_47] : memref<117x128xf32, #tpu.memory_space<vmem>>, vector<1x32xf32>
    %c18 = arith.constant 18 : index
    %c0_48 = arith.constant 0 : index
    %133 = vector.load %arg4[%c18, %c0_48] : memref<117x128xf32, #tpu.memory_space<vmem>>, vector<1x32xf32>
    %cst_49 = arith.constant dense<0.000000e+00> : vector<16xf32>
    %134 = vector.multi_reduction <add>, %131, %cst_49 [1] : vector<16x32xf32> to vector<16xf32>
    %135 = vector.shape_cast %134 : vector<16xf32> to vector<16x1xf32>
    %cst_50 = arith.constant 3.200000e+01 : f32
    %136 = vector.broadcast %cst_50 : f32 to vector<16x1xf32>
    %137 = arith.divf %135, %136 : vector<16x1xf32>
    %138 = vector.broadcast %137 : vector<16x1xf32> to vector<16x32xf32>
    %139 = arith.subf %131, %138 : vector<16x32xf32>
    %140 = arith.mulf %139, %139 : vector<16x32xf32>
    %cst_51 = arith.constant dense<0.000000e+00> : vector<16xf32>
    %141 = vector.multi_reduction <add>, %140, %cst_51 [1] : vector<16x32xf32> to vector<16xf32>
    %142 = vector.shape_cast %141 : vector<16xf32> to vector<16x1xf32>
    %cst_52 = arith.constant 3.200000e+01 : f32
    %143 = vector.broadcast %cst_52 : f32 to vector<16x1xf32>
    %144 = arith.divf %142, %143 : vector<16x1xf32>
    %145 = vector.broadcast %137 : vector<16x1xf32> to vector<16x32xf32>
    %146 = arith.subf %131, %145 : vector<16x32xf32>
    %cst_53 = arith.constant 9.99999974E-6 : f32
    %147 = vector.broadcast %cst_53 : f32 to vector<16x1xf32>
    %148 = arith.addf %144, %147 : vector<16x1xf32>
    %149 = math.rsqrt %148 : vector<16x1xf32>
    %150 = vector.broadcast %149 : vector<16x1xf32> to vector<16x32xf32>
    %151 = arith.mulf %146, %150 : vector<16x32xf32>
    %152 = vector.broadcast %132 : vector<1x32xf32> to vector<16x32xf32>
    %153 = arith.mulf %151, %152 : vector<16x32xf32>
    %154 = vector.broadcast %133 : vector<1x32xf32> to vector<16x32xf32>
    %155 = arith.addf %153, %154 : vector<16x32xf32>
    %156 = arith.truncf %155 : vector<16x32xf32> to vector<16x32xbf16>
    %c136 = arith.constant 136 : index
    %c0_54 = arith.constant 0 : index
    %157 = vector.load %arg3[%c136, %c0_54] : memref<1327x128xbf16, #tpu.memory_space<vmem>>, vector<32x128xbf16>
    %cst_55 = arith.constant dense<0.000000e+00> : vector<16x128xf32>
    %158 = tpu.matmul %156, %157, %cst_55 {dimension_numbers = #tpu.dot_dimension_numbers<[1], [0], [0], [1], [0, 0, 1, 1], [], []>} : vector<16x32xbf16>, vector<32x128xbf16>, vector<16x128xf32> -> vector<16x128xf32>
    %c19 = arith.constant 19 : index
    %c0_56 = arith.constant 0 : index
    %159 = vector.load %arg4[%c19, %c0_56] : memref<117x128xf32, #tpu.memory_space<vmem>>, vector<1x128xf32>
    %160 = vector.broadcast %159 : vector<1x128xf32> to vector<16x128xf32>
    %161 = arith.addf %158, %160 : vector<16x128xf32>
    %cst_57 = arith.constant 0.000000e+00 : f32
    %162 = vector.broadcast %cst_57 : f32 to vector<16x128xf32>
    %163 = arith.maximumf %161, %162 : vector<16x128xf32>
    %164 = arith.truncf %163 : vector<16x128xf32> to vector<16x128xbf16>
    %c168 = arith.constant 168 : index
    %c0_58 = arith.constant 0 : index
    %165 = vector.load %arg3[%c168, %c0_58] : memref<1327x128xbf16, #tpu.memory_space<vmem>>, vector<128x32xbf16>
    %cst_59 = arith.constant dense<0.000000e+00> : vector<16x32xf32>
    %166 = tpu.matmul %164, %165, %cst_59 {dimension_numbers = #tpu.dot_dimension_numbers<[1], [0], [0], [1], [0, 0, 1, 1], [], []>} : vector<16x128xbf16>, vector<128x32xbf16>, vector<16x32xf32> -> vector<16x32xf32>
    %c20 = arith.constant 20 : index
    %c0_60 = arith.constant 0 : index
    %167 = vector.load %arg4[%c20, %c0_60] : memref<117x128xf32, #tpu.memory_space<vmem>>, vector<1x32xf32>
    %168 = vector.broadcast %167 : vector<1x32xf32> to vector<16x32xf32>
    %169 = arith.addf %166, %168 : vector<16x32xf32>
    %170 = arith.addf %155, %169 : vector<16x32xf32>
    %c21 = arith.constant 21 : index
    %c0_61 = arith.constant 0 : index
    %171 = vector.load %arg4[%c21, %c0_61] : memref<117x128xf32, #tpu.memory_space<vmem>>, vector<1x32xf32>
    %c22 = arith.constant 22 : index
    %c0_62 = arith.constant 0 : index
    %172 = vector.load %arg4[%c22, %c0_62] : memref<117x128xf32, #tpu.memory_space<vmem>>, vector<1x32xf32>
    %cst_63 = arith.constant dense<0.000000e+00> : vector<16xf32>
    %173 = vector.multi_reduction <add>, %170, %cst_63 [1] : vector<16x32xf32> to vector<16xf32>
    %174 = vector.shape_cast %173 : vector<16xf32> to vector<16x1xf32>
    %cst_64 = arith.constant 3.200000e+01 : f32
    %175 = vector.broadcast %cst_64 : f32 to vector<16x1xf32>
    %176 = arith.divf %174, %175 : vector<16x1xf32>
    %177 = vector.broadcast %176 : vector<16x1xf32> to vector<16x32xf32>
    %178 = arith.subf %170, %177 : vector<16x32xf32>
    %179 = arith.mulf %178, %178 : vector<16x32xf32>
    %cst_65 = arith.constant dense<0.000000e+00> : vector<16xf32>
    %180 = vector.multi_reduction <add>, %179, %cst_65 [1] : vector<16x32xf32> to vector<16xf32>
    %181 = vector.shape_cast %180 : vector<16xf32> to vector<16x1xf32>
    %cst_66 = arith.constant 3.200000e+01 : f32
    %182 = vector.broadcast %cst_66 : f32 to vector<16x1xf32>
    %183 = arith.divf %181, %182 : vector<16x1xf32>
    %184 = vector.broadcast %176 : vector<16x1xf32> to vector<16x32xf32>
    %185 = arith.subf %170, %184 : vector<16x32xf32>
    %cst_67 = arith.constant 9.99999974E-6 : f32
    %186 = vector.broadcast %cst_67 : f32 to vector<16x1xf32>
    %187 = arith.addf %183, %186 : vector<16x1xf32>
    %188 = math.rsqrt %187 : vector<16x1xf32>
    %189 = vector.broadcast %188 : vector<16x1xf32> to vector<16x32xf32>
    %190 = arith.mulf %185, %189 : vector<16x32xf32>
    %191 = vector.broadcast %171 : vector<1x32xf32> to vector<16x32xf32>
    %192 = arith.mulf %190, %191 : vector<16x32xf32>
    %193 = vector.broadcast %172 : vector<1x32xf32> to vector<16x32xf32>
    %194 = arith.addf %192, %193 : vector<16x32xf32>
    %195 = arith.truncf %194 : vector<16x32xf32> to vector<16x32xbf16>
    %c296 = arith.constant 296 : index
    %c0_68 = arith.constant 0 : index
    %196 = vector.load %arg3[%c296, %c0_68] : memref<1327x128xbf16, #tpu.memory_space<vmem>>, vector<32x32xbf16>
    %cst_69 = arith.constant dense<0.000000e+00> : vector<16x32xf32>
    %197 = tpu.matmul %195, %196, %cst_69 {dimension_numbers = #tpu.dot_dimension_numbers<[1], [0], [0], [1], [0, 0, 1, 1], [], []>} : vector<16x32xbf16>, vector<32x32xbf16>, vector<16x32xf32> -> vector<16x32xf32>
    %c23 = arith.constant 23 : index
    %c0_70 = arith.constant 0 : index
    %198 = vector.load %arg4[%c23, %c0_70] : memref<117x128xf32, #tpu.memory_space<vmem>>, vector<1x32xf32>
    %199 = vector.broadcast %198 : vector<1x32xf32> to vector<16x32xf32>
    %200 = arith.addf %197, %199 : vector<16x32xf32>
    %c328 = arith.constant 328 : index
    %c0_71 = arith.constant 0 : index
    %201 = vector.load %arg3[%c328, %c0_71] : memref<1327x128xbf16, #tpu.memory_space<vmem>>, vector<32x32xbf16>
    %cst_72 = arith.constant dense<0.000000e+00> : vector<16x32xf32>
    %202 = tpu.matmul %195, %201, %cst_72 {dimension_numbers = #tpu.dot_dimension_numbers<[1], [0], [0], [1], [0, 0, 1, 1], [], []>} : vector<16x32xbf16>, vector<32x32xbf16>, vector<16x32xf32> -> vector<16x32xf32>
    %c24 = arith.constant 24 : index
    %c0_73 = arith.constant 0 : index
    %203 = vector.load %arg4[%c24, %c0_73] : memref<117x128xf32, #tpu.memory_space<vmem>>, vector<1x32xf32>
    %204 = vector.broadcast %203 : vector<1x32xf32> to vector<16x32xf32>
    %205 = arith.addf %202, %204 : vector<16x32xf32>
    %c360 = arith.constant 360 : index
    %c0_74 = arith.constant 0 : index
    %206 = vector.load %arg3[%c360, %c0_74] : memref<1327x128xbf16, #tpu.memory_space<vmem>>, vector<32x32xbf16>
    %cst_75 = arith.constant dense<0.000000e+00> : vector<16x32xf32>
    %207 = tpu.matmul %195, %206, %cst_75 {dimension_numbers = #tpu.dot_dimension_numbers<[1], [0], [0], [1], [0, 0, 1, 1], [], []>} : vector<16x32xbf16>, vector<32x32xbf16>, vector<16x32xf32> -> vector<16x32xf32>
    %c25 = arith.constant 25 : index
    %c0_76 = arith.constant 0 : index
    %208 = vector.load %arg4[%c25, %c0_76] : memref<117x128xf32, #tpu.memory_space<vmem>>, vector<1x32xf32>
    %209 = vector.broadcast %208 : vector<1x32xf32> to vector<16x32xf32>
    %210 = arith.addf %207, %209 : vector<16x32xf32>
    %211 = vector.extract_strided_slice %200 {offsets = [0, 0], sizes = [8, 32], strides = [1, 1]} : vector<16x32xf32> to vector<8x32xf32>
    %212 = vector.extract_strided_slice %200 {offsets = [8, 0], sizes = [8, 32], strides = [1, 1]} : vector<16x32xf32> to vector<8x32xf32>
    %213 = vector.extract_strided_slice %205 {offsets = [0, 0], sizes = [8, 32], strides = [1, 1]} : vector<16x32xf32> to vector<8x32xf32>
    %214 = vector.extract_strided_slice %205 {offsets = [8, 0], sizes = [8, 32], strides = [1, 1]} : vector<16x32xf32> to vector<8x32xf32>
    %215 = vector.extract_strided_slice %210 {offsets = [0, 0], sizes = [8, 32], strides = [1, 1]} : vector<16x32xf32> to vector<8x32xf32>
    %216 = vector.extract_strided_slice %210 {offsets = [8, 0], sizes = [8, 32], strides = [1, 1]} : vector<16x32xf32> to vector<8x32xf32>
    %217 = arith.mulf %211, %213 : vector<8x32xf32>
    %cst_77 = arith.constant dense<0.000000e+00> : vector<8x4xf32>
    %218 = tpu.matmul %217, %0, %cst_77 {dimension_numbers = #tpu.dot_dimension_numbers<[1], [0], [0], [1], [0, 0, 1, 1], [], []>} : vector<8x32xf32>, vector<32x4xf32>, vector<8x4xf32> -> vector<8x4xf32>
    %219 = arith.mulf %211, %214 : vector<8x32xf32>
    %cst_78 = arith.constant dense<0.000000e+00> : vector<8x4xf32>
    %220 = tpu.matmul %219, %0, %cst_78 {dimension_numbers = #tpu.dot_dimension_numbers<[1], [0], [0], [1], [0, 0, 1, 1], [], []>} : vector<8x32xf32>, vector<32x4xf32>, vector<8x4xf32> -> vector<8x4xf32>
    %221 = arith.maximumf %218, %220 : vector<8x4xf32>
    %222 = arith.subf %218, %221 : vector<8x4xf32>
    %223 = math.exp %222 : vector<8x4xf32>
    %224 = arith.subf %220, %221 : vector<8x4xf32>
    %225 = math.exp %224 : vector<8x4xf32>
    %226 = arith.addf %223, %225 : vector<8x4xf32>
    %cst_79 = arith.constant 1.000000e+00 : f32
    %227 = vector.broadcast %cst_79 : f32 to vector<8x4xf32>
    %228 = arith.divf %227, %226 : vector<8x4xf32>
    %229 = arith.mulf %223, %228 : vector<8x4xf32>
    %cst_80 = arith.constant dense<0.000000e+00> : vector<8x32xf32>
    %230 = tpu.matmul %229, %1, %cst_80 {dimension_numbers = #tpu.dot_dimension_numbers<[1], [0], [0], [1], [0, 0, 1, 1], [], []>} : vector<8x4xf32>, vector<4x32xf32>, vector<8x32xf32> -> vector<8x32xf32>
    %231 = arith.mulf %230, %215 : vector<8x32xf32>
    %232 = arith.mulf %225, %228 : vector<8x4xf32>
    %cst_81 = arith.constant dense<0.000000e+00> : vector<8x32xf32>
    %233 = tpu.matmul %232, %1, %cst_81 {dimension_numbers = #tpu.dot_dimension_numbers<[1], [0], [0], [1], [0, 0, 1, 1], [], []>} : vector<8x4xf32>, vector<4x32xf32>, vector<8x32xf32> -> vector<8x32xf32>
    %234 = arith.mulf %233, %216 : vector<8x32xf32>
    %235 = arith.addf %231, %234 : vector<8x32xf32>
    %236 = arith.mulf %212, %213 : vector<8x32xf32>
    %cst_82 = arith.constant dense<0.000000e+00> : vector<8x4xf32>
    %237 = tpu.matmul %236, %0, %cst_82 {dimension_numbers = #tpu.dot_dimension_numbers<[1], [0], [0], [1], [0, 0, 1, 1], [], []>} : vector<8x32xf32>, vector<32x4xf32>, vector<8x4xf32> -> vector<8x4xf32>
    %238 = arith.mulf %212, %214 : vector<8x32xf32>
    %cst_83 = arith.constant dense<0.000000e+00> : vector<8x4xf32>
    %239 = tpu.matmul %238, %0, %cst_83 {dimension_numbers = #tpu.dot_dimension_numbers<[1], [0], [0], [1], [0, 0, 1, 1], [], []>} : vector<8x32xf32>, vector<32x4xf32>, vector<8x4xf32> -> vector<8x4xf32>
    %240 = arith.maximumf %237, %239 : vector<8x4xf32>
    %241 = arith.subf %237, %240 : vector<8x4xf32>
    %242 = math.exp %241 : vector<8x4xf32>
    %243 = arith.subf %239, %240 : vector<8x4xf32>
    %244 = math.exp %243 : vector<8x4xf32>
    %245 = arith.addf %242, %244 : vector<8x4xf32>
    %cst_84 = arith.constant 1.000000e+00 : f32
    %246 = vector.broadcast %cst_84 : f32 to vector<8x4xf32>
    %247 = arith.divf %246, %245 : vector<8x4xf32>
    %248 = arith.mulf %242, %247 : vector<8x4xf32>
    %cst_85 = arith.constant dense<0.000000e+00> : vector<8x32xf32>
    %249 = tpu.matmul %248, %1, %cst_85 {dimension_numbers = #tpu.dot_dimension_numbers<[1], [0], [0], [1], [0, 0, 1, 1], [], []>} : vector<8x4xf32>, vector<4x32xf32>, vector<8x32xf32> -> vector<8x32xf32>
    %250 = arith.mulf %249, %215 : vector<8x32xf32>
    %251 = arith.mulf %244, %247 : vector<8x4xf32>
    %cst_86 = arith.constant dense<0.000000e+00> : vector<8x32xf32>
    %252 = tpu.matmul %251, %1, %cst_86 {dimension_numbers = #tpu.dot_dimension_numbers<[1], [0], [0], [1], [0, 0, 1, 1], [], []>} : vector<8x4xf32>, vector<4x32xf32>, vector<8x32xf32> -> vector<8x32xf32>
    %253 = arith.mulf %252, %216 : vector<8x32xf32>
    %254 = arith.addf %250, %253 : vector<8x32xf32>
    %255 = tpu.concatenate %235, %254 in 0 : vector<8x32xf32>, vector<8x32xf32> -> vector<16x32xf32>
    %256 = arith.truncf %255 : vector<16x32xf32> to vector<16x32xbf16>
    %c392 = arith.constant 392 : index
    %c0_87 = arith.constant 0 : index
    %257 = vector.load %arg3[%c392, %c0_87] : memref<1327x128xbf16, #tpu.memory_space<vmem>>, vector<32x32xbf16>
    %cst_88 = arith.constant dense<0.000000e+00> : vector<16x32xf32>
    %258 = tpu.matmul %256, %257, %cst_88 {dimension_numbers = #tpu.dot_dimension_numbers<[1], [0], [0], [1], [0, 0, 1, 1], [], []>} : vector<16x32xbf16>, vector<32x32xbf16>, vector<16x32xf32> -> vector<16x32xf32>
    %c26 = arith.constant 26 : index
    %c0_89 = arith.constant 0 : index
    %259 = vector.load %arg4[%c26, %c0_89] : memref<117x128xf32, #tpu.memory_space<vmem>>, vector<1x32xf32>
    %260 = vector.broadcast %259 : vector<1x32xf32> to vector<16x32xf32>
    %261 = arith.addf %258, %260 : vector<16x32xf32>
    %262 = arith.addf %194, %261 : vector<16x32xf32>
    %c27 = arith.constant 27 : index
    %c0_90 = arith.constant 0 : index
    %263 = vector.load %arg4[%c27, %c0_90] : memref<117x128xf32, #tpu.memory_space<vmem>>, vector<1x32xf32>
    %c28 = arith.constant 28 : index
    %c0_91 = arith.constant 0 : index
    %264 = vector.load %arg4[%c28, %c0_91] : memref<117x128xf32, #tpu.memory_space<vmem>>, vector<1x32xf32>
    %cst_92 = arith.constant dense<0.000000e+00> : vector<16xf32>
    %265 = vector.multi_reduction <add>, %262, %cst_92 [1] : vector<16x32xf32> to vector<16xf32>
    %266 = vector.shape_cast %265 : vector<16xf32> to vector<16x1xf32>
    %cst_93 = arith.constant 3.200000e+01 : f32
    %267 = vector.broadcast %cst_93 : f32 to vector<16x1xf32>
    %268 = arith.divf %266, %267 : vector<16x1xf32>
    %269 = vector.broadcast %268 : vector<16x1xf32> to vector<16x32xf32>
    %270 = arith.subf %262, %269 : vector<16x32xf32>
    %271 = arith.mulf %270, %270 : vector<16x32xf32>
    %cst_94 = arith.constant dense<0.000000e+00> : vector<16xf32>
    %272 = vector.multi_reduction <add>, %271, %cst_94 [1] : vector<16x32xf32> to vector<16xf32>
    %273 = vector.shape_cast %272 : vector<16xf32> to vector<16x1xf32>
    %cst_95 = arith.constant 3.200000e+01 : f32
    %274 = vector.broadcast %cst_95 : f32 to vector<16x1xf32>
    %275 = arith.divf %273, %274 : vector<16x1xf32>
    %276 = vector.broadcast %268 : vector<16x1xf32> to vector<16x32xf32>
    %277 = arith.subf %262, %276 : vector<16x32xf32>
    %cst_96 = arith.constant 9.99999974E-6 : f32
    %278 = vector.broadcast %cst_96 : f32 to vector<16x1xf32>
    %279 = arith.addf %275, %278 : vector<16x1xf32>
    %280 = math.rsqrt %279 : vector<16x1xf32>
    %281 = vector.broadcast %280 : vector<16x1xf32> to vector<16x32xf32>
    %282 = arith.mulf %277, %281 : vector<16x32xf32>
    %283 = vector.broadcast %263 : vector<1x32xf32> to vector<16x32xf32>
    %284 = arith.mulf %282, %283 : vector<16x32xf32>
    %285 = vector.broadcast %264 : vector<1x32xf32> to vector<16x32xf32>
    %286 = arith.addf %284, %285 : vector<16x32xf32>
    %287 = arith.truncf %286 : vector<16x32xf32> to vector<16x32xbf16>
    %c424 = arith.constant 424 : index
    %c0_97 = arith.constant 0 : index
    %288 = vector.load %arg3[%c424, %c0_97] : memref<1327x128xbf16, #tpu.memory_space<vmem>>, vector<32x128xbf16>
    %cst_98 = arith.constant dense<0.000000e+00> : vector<16x128xf32>
    %289 = tpu.matmul %287, %288, %cst_98 {dimension_numbers = #tpu.dot_dimension_numbers<[1], [0], [0], [1], [0, 0, 1, 1], [], []>} : vector<16x32xbf16>, vector<32x128xbf16>, vector<16x128xf32> -> vector<16x128xf32>
    %c29 = arith.constant 29 : index
    %c0_99 = arith.constant 0 : index
    %290 = vector.load %arg4[%c29, %c0_99] : memref<117x128xf32, #tpu.memory_space<vmem>>, vector<1x128xf32>
    %291 = vector.broadcast %290 : vector<1x128xf32> to vector<16x128xf32>
    %292 = arith.addf %289, %291 : vector<16x128xf32>
    %cst_100 = arith.constant 0.000000e+00 : f32
    %293 = vector.broadcast %cst_100 : f32 to vector<16x128xf32>
    %294 = arith.maximumf %292, %293 : vector<16x128xf32>
    %295 = arith.truncf %294 : vector<16x128xf32> to vector<16x128xbf16>
    %c456 = arith.constant 456 : index
    %c0_101 = arith.constant 0 : index
    %296 = vector.load %arg3[%c456, %c0_101] : memref<1327x128xbf16, #tpu.memory_space<vmem>>, vector<128x32xbf16>
    %cst_102 = arith.constant dense<0.000000e+00> : vector<16x32xf32>
    %297 = tpu.matmul %295, %296, %cst_102 {dimension_numbers = #tpu.dot_dimension_numbers<[1], [0], [0], [1], [0, 0, 1, 1], [], []>} : vector<16x128xbf16>, vector<128x32xbf16>, vector<16x32xf32> -> vector<16x32xf32>
    %c30 = arith.constant 30 : index
    %c0_103 = arith.constant 0 : index
    %298 = vector.load %arg4[%c30, %c0_103] : memref<117x128xf32, #tpu.memory_space<vmem>>, vector<1x32xf32>
    %299 = vector.broadcast %298 : vector<1x32xf32> to vector<16x32xf32>
    %300 = arith.addf %297, %299 : vector<16x32xf32>
    %301 = arith.addf %286, %300 : vector<16x32xf32>
    %c31 = arith.constant 31 : index
    %c0_104 = arith.constant 0 : index
    %302 = vector.load %arg4[%c31, %c0_104] : memref<117x128xf32, #tpu.memory_space<vmem>>, vector<1x32xf32>
    %c32 = arith.constant 32 : index
    %c0_105 = arith.constant 0 : index
    %303 = vector.load %arg4[%c32, %c0_105] : memref<117x128xf32, #tpu.memory_space<vmem>>, vector<1x32xf32>
    %cst_106 = arith.constant dense<0.000000e+00> : vector<16xf32>
    %304 = vector.multi_reduction <add>, %301, %cst_106 [1] : vector<16x32xf32> to vector<16xf32>
    %305 = vector.shape_cast %304 : vector<16xf32> to vector<16x1xf32>
    %cst_107 = arith.constant 3.200000e+01 : f32
    %306 = vector.broadcast %cst_107 : f32 to vector<16x1xf32>
    %307 = arith.divf %305, %306 : vector<16x1xf32>
    %308 = vector.broadcast %307 : vector<16x1xf32> to vector<16x32xf32>
    %309 = arith.subf %301, %308 : vector<16x32xf32>
    %310 = arith.mulf %309, %309 : vector<16x32xf32>
    %cst_108 = arith.constant dense<0.000000e+00> : vector<16xf32>
    %311 = vector.multi_reduction <add>, %310, %cst_108 [1] : vector<16x32xf32> to vector<16xf32>
    %312 = vector.shape_cast %311 : vector<16xf32> to vector<16x1xf32>
    %cst_109 = arith.constant 3.200000e+01 : f32
    %313 = vector.broadcast %cst_109 : f32 to vector<16x1xf32>
    %314 = arith.divf %312, %313 : vector<16x1xf32>
    %315 = vector.broadcast %307 : vector<16x1xf32> to vector<16x32xf32>
    %316 = arith.subf %301, %315 : vector<16x32xf32>
    %cst_110 = arith.constant 9.99999974E-6 : f32
    %317 = vector.broadcast %cst_110 : f32 to vector<16x1xf32>
    %318 = arith.addf %314, %317 : vector<16x1xf32>
    %319 = math.rsqrt %318 : vector<16x1xf32>
    %320 = vector.broadcast %319 : vector<16x1xf32> to vector<16x32xf32>
    %321 = arith.mulf %316, %320 : vector<16x32xf32>
    %322 = vector.broadcast %302 : vector<1x32xf32> to vector<16x32xf32>
    %323 = arith.mulf %321, %322 : vector<16x32xf32>
    %324 = vector.broadcast %303 : vector<1x32xf32> to vector<16x32xf32>
    %325 = arith.addf %323, %324 : vector<16x32xf32>
    %c0_111 = arith.constant 0 : index
    %c0_112 = arith.constant 0 : index
    %326 = vector.load %arg2[%c0_111, %c0_112] : memref<1x16xi32, #tpu.memory_space<vmem>>, vector<1x16xi32>
    %327 = tpu.iota {dimensions = array<i32: 0>} : vector<32x16xi32>
    %328 = tpu.iota {dimensions = array<i32: 1>} : vector<32x16xi32>
    %329 = arith.sitofp %328 : vector<32x16xi32> to vector<32x16xf32>
    %330 = vector.broadcast %326 : vector<1x16xi32> to vector<32x16xi32>
    %331 = arith.cmpi eq, %327, %330 : vector<32x16xi32>
    %cst_113 = arith.constant -1.000000e+00 : f32
    %332 = vector.broadcast %cst_113 : f32 to vector<32x16xf32>
    %333 = arith.select %331, %329, %332 : vector<32x16xi1>, vector<32x16xf32>
    %cst_114 = arith.constant dense<0xFF800000> : vector<32xf32>
    %334 = vector.multi_reduction <maximumf>, %333, %cst_114 [1] : vector<32x16xf32> to vector<32xf32>
    %335 = vector.shape_cast %334 : vector<32xf32> to vector<32x1xf32>
    %336 = vector.broadcast %335 : vector<32x1xf32> to vector<32x16xf32>
    %337 = arith.cmpf oeq, %333, %336 : vector<32x16xf32>
    %338 = arith.andi %331, %337 : vector<32x16xi1>
    %339 = arith.extui %338 : vector<32x16xi1> to vector<32x16xi32>
    %340 = arith.sitofp %339 : vector<32x16xi32> to vector<32x16xf32>
    %cst_115 = arith.constant dense<0.000000e+00> : vector<32x32xf32>
    %341 = tpu.matmul %340, %325, %cst_115 {dimension_numbers = #tpu.dot_dimension_numbers<[1], [0], [0], [1], [0, 0, 1, 1], [], []>} : vector<32x16xf32>, vector<16x32xf32>, vector<32x32xf32> -> vector<32x32xf32>
    %cst_116 = arith.constant 0.000000e+00 : f32
    %342 = vector.broadcast %cst_116 : f32 to vector<32x1xf32>
    %343 = arith.cmpf oge, %335, %342 : vector<32x1xf32>
    %344 = vector.shape_cast %343 : vector<32x1xi1> to vector<32x1xi1>
    %345 = vector.broadcast %344 : vector<32x1xi1> to vector<32x32xi1>
    %346 = arith.select %345, %341, %53 : vector<32x32xi1>, vector<32x32xf32>
    %347 = arith.truncf %346 : vector<32x32xf32> to vector<32x32xbf16>
    %c1160 = arith.constant 1160 : index
    %c0_117 = arith.constant 0 : index
    %348 = vector.load %arg3[%c1160, %c0_117] : memref<1327x128xbf16, #tpu.memory_space<vmem>>, vector<32x32xbf16>
    %cst_118 = arith.constant dense<0.000000e+00> : vector<32x32xf32>
    %349 = tpu.matmul %347, %348, %cst_118 {dimension_numbers = #tpu.dot_dimension_numbers<[1], [0], [0], [1], [0, 0, 1, 1], [], []>} : vector<32x32xbf16>, vector<32x32xbf16>, vector<32x32xf32> -> vector<32x32xf32>
    %c47 = arith.constant 47 : index
    %c0_119 = arith.constant 0 : index
    %350 = vector.load %arg4[%c47, %c0_119] : memref<117x128xf32, #tpu.memory_space<vmem>>, vector<1x32xf32>
    %351 = vector.broadcast %350 : vector<1x32xf32> to vector<32x32xf32>
    %352 = arith.addf %349, %351 : vector<32x32xf32>
    %c34 = arith.constant 34 : index
    %c0_120 = arith.constant 0 : index
    %353 = vector.load %arg4[%c34, %c0_120] : memref<117x128xf32, #tpu.memory_space<vmem>>, vector<1x32xf32>
    %c35 = arith.constant 35 : index
    %c0_121 = arith.constant 0 : index
    %354 = vector.load %arg4[%c35, %c0_121] : memref<117x128xf32, #tpu.memory_space<vmem>>, vector<1x32xf32>
    %cst_122 = arith.constant dense<0.000000e+00> : vector<32xf32>
    %355 = vector.multi_reduction <add>, %352, %cst_122 [1] : vector<32x32xf32> to vector<32xf32>
    %356 = vector.shape_cast %355 : vector<32xf32> to vector<32x1xf32>
    %cst_123 = arith.constant 3.200000e+01 : f32
    %357 = vector.broadcast %cst_123 : f32 to vector<32x1xf32>
    %358 = arith.divf %356, %357 : vector<32x1xf32>
    %359 = vector.broadcast %358 : vector<32x1xf32> to vector<32x32xf32>
    %360 = arith.subf %352, %359 : vector<32x32xf32>
    %361 = arith.mulf %360, %360 : vector<32x32xf32>
    %cst_124 = arith.constant dense<0.000000e+00> : vector<32xf32>
    %362 = vector.multi_reduction <add>, %361, %cst_124 [1] : vector<32x32xf32> to vector<32xf32>
    %363 = vector.shape_cast %362 : vector<32xf32> to vector<32x1xf32>
    %cst_125 = arith.constant 3.200000e+01 : f32
    %364 = vector.broadcast %cst_125 : f32 to vector<32x1xf32>
    %365 = arith.divf %363, %364 : vector<32x1xf32>
    %366 = vector.broadcast %358 : vector<32x1xf32> to vector<32x32xf32>
    %367 = arith.subf %352, %366 : vector<32x32xf32>
    %cst_126 = arith.constant 9.99999974E-6 : f32
    %368 = vector.broadcast %cst_126 : f32 to vector<32x1xf32>
    %369 = arith.addf %365, %368 : vector<32x1xf32>
    %370 = math.rsqrt %369 : vector<32x1xf32>
    %371 = vector.broadcast %370 : vector<32x1xf32> to vector<32x32xf32>
    %372 = arith.mulf %367, %371 : vector<32x32xf32>
    %373 = vector.broadcast %353 : vector<1x32xf32> to vector<32x32xf32>
    %374 = arith.mulf %372, %373 : vector<32x32xf32>
    %375 = vector.broadcast %354 : vector<1x32xf32> to vector<32x32xf32>
    %376 = arith.addf %374, %375 : vector<32x32xf32>
    %377 = arith.truncf %376 : vector<32x32xf32> to vector<32x32xbf16>
    %c584 = arith.constant 584 : index
    %c0_127 = arith.constant 0 : index
    %378 = vector.load %arg3[%c584, %c0_127] : memref<1327x128xbf16, #tpu.memory_space<vmem>>, vector<32x32xbf16>
    %cst_128 = arith.constant dense<0.000000e+00> : vector<32x32xf32>
    %379 = tpu.matmul %377, %378, %cst_128 {dimension_numbers = #tpu.dot_dimension_numbers<[1], [0], [0], [1], [0, 0, 1, 1], [], []>} : vector<32x32xbf16>, vector<32x32xbf16>, vector<32x32xf32> -> vector<32x32xf32>
    %cst_129 = arith.constant 0.000000e+00 : f32
    %380 = vector.broadcast %cst_129 : f32 to vector<32x32xf32>
    %381 = arith.maximumf %379, %380 : vector<32x32xf32>
    %c616 = arith.constant 616 : index
    %c0_130 = arith.constant 0 : index
    %382 = vector.load %arg3[%c616, %c0_130] : memref<1327x128xbf16, #tpu.memory_space<vmem>>, vector<32x32xbf16>
    %cst_131 = arith.constant dense<0.000000e+00> : vector<32x32xf32>
    %383 = tpu.matmul %377, %382, %cst_131 {dimension_numbers = #tpu.dot_dimension_numbers<[1], [0], [0], [1], [0, 0, 1, 1], [], []>} : vector<32x32xbf16>, vector<32x32xbf16>, vector<32x32xf32> -> vector<32x32xf32>
    %cst_132 = arith.constant 0.000000e+00 : f32
    %384 = vector.broadcast %cst_132 : f32 to vector<32x32xf32>
    %385 = arith.maximumf %383, %384 : vector<32x32xf32>
    %c648 = arith.constant 648 : index
    %c0_133 = arith.constant 0 : index
    %386 = vector.load %arg3[%c648, %c0_133] : memref<1327x128xbf16, #tpu.memory_space<vmem>>, vector<32x32xbf16>
    %cst_134 = arith.constant dense<0.000000e+00> : vector<32x32xf32>
    %387 = tpu.matmul %377, %386, %cst_134 {dimension_numbers = #tpu.dot_dimension_numbers<[1], [0], [0], [1], [0, 0, 1, 1], [], []>} : vector<32x32xbf16>, vector<32x32xbf16>, vector<32x32xf32> -> vector<32x32xf32>
    %388 = vector.shape_cast %381 : vector<32x32xf32> to vector<2x16x32xf32>
    %389 = vector.shape_cast %385 : vector<32x32xf32> to vector<2x16x32xf32>
    %390 = vector.shape_cast %387 : vector<32x32xf32> to vector<2x16x32xf32>
    %391 = tpu.transpose %389, [0, 2, 1] : vector<2x16x32xf32> -> vector<2x32x16xf32>
    "tpu.trace_start"() <{level = 10 : i32, message = "bdl,ble->bde"}> : () -> ()
    %cst_135 = arith.constant dense<0.000000e+00> : vector<2x32x32xf32>
    %392 = tpu.matmul %391, %390, %cst_135 {dimension_numbers = #tpu.dot_dimension_numbers<[2], [1], [1], [2], [0, 0, 0, 1, 1, 2], [0], [0]>} : vector<2x32x16xf32>, vector<2x16x32xf32>, vector<2x32x32xf32> -> vector<2x32x32xf32>
    "tpu.trace_stop"() : () -> ()
    %393 = vector.shape_cast %2 : vector<32x32xf32> to vector<1x32x32xf32>
    %394 = vector.broadcast %393 : vector<1x32x32xf32> to vector<2x32x32xf32>
    %395 = arith.mulf %392, %394 : vector<2x32x32xf32>
    "tpu.trace_start"() <{level = 10 : i32, message = "bld,bde->ble"}> : () -> ()
    %cst_136 = arith.constant dense<0.000000e+00> : vector<2x16x32xf32>
    %396 = tpu.matmul %388, %395, %cst_136 {dimension_numbers = #tpu.dot_dimension_numbers<[2], [1], [1], [2], [0, 0, 0, 1, 1, 2], [0], [0]>} : vector<2x16x32xf32>, vector<2x32x32xf32>, vector<2x16x32xf32> -> vector<2x16x32xf32>
    "tpu.trace_stop"() : () -> ()
    %397 = vector.shape_cast %396 : vector<2x16x32xf32> to vector<32x32xf32>
    %cst_137 = arith.constant dense<0.000000e+00> : vector<2x32xf32>
    %398 = vector.multi_reduction <add>, %389, %cst_137 [1] : vector<2x16x32xf32> to vector<2x32xf32>
    %399 = vector.shape_cast %398 : vector<2x32xf32> to vector<2x1x32xf32>
    %400 = vector.broadcast %399 : vector<2x1x32xf32> to vector<2x16x32xf32>
    %401 = arith.mulf %388, %400 : vector<2x16x32xf32>
    %402 = vector.shape_cast %401 : vector<2x16x32xf32> to vector<32x32xf32>
    %cst_138 = arith.constant dense<0.000000e+00> : vector<32x4xf32>
    %403 = tpu.matmul %402, %0, %cst_138 {dimension_numbers = #tpu.dot_dimension_numbers<[1], [0], [0], [1], [0, 0, 1, 1], [], []>} : vector<32x32xf32>, vector<32x4xf32>, vector<32x4xf32> -> vector<32x4xf32>
    %cst_139 = arith.constant dense<0.000000e+00> : vector<32x32xf32>
    %404 = tpu.matmul %403, %1, %cst_139 {dimension_numbers = #tpu.dot_dimension_numbers<[1], [0], [0], [1], [0, 0, 1, 1], [], []>} : vector<32x4xf32>, vector<4x32xf32>, vector<32x32xf32> -> vector<32x32xf32>
    %cst_140 = arith.constant 9.99999997E-7 : f32
    %405 = vector.broadcast %cst_140 : f32 to vector<32x32xf32>
    %406 = arith.addf %404, %405 : vector<32x32xf32>
    %407 = tpu.reciprocal %406 {approx = true} : vector<32x32xf32> -> vector<32x32xf32>
    %408 = arith.mulf %397, %407 : vector<32x32xf32>
    %409 = arith.truncf %408 : vector<32x32xf32> to vector<32x32xbf16>
    %c680 = arith.constant 680 : index
    %c0_141 = arith.constant 0 : index
    %410 = vector.load %arg3[%c680, %c0_141] : memref<1327x128xbf16, #tpu.memory_space<vmem>>, vector<32x32xbf16>
    %cst_142 = arith.constant dense<0.000000e+00> : vector<32x32xf32>
    %411 = tpu.matmul %409, %410, %cst_142 {dimension_numbers = #tpu.dot_dimension_numbers<[1], [0], [0], [1], [0, 0, 1, 1], [], []>} : vector<32x32xbf16>, vector<32x32xbf16>, vector<32x32xf32> -> vector<32x32xf32>
    %c33 = arith.constant 33 : index
    %c0_143 = arith.constant 0 : index
    %412 = vector.load %arg4[%c33, %c0_143] : memref<117x128xf32, #tpu.memory_space<vmem>>, vector<1x32xf32>
    %413 = vector.broadcast %412 : vector<1x32xf32> to vector<32x32xf32>
    %414 = arith.addf %411, %413 : vector<32x32xf32>
    %415 = arith.addf %352, %414 : vector<32x32xf32>
    %c36 = arith.constant 36 : index
    %c0_144 = arith.constant 0 : index
    %416 = vector.load %arg4[%c36, %c0_144] : memref<117x128xf32, #tpu.memory_space<vmem>>, vector<1x32xf32>
    %c37 = arith.constant 37 : index
    %c0_145 = arith.constant 0 : index
    %417 = vector.load %arg4[%c37, %c0_145] : memref<117x128xf32, #tpu.memory_space<vmem>>, vector<1x32xf32>
    %cst_146 = arith.constant dense<0.000000e+00> : vector<32xf32>
    %418 = vector.multi_reduction <add>, %415, %cst_146 [1] : vector<32x32xf32> to vector<32xf32>
    %419 = vector.shape_cast %418 : vector<32xf32> to vector<32x1xf32>
    %cst_147 = arith.constant 3.200000e+01 : f32
    %420 = vector.broadcast %cst_147 : f32 to vector<32x1xf32>
    %421 = arith.divf %419, %420 : vector<32x1xf32>
    %422 = vector.broadcast %421 : vector<32x1xf32> to vector<32x32xf32>
    %423 = arith.subf %415, %422 : vector<32x32xf32>
    %424 = arith.mulf %423, %423 : vector<32x32xf32>
    %cst_148 = arith.constant dense<0.000000e+00> : vector<32xf32>
    %425 = vector.multi_reduction <add>, %424, %cst_148 [1] : vector<32x32xf32> to vector<32xf32>
    %426 = vector.shape_cast %425 : vector<32xf32> to vector<32x1xf32>
    %cst_149 = arith.constant 3.200000e+01 : f32
    %427 = vector.broadcast %cst_149 : f32 to vector<32x1xf32>
    %428 = arith.divf %426, %427 : vector<32x1xf32>
    %429 = vector.broadcast %421 : vector<32x1xf32> to vector<32x32xf32>
    %430 = arith.subf %415, %429 : vector<32x32xf32>
    %cst_150 = arith.constant 9.99999974E-6 : f32
    %431 = vector.broadcast %cst_150 : f32 to vector<32x1xf32>
    %432 = arith.addf %428, %431 : vector<32x1xf32>
    %433 = math.rsqrt %432 : vector<32x1xf32>
    %434 = vector.broadcast %433 : vector<32x1xf32> to vector<32x32xf32>
    %435 = arith.mulf %430, %434 : vector<32x32xf32>
    %436 = vector.broadcast %416 : vector<1x32xf32> to vector<32x32xf32>
    %437 = arith.mulf %435, %436 : vector<32x32xf32>
    %438 = vector.broadcast %417 : vector<1x32xf32> to vector<32x32xf32>
    %439 = arith.addf %437, %438 : vector<32x32xf32>
    %440 = arith.truncf %439 : vector<32x32xf32> to vector<32x32xbf16>
    %c712 = arith.constant 712 : index
    %c0_151 = arith.constant 0 : index
    %441 = vector.load %arg3[%c712, %c0_151] : memref<1327x128xbf16, #tpu.memory_space<vmem>>, vector<32x128xbf16>
    %cst_152 = arith.constant dense<0.000000e+00> : vector<32x128xf32>
    %442 = tpu.matmul %440, %441, %cst_152 {dimension_numbers = #tpu.dot_dimension_numbers<[1], [0], [0], [1], [0, 0, 1, 1], [], []>} : vector<32x32xbf16>, vector<32x128xbf16>, vector<32x128xf32> -> vector<32x128xf32>
    %c38 = arith.constant 38 : index
    %c0_153 = arith.constant 0 : index
    %443 = vector.load %arg4[%c38, %c0_153] : memref<117x128xf32, #tpu.memory_space<vmem>>, vector<1x128xf32>
    %444 = vector.broadcast %443 : vector<1x128xf32> to vector<32x128xf32>
    %445 = arith.addf %442, %444 : vector<32x128xf32>
    %cst_154 = arith.constant 5.000000e-01 : f32
    %446 = vector.broadcast %cst_154 : f32 to vector<32x128xf32>
    %447 = arith.mulf %446, %445 : vector<32x128xf32>
    %cst_155 = arith.constant 4.471500e-02 : f32
    %448 = vector.broadcast %cst_155 : f32 to vector<32x128xf32>
    %449 = arith.mulf %448, %445 : vector<32x128xf32>
    %450 = arith.mulf %449, %445 : vector<32x128xf32>
    %451 = arith.mulf %450, %445 : vector<32x128xf32>
    %452 = arith.addf %445, %451 : vector<32x128xf32>
    %cst_156 = arith.constant 0.797884583 : f32
    %453 = vector.broadcast %cst_156 : f32 to vector<32x128xf32>
    %454 = arith.mulf %453, %452 : vector<32x128xf32>
    %455 = math.tanh %454 : vector<32x128xf32>
    %cst_157 = arith.constant 1.000000e+00 : f32
    %456 = vector.broadcast %cst_157 : f32 to vector<32x128xf32>
    %457 = arith.addf %456, %455 : vector<32x128xf32>
    %458 = arith.mulf %447, %457 : vector<32x128xf32>
    %459 = arith.truncf %458 : vector<32x128xf32> to vector<32x128xbf16>
    %c744 = arith.constant 744 : index
    %c0_158 = arith.constant 0 : index
    %460 = vector.load %arg3[%c744, %c0_158] : memref<1327x128xbf16, #tpu.memory_space<vmem>>, vector<128x32xbf16>
    %cst_159 = arith.constant dense<0.000000e+00> : vector<32x32xf32>
    %461 = tpu.matmul %459, %460, %cst_159 {dimension_numbers = #tpu.dot_dimension_numbers<[1], [0], [0], [1], [0, 0, 1, 1], [], []>} : vector<32x128xbf16>, vector<128x32xbf16>, vector<32x32xf32> -> vector<32x32xf32>
    %c39 = arith.constant 39 : index
    %c0_160 = arith.constant 0 : index
    %462 = vector.load %arg4[%c39, %c0_160] : memref<117x128xf32, #tpu.memory_space<vmem>>, vector<1x32xf32>
    %463 = vector.broadcast %462 : vector<1x32xf32> to vector<32x32xf32>
    %464 = arith.addf %461, %463 : vector<32x32xf32>
    %465 = arith.addf %415, %464 : vector<32x32xf32>
    %c41 = arith.constant 41 : index
    %c0_161 = arith.constant 0 : index
    %466 = vector.load %arg4[%c41, %c0_161] : memref<117x128xf32, #tpu.memory_space<vmem>>, vector<1x32xf32>
    %c42 = arith.constant 42 : index
    %c0_162 = arith.constant 0 : index
    %467 = vector.load %arg4[%c42, %c0_162] : memref<117x128xf32, #tpu.memory_space<vmem>>, vector<1x32xf32>
    %cst_163 = arith.constant dense<0.000000e+00> : vector<32xf32>
    %468 = vector.multi_reduction <add>, %465, %cst_163 [1] : vector<32x32xf32> to vector<32xf32>
    %469 = vector.shape_cast %468 : vector<32xf32> to vector<32x1xf32>
    %cst_164 = arith.constant 3.200000e+01 : f32
    %470 = vector.broadcast %cst_164 : f32 to vector<32x1xf32>
    %471 = arith.divf %469, %470 : vector<32x1xf32>
    %472 = vector.broadcast %471 : vector<32x1xf32> to vector<32x32xf32>
    %473 = arith.subf %465, %472 : vector<32x32xf32>
    %474 = arith.mulf %473, %473 : vector<32x32xf32>
    %cst_165 = arith.constant dense<0.000000e+00> : vector<32xf32>
    %475 = vector.multi_reduction <add>, %474, %cst_165 [1] : vector<32x32xf32> to vector<32xf32>
    %476 = vector.shape_cast %475 : vector<32xf32> to vector<32x1xf32>
    %cst_166 = arith.constant 3.200000e+01 : f32
    %477 = vector.broadcast %cst_166 : f32 to vector<32x1xf32>
    %478 = arith.divf %476, %477 : vector<32x1xf32>
    %479 = vector.broadcast %471 : vector<32x1xf32> to vector<32x32xf32>
    %480 = arith.subf %465, %479 : vector<32x32xf32>
    %cst_167 = arith.constant 9.99999974E-6 : f32
    %481 = vector.broadcast %cst_167 : f32 to vector<32x1xf32>
    %482 = arith.addf %478, %481 : vector<32x1xf32>
    %483 = math.rsqrt %482 : vector<32x1xf32>
    %484 = vector.broadcast %483 : vector<32x1xf32> to vector<32x32xf32>
    %485 = arith.mulf %480, %484 : vector<32x32xf32>
    %486 = vector.broadcast %466 : vector<1x32xf32> to vector<32x32xf32>
    %487 = arith.mulf %485, %486 : vector<32x32xf32>
    %488 = vector.broadcast %467 : vector<1x32xf32> to vector<32x32xf32>
    %489 = arith.addf %487, %488 : vector<32x32xf32>
    %490 = arith.truncf %489 : vector<32x32xf32> to vector<32x32xbf16>
    %c872 = arith.constant 872 : index
    %c0_168 = arith.constant 0 : index
    %491 = vector.load %arg3[%c872, %c0_168] : memref<1327x128xbf16, #tpu.memory_space<vmem>>, vector<32x32xbf16>
    %cst_169 = arith.constant dense<0.000000e+00> : vector<32x32xf32>
    %492 = tpu.matmul %490, %491, %cst_169 {dimension_numbers = #tpu.dot_dimension_numbers<[1], [0], [0], [1], [0, 0, 1, 1], [], []>} : vector<32x32xbf16>, vector<32x32xbf16>, vector<32x32xf32> -> vector<32x32xf32>
    %cst_170 = arith.constant 0.000000e+00 : f32
    %493 = vector.broadcast %cst_170 : f32 to vector<32x32xf32>
    %494 = arith.maximumf %492, %493 : vector<32x32xf32>
    %c904 = arith.constant 904 : index
    %c0_171 = arith.constant 0 : index
    %495 = vector.load %arg3[%c904, %c0_171] : memref<1327x128xbf16, #tpu.memory_space<vmem>>, vector<32x32xbf16>
    %cst_172 = arith.constant dense<0.000000e+00> : vector<32x32xf32>
    %496 = tpu.matmul %490, %495, %cst_172 {dimension_numbers = #tpu.dot_dimension_numbers<[1], [0], [0], [1], [0, 0, 1, 1], [], []>} : vector<32x32xbf16>, vector<32x32xbf16>, vector<32x32xf32> -> vector<32x32xf32>
    %cst_173 = arith.constant 0.000000e+00 : f32
    %497 = vector.broadcast %cst_173 : f32 to vector<32x32xf32>
    %498 = arith.maximumf %496, %497 : vector<32x32xf32>
    %c936 = arith.constant 936 : index
    %c0_174 = arith.constant 0 : index
    %499 = vector.load %arg3[%c936, %c0_174] : memref<1327x128xbf16, #tpu.memory_space<vmem>>, vector<32x32xbf16>
    %cst_175 = arith.constant dense<0.000000e+00> : vector<32x32xf32>
    %500 = tpu.matmul %490, %499, %cst_175 {dimension_numbers = #tpu.dot_dimension_numbers<[1], [0], [0], [1], [0, 0, 1, 1], [], []>} : vector<32x32xbf16>, vector<32x32xbf16>, vector<32x32xf32> -> vector<32x32xf32>
    %501 = vector.shape_cast %494 : vector<32x32xf32> to vector<2x16x32xf32>
    %502 = vector.shape_cast %498 : vector<32x32xf32> to vector<2x16x32xf32>
    %503 = vector.shape_cast %500 : vector<32x32xf32> to vector<2x16x32xf32>
    %504 = tpu.transpose %502, [0, 2, 1] : vector<2x16x32xf32> -> vector<2x32x16xf32>
    "tpu.trace_start"() <{level = 10 : i32, message = "bdl,ble->bde"}> : () -> ()
    %cst_176 = arith.constant dense<0.000000e+00> : vector<2x32x32xf32>
    %505 = tpu.matmul %504, %503, %cst_176 {dimension_numbers = #tpu.dot_dimension_numbers<[2], [1], [1], [2], [0, 0, 0, 1, 1, 2], [0], [0]>} : vector<2x32x16xf32>, vector<2x16x32xf32>, vector<2x32x32xf32> -> vector<2x32x32xf32>
    "tpu.trace_stop"() : () -> ()
    %506 = vector.shape_cast %2 : vector<32x32xf32> to vector<1x32x32xf32>
    %507 = vector.broadcast %506 : vector<1x32x32xf32> to vector<2x32x32xf32>
    %508 = arith.mulf %505, %507 : vector<2x32x32xf32>
    "tpu.trace_start"() <{level = 10 : i32, message = "bld,bde->ble"}> : () -> ()
    %cst_177 = arith.constant dense<0.000000e+00> : vector<2x16x32xf32>
    %509 = tpu.matmul %501, %508, %cst_177 {dimension_numbers = #tpu.dot_dimension_numbers<[2], [1], [1], [2], [0, 0, 0, 1, 1, 2], [0], [0]>} : vector<2x16x32xf32>, vector<2x32x32xf32>, vector<2x16x32xf32> -> vector<2x16x32xf32>
    "tpu.trace_stop"() : () -> ()
    %510 = vector.shape_cast %509 : vector<2x16x32xf32> to vector<32x32xf32>
    %cst_178 = arith.constant dense<0.000000e+00> : vector<2x32xf32>
    %511 = vector.multi_reduction <add>, %502, %cst_178 [1] : vector<2x16x32xf32> to vector<2x32xf32>
    %512 = vector.shape_cast %511 : vector<2x32xf32> to vector<2x1x32xf32>
    %513 = vector.broadcast %512 : vector<2x1x32xf32> to vector<2x16x32xf32>
    %514 = arith.mulf %501, %513 : vector<2x16x32xf32>
    %515 = vector.shape_cast %514 : vector<2x16x32xf32> to vector<32x32xf32>
    %cst_179 = arith.constant dense<0.000000e+00> : vector<32x4xf32>
    %516 = tpu.matmul %515, %0, %cst_179 {dimension_numbers = #tpu.dot_dimension_numbers<[1], [0], [0], [1], [0, 0, 1, 1], [], []>} : vector<32x32xf32>, vector<32x4xf32>, vector<32x4xf32> -> vector<32x4xf32>
    %cst_180 = arith.constant dense<0.000000e+00> : vector<32x32xf32>
    %517 = tpu.matmul %516, %1, %cst_180 {dimension_numbers = #tpu.dot_dimension_numbers<[1], [0], [0], [1], [0, 0, 1, 1], [], []>} : vector<32x4xf32>, vector<4x32xf32>, vector<32x32xf32> -> vector<32x32xf32>
    %cst_181 = arith.constant 9.99999997E-7 : f32
    %518 = vector.broadcast %cst_181 : f32 to vector<32x32xf32>
    %519 = arith.addf %517, %518 : vector<32x32xf32>
    %520 = tpu.reciprocal %519 {approx = true} : vector<32x32xf32> -> vector<32x32xf32>
    %521 = arith.mulf %510, %520 : vector<32x32xf32>
    %522 = arith.truncf %521 : vector<32x32xf32> to vector<32x32xbf16>
    %c968 = arith.constant 968 : index
    %c0_182 = arith.constant 0 : index
    %523 = vector.load %arg3[%c968, %c0_182] : memref<1327x128xbf16, #tpu.memory_space<vmem>>, vector<32x32xbf16>
    %cst_183 = arith.constant dense<0.000000e+00> : vector<32x32xf32>
    %524 = tpu.matmul %522, %523, %cst_183 {dimension_numbers = #tpu.dot_dimension_numbers<[1], [0], [0], [1], [0, 0, 1, 1], [], []>} : vector<32x32xbf16>, vector<32x32xbf16>, vector<32x32xf32> -> vector<32x32xf32>
    %c40_184 = arith.constant 40 : index
    %c0_185 = arith.constant 0 : index
    %525 = vector.load %arg4[%c40_184, %c0_185] : memref<117x128xf32, #tpu.memory_space<vmem>>, vector<1x32xf32>
    %526 = vector.broadcast %525 : vector<1x32xf32> to vector<32x32xf32>
    %527 = arith.addf %524, %526 : vector<32x32xf32>
    %528 = arith.addf %465, %527 : vector<32x32xf32>
    %c43 = arith.constant 43 : index
    %c0_186 = arith.constant 0 : index
    %529 = vector.load %arg4[%c43, %c0_186] : memref<117x128xf32, #tpu.memory_space<vmem>>, vector<1x32xf32>
    %c44 = arith.constant 44 : index
    %c0_187 = arith.constant 0 : index
    %530 = vector.load %arg4[%c44, %c0_187] : memref<117x128xf32, #tpu.memory_space<vmem>>, vector<1x32xf32>
    %cst_188 = arith.constant dense<0.000000e+00> : vector<32xf32>
    %531 = vector.multi_reduction <add>, %528, %cst_188 [1] : vector<32x32xf32> to vector<32xf32>
    %532 = vector.shape_cast %531 : vector<32xf32> to vector<32x1xf32>
    %cst_189 = arith.constant 3.200000e+01 : f32
    %533 = vector.broadcast %cst_189 : f32 to vector<32x1xf32>
    %534 = arith.divf %532, %533 : vector<32x1xf32>
    %535 = vector.broadcast %534 : vector<32x1xf32> to vector<32x32xf32>
    %536 = arith.subf %528, %535 : vector<32x32xf32>
    %537 = arith.mulf %536, %536 : vector<32x32xf32>
    %cst_190 = arith.constant dense<0.000000e+00> : vector<32xf32>
    %538 = vector.multi_reduction <add>, %537, %cst_190 [1] : vector<32x32xf32> to vector<32xf32>
    %539 = vector.shape_cast %538 : vector<32xf32> to vector<32x1xf32>
    %cst_191 = arith.constant 3.200000e+01 : f32
    %540 = vector.broadcast %cst_191 : f32 to vector<32x1xf32>
    %541 = arith.divf %539, %540 : vector<32x1xf32>
    %542 = vector.broadcast %534 : vector<32x1xf32> to vector<32x32xf32>
    %543 = arith.subf %528, %542 : vector<32x32xf32>
    %cst_192 = arith.constant 9.99999974E-6 : f32
    %544 = vector.broadcast %cst_192 : f32 to vector<32x1xf32>
    %545 = arith.addf %541, %544 : vector<32x1xf32>
    %546 = math.rsqrt %545 : vector<32x1xf32>
    %547 = vector.broadcast %546 : vector<32x1xf32> to vector<32x32xf32>
    %548 = arith.mulf %543, %547 : vector<32x32xf32>
    %549 = vector.broadcast %529 : vector<1x32xf32> to vector<32x32xf32>
    %550 = arith.mulf %548, %549 : vector<32x32xf32>
    %551 = vector.broadcast %530 : vector<1x32xf32> to vector<32x32xf32>
    %552 = arith.addf %550, %551 : vector<32x32xf32>
    %553 = arith.truncf %552 : vector<32x32xf32> to vector<32x32xbf16>
    %c1000 = arith.constant 1000 : index
    %c0_193 = arith.constant 0 : index
    %554 = vector.load %arg3[%c1000, %c0_193] : memref<1327x128xbf16, #tpu.memory_space<vmem>>, vector<32x128xbf16>
    %cst_194 = arith.constant dense<0.000000e+00> : vector<32x128xf32>
    %555 = tpu.matmul %553, %554, %cst_194 {dimension_numbers = #tpu.dot_dimension_numbers<[1], [0], [0], [1], [0, 0, 1, 1], [], []>} : vector<32x32xbf16>, vector<32x128xbf16>, vector<32x128xf32> -> vector<32x128xf32>
    %c45 = arith.constant 45 : index
    %c0_195 = arith.constant 0 : index
    %556 = vector.load %arg4[%c45, %c0_195] : memref<117x128xf32, #tpu.memory_space<vmem>>, vector<1x128xf32>
    %557 = vector.broadcast %556 : vector<1x128xf32> to vector<32x128xf32>
    %558 = arith.addf %555, %557 : vector<32x128xf32>
    %cst_196 = arith.constant 5.000000e-01 : f32
    %559 = vector.broadcast %cst_196 : f32 to vector<32x128xf32>
    %560 = arith.mulf %559, %558 : vector<32x128xf32>
    %cst_197 = arith.constant 4.471500e-02 : f32
    %561 = vector.broadcast %cst_197 : f32 to vector<32x128xf32>
    %562 = arith.mulf %561, %558 : vector<32x128xf32>
    %563 = arith.mulf %562, %558 : vector<32x128xf32>
    %564 = arith.mulf %563, %558 : vector<32x128xf32>
    %565 = arith.addf %558, %564 : vector<32x128xf32>
    %cst_198 = arith.constant 0.797884583 : f32
    %566 = vector.broadcast %cst_198 : f32 to vector<32x128xf32>
    %567 = arith.mulf %566, %565 : vector<32x128xf32>
    %568 = math.tanh %567 : vector<32x128xf32>
    %cst_199 = arith.constant 1.000000e+00 : f32
    %569 = vector.broadcast %cst_199 : f32 to vector<32x128xf32>
    %570 = arith.addf %569, %568 : vector<32x128xf32>
    %571 = arith.mulf %560, %570 : vector<32x128xf32>
    %572 = arith.truncf %571 : vector<32x128xf32> to vector<32x128xbf16>
    %c1032 = arith.constant 1032 : index
    %c0_200 = arith.constant 0 : index
    %573 = vector.load %arg3[%c1032, %c0_200] : memref<1327x128xbf16, #tpu.memory_space<vmem>>, vector<128x32xbf16>
    %cst_201 = arith.constant dense<0.000000e+00> : vector<32x32xf32>
    %574 = tpu.matmul %572, %573, %cst_201 {dimension_numbers = #tpu.dot_dimension_numbers<[1], [0], [0], [1], [0, 0, 1, 1], [], []>} : vector<32x128xbf16>, vector<128x32xbf16>, vector<32x32xf32> -> vector<32x32xf32>
    %c46 = arith.constant 46 : index
    %c0_202 = arith.constant 0 : index
    %575 = vector.load %arg4[%c46, %c0_202] : memref<117x128xf32, #tpu.memory_space<vmem>>, vector<1x32xf32>
    %576 = vector.broadcast %575 : vector<1x32xf32> to vector<32x32xf32>
    %577 = arith.addf %574, %576 : vector<32x32xf32>
    %578 = arith.addf %528, %577 : vector<32x32xf32>
    %579 = arith.truncf %578 : vector<32x32xf32> to vector<32x32xbf16>
    %c1192 = arith.constant 1192 : index
    %c0_203 = arith.constant 0 : index
    %580 = vector.load %arg3[%c1192, %c0_203] : memref<1327x128xbf16, #tpu.memory_space<vmem>>, vector<32x10xbf16>
    %cst_204 = arith.constant dense<0.000000e+00> : vector<32x10xf32>
    %581 = tpu.matmul %579, %580, %cst_204 {dimension_numbers = #tpu.dot_dimension_numbers<[1], [0], [0], [1], [0, 0, 1, 1], [], []>} : vector<32x32xbf16>, vector<32x10xbf16>, vector<32x10xf32> -> vector<32x10xf32>
    %c48 = arith.constant 48 : index
    %c0_205 = arith.constant 0 : index
    %582 = vector.load %arg4[%c48, %c0_205] : memref<117x128xf32, #tpu.memory_space<vmem>>, vector<1x10xf32>
    %583 = vector.broadcast %582 : vector<1x10xf32> to vector<32x10xf32>
    %584 = arith.addf %581, %583 : vector<32x10xf32>
    %c0_206 = arith.constant 0 : index
    %c0_207 = arith.constant 0 : index
    %585 = vector.load %arg5[%c0_206, %c0_207] : memref<32x10xf32, #tpu.memory_space<vmem>>, vector<32x10xf32>
    tpu.vector_store %arg5[%c0_206, %c0_207], %584 {strides = array<i32>} : memref<32x10xf32, #tpu.memory_space<vmem>>, vector<32x10xf32>,
    return
  }
}

</mosaic_0001>

<bundles_post_ra>
// kernel: sc_model_forward.1
= control target key start
LH: loop header
LB: loop body
LE: loop exit
PB: predicated region body
PF: predicated region fallthrough
CT: control target
= control target key end

     0   :  { %10 = vsyncpa [#allocation3], 0  ;;  %s8063_s0 = inlined_call_operand.vmem [shape: f32[48,1], index: 0, kind: input, shape index: {}]   ;;  %s8064_s1 = inlined_call_operand.vmem [shape: s32[16,1], index: 1, kind: input, shape index: {}]   ;;  %s8065_s2 = inlined_call_operand.vmem [shape: s32[1,16], index: 2, kind: input, shape index: {}]   ;;  %s8066_s3 = inlined_call_operand.hbm [shape: bf16[1327,128], index: 3, kind: input, shape index: {}]   ;;  %s8067_s4 = inlined_call_operand.hbm [shape: f32[117,128], index: 4, kind: input, shape index: {}]   ;;  %s8068_s5 = inlined_call_operand.vmem [shape: f32[32,10], index: 5, kind: output, shape index: {}]  }
   0x1   :  { %11 = vsyncpa [#allocation5], 0  ;;  %s7231_s18 = smov [#allocation2]  }
   0x2   :  { %s23_s19 = sshll.u32 %s7231_s18, 4  ;;  %s24_s19 = int_to_ptr.vmem [resolvable:$true] %s23_s19 }
   0x3   :  { %s7195_s20 = scalar_lea.vmem %s24_s19, 10624  ;;  %p7200_p1 = scmp.lt.s32.totalorder %s24_s19, %s24_s19 }
   0x4   :  { %p7196_p0 = scmp.ne.s32.totalorder %s24_s19, %s7195_s20  ;;  %p7201_p2 = scmp.lt.s32.totalorder %s7195_s20, %s7195_s20 }
   0x6   :  { %p7202_p3 = por %p7201_p2, %p7200_p1 }
   0x8   :  { %p7203_p4 = pnand %p7202_p3, %p7196_p0 }
   0xa   :  { %7206 = shalt.err (!%p7203_p4)
}
   0xb   :  { %s7232_s21 = smov 64   ;;  %s7233_s22 = smov 4  }
   0xc   :  { %29 = dma.hbm_to_vmem [thread:$0]  %s8066_s3, 10624, %s24_s19, [#allocation3], %s7232_s21, %s7232_s21, %s7233_s22  }
   0xd   :  { %s7234_s25 = smov [#allocation4]  }
   0xe   :  { %s35_s26 = sshll.u32 %s7234_s25, 4  ;;  %s36_s26 = int_to_ptr.vmem [resolvable:$true] %s35_s26 }
   0xf   :  { %s7215_s27 = scalar_lea.vmem %s36_s26, 1920  ;;  %p7220_p6 = scmp.lt.s32.totalorder %s36_s26, %s36_s26 }
  0x10   :  { %p7216_p5 = scmp.ne.s32.totalorder %s36_s26, %s7215_s27  ;;  %p7221_p7 = scmp.lt.s32.totalorder %s7215_s27, %s7215_s27 }
  0x12   :  { %p7222_p8 = por %p7221_p7, %p7220_p6 }
  0x14   :  { %p7223_p9 = pnand %p7222_p8, %p7216_p5 }
  0x16   :  { %7226 = shalt.err (!%p7223_p9)
}
  0x17   :  { %s7235_s28 = smov 128   ;;  %s7236_s29 = smov 8  }
  0x18   :  { %41 = dma.hbm_to_vmem [thread:$0]  %s8067_s4, 1920, %s36_s26, [#allocation5], %s7235_s28, %s7235_s28, %s7236_s29  }
  0x19   :  { %7227 = dma.done.wait [#allocation3], 10624  }
  0x1a   :  { %7228 = vsyncadd [#allocation3], 4294956672 }
  0x1b   :  { %7229 = dma.done.wait [#allocation5], 1920  }
  0x1c   :  { %7230 = vsyncadd [#allocation5], 4294965376  ;;  %v7237_v0 = vmov 0   ;;  %v60_v1 = vld [vmem:[%s8063_s0 + $0x10] sm:$0xff]  ;;  %v7285_v2 = vld [vmem:[%s8063_s0] sm:$0xff]  ;;  %vm140_vm0 = vcmask 64512  }
  0x1d   :  { %6964 = vset.pattern.permute.xlu1 %v7237_v0  ;;  %6963 = vset.pattern.permute.xlu0 %v7237_v0  ;;  %v61_v3 = vld [vmem:[%s8063_s0 + $0x18] sm:$0xff]  ;;  %v7294_v4 = vld [vmem:[%s8063_s0 + $0x8] sm:$0xff]  ;;  %v62_v6 = vld [vmem:[%s8063_s0 + $0x20] sm:$0xff]  ;;  %vm400_vm7 = vcmp.eq.f32.partialorder %v7285_v2, 102.0  ;;  %vm339_vm8 = vcmask 1043456   ;;  %vm7239_vm10 = vmmov 0  }
  0x1e   :  { %77 = vperm.xlu1 %6964, %v60_v1   ;;  %67 = vperm.xlu0 %6963, %v7285_v2   ;;  %v63_v5 = vld [vmem:[%s8063_s0 + $0x28] sm:$0xff]  ;;  %v134_v7 = vld [vmem:[#allocation4 + $0x2] sm:$0xff]  ;;  %v5870_v8 = vld [vmem:[#allocation4] ss:$0 sm:$0xff]  ;;  %vm401_vm9 = vcmp.eq.f32.partialorder %v7294_v4, 102.0  ;;  %vm448_vm11 = vcmp.eq.f32.partialorder %v7294_v4, 101.0 }
  0x1f   :  { %6386 = vmatprep.subr.mxu0 %v134_v7  ;;  %6951 = vmatprep.subr.mxu1 %v134_v7  ;;  %v5871_v9 = vld [vmem:[#allocation4 + $0x1] ss:$0 sm:$0xff]  ;;  %v5872_v40 = vld [vmem:[#allocation4 + $0xa] ss:$0 sm:$0xff]  ;;  %vm447_vm12 = vcmp.eq.f32.partialorder %v7285_v2, 101.0  ;;  %vm567_vm13 = vcmask 1042432  }
  0x20   :  { %6387 = vmatpush3.msra.mxu0 %v134_v7  ;;  %6952 = vmatpush3.msra.mxu1 %v134_v7 }
  0x22   :  { %82 = vperm.xlu1 %6964, %v61_v3   ;;  %72 = vperm.xlu0 %6963, %v7294_v4   ;;  %v7240_v4 = vmov 65535  }
  0x26   :  { %92 = vperm.xlu1 %6964, %v63_v5   ;;  %87 = vperm.xlu0 %6963, %v62_v6  }
  0x99   :  { %v78_v10 = vpop.permute.xlu1 %77  ;;  %v68_v11 = vpop.permute.xlu0 %67 }
  0x9a   :  { %v101_v12 = vmul.f32 %v5870_v8, %v78_v10  ;;  %v99_v13 = vmul.f32 %v5870_v8, %v68_v11 }
  0x9c   :  { %v112_v14 = vadd.f32 %v5871_v9, %v101_v12  ;;  %v110_v15 = vadd.f32 %v5871_v9, %v99_v13 }
  0x9d   :  { %v83_v16 = vpop.permute.xlu1 %82  ;;  %v73_v17 = vpop.permute.xlu0 %72 }
  0x9e   :  { %v102_v18 = vmul.f32 %v5870_v8, %v83_v16  ;;  %v100_v19 = vmul.f32 %v5870_v8, %v73_v17  ;;  %vm116_vm1 = vcmp.ge.f32.partialorder %v110_v15, 0.0  ;;  %v122_v20 = vmul.f32 0.1, %v110_v15 }
  0x9f   :  { %vm118_vm2 = vcmp.ge.f32.partialorder %v112_v14, 0.0  ;;  %v124_v21 = vmul.f32 0.1, %v112_v14 }
  0xa0   :  { %v113_v22 = vadd.f32 %v5871_v9, %v102_v18  ;;  %v111_v23 = vadd.f32 %v5871_v9, %v100_v19  ;;  %v128_v24 = vsel %vm116_vm1, %v110_v15, %v122_v20 }
  0xa1   :  { %v93_v25 = vpop.permute.xlu1 %92  ;;  %6388 = vmatprep.mubr.msk.f32.mxu0 %vm140_vm0, %v128_v24  ;;  %v88_v26 = vpop.permute.xlu0 %87  ;;  %v130_v27 = vsel %vm118_vm2, %v112_v14, %v124_v21 }
  0xa2   :  { %v125_v28 = vmul.f32 0.1, %v113_v22  ;;  %v104_v29 = vmul.f32 %v5870_v8, %v93_v25  ;;  %v103_v30 = vmul.f32 %v5870_v8, %v88_v26  ;;  %6391 = vmatprep.mubr.msk.f32.mxu1 %vm140_vm0, %v130_v27  ;;  %vm117_vm3 = vcmp.ge.f32.partialorder %v111_v23, 0.0 }
  0xa3   :  { %v123_v31 = vmul.f32 0.1, %v111_v23  ;;  %vm119_vm4 = vcmp.ge.f32.partialorder %v113_v22, 0.0 }
  0xa4   :  { %v115_v32 = vadd.f32 %v5871_v9, %v104_v29  ;;  %v114_v33 = vadd.f32 %v5871_v9, %v103_v30  ;;  %v131_v34 = vsel %vm119_vm4, %v113_v22, %v125_v28 }
  0xa5   :  { %v129_v35 = vsel %vm117_vm3, %v111_v23, %v123_v31  ;;  %6392 = vmatmul.mubr.msk.f32.vlgmr.msra.gmra.mxu1 %vm140_vm0, %v131_v34 }
  0xa6   :  { %v127_v36 = vmul.f32 0.1, %v115_v32  ;;  %v126_v37 = vmul.f32 0.1, %v114_v33  ;;  %6389 = vmatmul.mubr.msk.f32.vlgmr.msra.gmra.mxu0 %vm140_vm0, %v129_v35  ;;  %vm120_vm5 = vcmp.ge.f32.partialorder %v114_v33, 0.0  ;;  %vm121_vm6 = vcmp.ge.f32.partialorder %v115_v32, 0.0 }
  0xa8   :  { %v132_v38 = vsel %vm120_vm5, %v114_v33, %v126_v37  ;;  %v133_v39 = vsel %vm121_vm6, %v115_v32, %v127_v36  ;;  %v329_v36 = vld [vmem:[#allocation2] sm:$0xf]  ;;  %vm638_vm5 = vcmask 261120   ;;  %vm966_vm6 = vcmask 31744  }
  0xa9   :  { %6394 = vmatprep.mubr.msk.f32.mxu1 %vm140_vm0, %v132_v38  ;;  %v341_v37 = vsel %vm339_vm8, %v329_v36, 0 }
  0xaa   :  { %6395 = vmatmul.mubr.msk.f32.gmra.mxu1 %vm140_vm0, %v133_v39 }
 0x165   :  { %v6393_v41 = vpop.f32.mrf.mxu1 }
 0x166   :  { %v6390_v42 = vpop.f32.mrf.mxu0  ;;  %v241_v53 = vadd.f32 %v6393_v41, %v5872_v40  ;;  %v455_v41 = vsel %vm448_vm11, 1, %v7237_v0 }
 0x167   :  { %v231_v43 = vadd.f32 %v6390_v42, %v5872_v40  ;;  %v235_v44 = vpop.f32.mrf.mxu1  ;;  %v454_v42 = vsel %vm447_vm12, 1, %v7237_v0 }
 0x168   :  { %v225_v45 = vpop.f32.mrf.mxu0  ;;  %v236_v47 = vadd.f32 %v5872_v40, %v235_v44  ;;  %v257_v61 = vadd.f32 %v241_v53, %v131_v34  ;;  %v7238_v34 = vmov 0.0  }
 0x169   :  { %v226_v46 = vadd.f32 %v5872_v40, %v225_v45  ;;  %v255_v48 = vadd.f32 %v231_v43, %v129_v35  ;;  %6397 = vmatprep.subr.bf16.mxu0 %v7238_v34  ;;  %6429 = vmatprep.subr.bf16.mxu1 %v7238_v34  ;;  %v494_v35 = vld [vmem:[%s8064_s1] sm:$0xff] }
 0x16a   :  { %v6396_v49 = vpop.f32.mrf.mxu1  ;;  %v256_v56 = vadd.f32 %v236_v47, %v130_v27  ;;  %v269_v62 = vsel %vm140_vm0, %v257_v61, -inf  ;;  %6398 = vmatpush3.bf16.msra.mxu0 %v341_v37  ;;  %6399 = vmatprep.mubr.msk.bf16.mxu0 %vm7239_vm10, %v7238_v34  ;;  %v568_v47 = vsel %vm567_vm13, 4294967295, %v7240_v4 }
 0x16b   :  { %v263_v50 = vsel %vm140_vm0, %v255_v48, -inf  ;;  %v254_v51 = vadd.f32 %v226_v46, %v128_v24  ;;  %v251_v58 = vadd.f32 %v6396_v49, %v5872_v40  ;;  %6411 = vmatprep.subr.bf16.mxu0 %v7238_v34  ;;  %6433 = vmatprep.mubr.msk.bf16.mxu1 %vm7239_vm10, %v7238_v34  ;;  %v6965_v49 = vld [vmem:[#allocation2 + $0x294] ss:$0 sps:$4 sm:$0xff]  }
 0x16c   :  { %264 = vmax.xlane.f32.xlu1 %v263_v50  ;;  %v245_v52 = vpop.f32.mrf.mxu1  ;;  %v266_v59 = vsel %vm140_vm0, %v256_v56, -inf }
 0x16d   :  { %v246_v54 = vadd.f32 %v5872_v40, %v245_v52  ;;  %v260_v55 = vsel %vm140_vm0, %v254_v51, -inf  ;;  %v259_v63 = vadd.f32 %v251_v58, %v133_v39  ;;  %v408_v39 = vsel %vm401_vm9, 1, %v7237_v0  ;;  %v495_v40 = vld [vmem:[%s8064_s1 + $0x8] sm:$0xff] }
 0x16e   :  { %261 = vmax.xlane.f32.xlu0 %v260_v55  ;;  %vm2915_vm9 = vcmask 130048  }
 0x16f   :  { %v258_v57 = vadd.f32 %v246_v54, %v132_v38  ;;  %v275_v1 = vsel %vm140_vm0, %v259_v63, -inf  ;;  %v407_v38 = vsel %vm400_vm7, 1, %v7237_v0 }
 0x171   :  { %v272_v60 = vsel %vm140_vm0, %v258_v57, -inf }
 0x172   :  { %267 = vmax.xlane.f32.xlu0 %v266_v59  ;;  %273 = vmax.xlane.f32.xlu1 %v272_v60 }
 0x176   :  { %270 = vmax.xlane.f32.xlu0 %v269_v62  ;;  %v6967_v62 = vld [vmem:[#allocation2 + $0x284] sm:$0xff]  }
 0x17a   :  { %276 = vmax.xlane.f32.xlu0 %v275_v1 }
 0x1f5   :  { %v265_v3 = vpop.xlane.xlu1 %264 }
 0x1f6   :  { %v279_v5 = vsub.f32 %v255_v48, %v265_v3 }
 0x1f7   :  { %v262_v6 = vpop.xlane.xlu0 %261 }
 0x1f8   :  { %v286_v7 = vmul.f32 1.442695, %v279_v5  ;;  %v278_v8 = vsub.f32 %v254_v51, %v262_v6  ;;  %v569_v51 = vsel %vm339_vm8, %v568_v47, 0  ;;  %v6968_v5 = vld [vmem:[#allocation2 + $0x27c] sm:$0xff]  }
 0x1f9   :  { %v571_v55 = vand.u32 %v6965_v49, %v569_v51 }
 0x1fa   :  { %7048 = vpow2.f32 %v286_v7  ;;  %v284_v9 = vmul.f32 1.442695, %v278_v8  ;;  %v6969_v8 = vld [vmem:[#allocation2 + $0x274] sm:$0xff]  }
 0x1fb   :  { %v268_v10 = vpop.xlane.xlu0 %267  ;;  %v274_v11 = vpop.xlane.xlu1 %273 }
 0x1fc   :  { %7050 = vpow2.f32 %v284_v9  ;;  %v280_v12 = vsub.f32 %v256_v56, %v268_v10  ;;  %v282_v13 = vsub.f32 %v258_v57, %v274_v11  ;;  %v6966_v57 = vld [vmem:[#allocation2 + $0x28c] sm:$0xff]   ;;  %v496_v9 = vlaneseq }
 0x1fe   :  { %v288_v14 = vmul.f32 1.442695, %v280_v12  ;;  %v292_v15 = vmul.f32 1.442695, %v282_v13  ;;  %v6970_v12 = vld [vmem:[#allocation2 + $0x26c] sm:$0xff]   ;;  %v7378_v13 = vand.u32 127, %v496_v9 }
 0x1ff   :  { %v271_v16 = vpop.xlane.xlu0 %270 }
 0x200   :  { %7052 = vpow2.f32 %v288_v14  ;;  %v281_v17 = vsub.f32 %v257_v61, %v271_v16 }
 0x201   :  { %7054 = vpow2.f32 %v292_v15  ;;  %v6971_v15 = vld [vmem:[#allocation2 + $0x264] sm:$0xff]  }
 0x202   :  { %v290_v18 = vmul.f32 1.442695, %v281_v17 }
 0x203   :  { %v277_v19 = vpop.xlane.xlu0 %276 }
 0x204   :  { %7056 = vpow2.f32 %v290_v18  ;;  %v283_v20 = vsub.f32 %v259_v63, %v277_v19  ;;  %v6972_v19 = vld [vmem:[#allocation2 + $0xc] sm:$0xff]  }
 0x205   :  { %6430 = vmatpush3.bf16.msra.mxu1 %v6972_v19 }
 0x206   :  { %v294_v21 = vmul.f32 1.442695, %v283_v20  ;;  %v6973_v20 = vld [vmem:[#allocation2 + $0x2c] sm:$0xff]   ;;  %6431 = vmatprep.subr.bf16.mxu1 %v7238_v34 }
 0x207   :  { %v7315_v22 = vpop.eup %7048 }
 0x208   :  { %7058 = vpow2.f32 %v294_v21  ;;  %v299_v23 = vsel %vm140_vm0, %v7315_v22, 0.0  ;;  %v6974_v21 = vld [vmem:[#allocation2 + $0x4] sm:$0xff]  }
 0x209   :  { %v7051_v24 = vpop.eup %7050  ;;  %300 = vadd.xlane.f32.xlu0 %v299_v23  ;;  %6432 = vmatpush3.bf16.msra.mxu1 %v6974_v21 }
 0x20a   :  { %v296_v25 = vsel %vm140_vm0, %v7051_v24, 0.0  ;;  %6437 = vmatprep.subr.bf16.mxu1 %v7238_v34 }
 0x20b   :  { %297 = vadd.xlane.f32.xlu1 %v296_v25 }
 0x20d   :  { %v7320_v26 = vpop.eup %7052 }
 0x20e   :  { %v302_v27 = vsel %vm140_vm0, %v7320_v26, 0.0  ;;  %v7324_v28 = vpop.eup %7054 }
 0x20f   :  { %303 = vadd.xlane.f32.xlu1 %v302_v27  ;;  %v308_v30 = vsel %vm140_vm0, %v7324_v28, 0.0 }
 0x211   :  { %v7326_v29 = vpop.eup %7056 }
 0x212   :  { %v305_v31 = vsel %vm140_vm0, %v7326_v29, 0.0 }
 0x213   :  { %309 = vadd.xlane.f32.xlu1 %v308_v30  ;;  %306 = vadd.xlane.f32.xlu0 %v305_v31 }
 0x215   :  { %v7332_v32 = vpop.eup %7058 }
 0x216   :  { %v311_v33 = vsel %vm140_vm0, %v7332_v32, 0.0 }
 0x217   :  { %312 = vadd.xlane.f32.xlu0 %v311_v33 }
 0x224   :  { %499 = vperm.xlu1 %6964, %v494_v35  }
 0x228   :  { %414 = vperm.xlu1 %6964, %v407_v38   ;;  %v5882_v38 = vld [vmem:[#allocation4 + $0xb] ss:$0 sm:$0xff] }
 0x22c   :  { %417 = vperm.xlu1 %6964, %v408_v39  }
 0x22d   :  { %502 = vperm.xlu0 %6963, %v495_v40  }
 0x230   :  { %464 = vperm.xlu1 %6964, %v455_v41  }
 0x231   :  { %461 = vperm.xlu0 %6963, %v454_v42  }
 0x292   :  { %v301_v43 = vpop.xlane.xlu0 %300 }
 0x293   :  { %7060 = vrcp.f32 %v301_v43 }
 0x294   :  { %v298_v44 = vpop.xlane.xlu1 %297 }
 0x295   :  { %7062 = vrcp.f32 %v298_v44  ;;  %v5883_v44 = vld [vmem:[#allocation4 + $0xc] ss:$0 sm:$0xff] }
 0x298   :  { %v304_v45 = vpop.xlane.xlu1 %303 }
 0x299   :  { %7064 = vrcp.f32 %v304_v45 }
 0x29c   :  { %v307_v46 = vpop.xlane.xlu0 %306  ;;  %v310_v50 = vpop.xlane.xlu1 %309 }
 0x29d   :  { %7066 = vrcp.f32 %v307_v46 }
 0x2a0   :  { %v7061_v2 = vpop.eup %7060  ;;  %v313_v48 = vpop.xlane.xlu0 %312 }
 0x2a1   :  { %7068 = vrcp.f32 %v313_v48  ;;  %v317_v54 = vmul.f32 %v7061_v2, %v7315_v22  ;;  %v500_v14 = vpop.permute.xlu1 %499  ;;  %v6975_v22 = vld [vmem:[#allocation2 + $0x24] sm:$0xff]  }
 0x2a2   :  { %v7063_v52 = vpop.eup %7062  ;;  %7070 = vrcp.f32 %v310_v50  ;;  %vm504_vm15 = vcmp.eq.s32.totalorder %v7378_v13, %v500_v14  ;;  %v6976_v50 = vld [vmem:[#allocation2 + $0x1c] sm:$0xff]  }
 0x2a3   :  { %v315_v53 = vmul.f32 %v7063_v52, %v7051_v24  ;;  %v5884_v17 = vsel %vm504_vm15, 1.0, %v7238_v34  ;;  %v6977_v52 = vld [vmem:[#allocation2 + $0x14] sm:$0xff]  }
 0x2a5   :  { %v326_v56 = vpack.c.bf16 %v317_v54, %v315_v53  ;;  %v415_v31 = vpop.permute.xlu1 %414  ;;  %v7418_v53 = vld [vmem:[#allocation4 + $0x49] sm:$0xff]  ;;  %v7423_v54 = vld [vmem:[#allocation4 + $0x41] sm:$0xff] }
 0x2a6   :  { %v7065_v58 = vpop.eup %7064  ;;  %vm431_vm1 = vcmp.eq.s32.totalorder %v415_v31, 1 }
 0x2a7   :  { %6400 = vmatmul.mubr.msk.bf16.vlgmr.msra.gmra.mxu0 %vm140_vm0, %v326_v56  ;;  %v319_v60 = vmul.f32 %v7065_v58, %v7320_v26  ;;  %v7435_v56 = vld [vmem:[#allocation4 + $0x31] sm:$0xff] }
 0x2a8   :  { %6412 = vmatpush3.bf16.msra.mxu0 %v571_v55  ;;  %6403 = vmatprep.mubr.msk.bf16.mxu0 %vm7239_vm10, %v7238_v34  ;;  %v503_v11 = vpop.permute.xlu0 %502  ;;  %v7429_v55 = vld [vmem:[#allocation4 + $0x39] sm:$0xff] }
 0x2a9   :  { %6413 = vmatprep.subr.bf16.mxu0 %v7238_v34  ;;  %vm505_vm14 = vcmp.eq.s32.totalorder %v7378_v13, %v503_v11  ;;  %v418_v36 = vpop.permute.xlu1 %417 }
 0x2aa   :  { %v7067_v59 = vpop.eup %7066  ;;  %v5885_v16 = vsel %vm505_vm14, 1.0, %v7238_v34  ;;  %vm432_vm2 = vcmp.eq.s32.totalorder %v418_v36, 1 }
 0x2ab   :  { %v321_v61 = vmul.f32 %v7067_v59, %v7326_v29  ;;  %v510_v18 = vpack.c.bf16 %v5885_v16, %v5884_v17 }
 0x2ac   :  { %6414 = vmatpush3.bf16.msra.mxu0 %v6966_v57  ;;  %v462_v39 = vpop.permute.xlu0 %461 }
 0x2ad   :  { %6415 = vmatprep.subr.bf16.mxu0 %v7238_v34  ;;  %v327_v63 = vpack.c.bf16 %v321_v61, %v319_v60  ;;  %v465_v40 = vpop.permute.xlu1 %464  ;;  %vm478_vm3 = vcmp.eq.s32.totalorder %v462_v39, 1  ;;  %v5894_v61 = vld [vmem:[#allocation4 + $0xd] ss:$0 sm:$0xff] }
 0x2ae   :  { %v7069_v1 = vpop.eup %7068  ;;  %vm479_vm4 = vcmp.eq.s32.totalorder %v465_v40, 1 }
 0x2af   :  { %6404 = vmatmul.mubr.msk.bf16.gmra.mxu0 %vm140_vm0, %v327_v63  ;;  %v7071_v3 = vpop.eup %7070  ;;  %v325_v6 = vmul.f32 %v7069_v1, %v7332_v32 }
 0x2b0   :  { %6416 = vmatpush3.bf16.msra.mxu0 %v6967_v62  ;;  %6407 = vmatprep.mubr.msk.bf16.mxu0 %vm7239_vm10, %v7238_v34  ;;  %v323_v7 = vmul.f32 %v7071_v3, %v7324_v28 }
 0x2b1   :  { %6417 = vmatprep.subr.bf16.mxu0 %v7238_v34 }
 0x2b2   :  { %v328_v10 = vpack.c.bf16 %v325_v6, %v323_v7  ;;  %v5898_v6 = vld [vmem:[#allocation4 + $0xe] ss:$0 sm:$0xff] }
 0x2b4   :  { %6418 = vmatpush3.bf16.msra.mxu0 %v6968_v5 }
 0x2b5   :  { %6419 = vmatprep.subr.bf16.mxu0 %v7238_v34 }
 0x2b7   :  { %6408 = vmatmul.mubr.msk.bf16.gmra.mxu0 %vm140_vm0, %v328_v10  ;;  %vm563_vm0 = vcmask 842752  }
 0x2b8   :  { %6420 = vmatpush3.bf16.msra.mxu0 %v6969_v8  ;;  %6425 = vmatprep.mubr.msk.bf16.mxu0 %vm7239_vm10, %v7238_v34 }
 0x2b9   :  { %6421 = vmatprep.subr.bf16.mxu0 %v7238_v34 }
 0x2bc   :  { %6422 = vmatpush3.bf16.msra.mxu0 %v6970_v12 }
 0x2bd   :  { %6423 = vmatprep.subr.bf16.mxu0 %v7238_v34 }
 0x2c0   :  { %6424 = vmatpush3.bf16.msra.mxu0 %v6971_v15 }
 0x2c1   :  { %6445 = vmatprep.subr.bf16.mxu0 %v7238_v34 }
 0x2c3   :  { %6426 = vmatmul.mubr.msk.bf16.vlgmr.msra.gmra.mxu0 %vm563_vm0, %v510_v18 }
 0x2c4   :  { %6449 = vmatprep.mubr.msk.bf16.mxu0 %vm7239_vm10, %v7238_v34  ;;  %6446 = vmatpush3.bf16.msra.mxu0 %v6973_v20  ;;  %v7452_v20 = vld [vmem:[#allocation4 + $0x51] sm:$0xf] }
 0x2c5   :  { %6447 = vmatprep.subr.bf16.mxu0 %v7238_v34 }
 0x2c8   :  { %6448 = vmatpush3.bf16.msra.mxu0 %v6975_v22 }
 0x2c9   :  { %6464 = vmatprep.subr.mxu0 %v7238_v34 }
 0x367   :  { %v377_v23 = vpop.f32.mrf.mxu0 }
 0x368   :  { %v441_v42 = vsel %vm431_vm1, %v5882_v38, %v377_v23 }
 0x369   :  { %v6401_v24 = vpop.f32.mrf.mxu0  ;;  %v488_v46 = vsel %vm478_vm3, %v5883_v44, %v441_v42 }
 0x36b   :  { %v380_v25 = vpop.f32.mrf.mxu0 }
 0x36c   :  { %v442_v43 = vsel %vm432_vm2, %v5882_v38, %v380_v25 }
 0x36d   :  { %v6402_v26 = vpop.f32.mrf.mxu0  ;;  %v489_v4 = vsel %vm479_vm4, %v5883_v44, %v442_v43 }
 0x36f   :  { %v7393_v27 = vpop.f32.mrf.mxu0 }
 0x371   :  { %v6405_v28 = vpop.f32.mrf.mxu0 }
 0x373   :  { %v7395_v29 = vpop.f32.mrf.mxu0 }
 0x375   :  { %v6406_v30 = vpop.f32.mrf.mxu0 }
 0x377   :  { %v7397_v32 = vpop.f32.mrf.mxu0 }
 0x379   :  { %v6409_v33 = vpop.f32.mrf.mxu0 }
 0x37b   :  { %v7399_v35 = vpop.f32.mrf.mxu0 }
 0x37d   :  { %v6410_v37 = vpop.f32.mrf.mxu0 }
 0x383   :  { %v607_v41 = vpop.f32.mrf.mxu0 }
 0x384   :  { %v7401_v2 = vadd.f32 %v607_v41, %v488_v46  ;;  %v5902_v41 = vld [vmem:[#allocation4 + $0xf] ss:$0 sm:$0xff] }
 0x385   :  { %v6427_v45 = vpop.f32.mrf.mxu0 }
 0x387   :  { %v610_v47 = vpop.f32.mrf.mxu0 }
 0x388   :  { %v7403_v48 = vadd.f32 %v610_v47, %v489_v4 }
 0x389   :  { %v6428_v49 = vpop.f32.mrf.mxu0 }
 0x38a   :  { %v616_v51 = vpack.c.bf16 %v7403_v48, %v7401_v2 }
 0x38c   :  { %6434 = vmatmul.mubr.msk.bf16.vlgmr.msra.gmra.mxu1 %vm638_vm5, %v616_v51  ;;  %6450 = vmatmul.mubr.msk.bf16.vlgmr.msra.gmra.mxu0 %vm638_vm5, %v616_v51 }
 0x38d   :  { %6438 = vmatpush3.bf16.msra.mxu1 %v6976_v50  ;;  %6441 = vmatprep.mubr.msk.bf16.mxu1 %vm7239_vm10, %v7238_v34 }
 0x38e   :  { %6439 = vmatprep.subr.bf16.mxu1 %v7238_v34  ;;  %6472 = vmatprep.mubr.msk.f32.mxu0 %vm7239_vm10, %v7238_v34 }
 0x38f   :  { %6465 = vmatpush3.msra.mxu0 %v7418_v53 }
 0x390   :  { %6466 = vmatprep.subr.mxu0 %v7238_v34 }
 0x391   :  { %6440 = vmatpush3.bf16.msra.mxu1 %v6977_v52  ;;  %6467 = vmatpush3.msra.mxu0 %v7423_v54 }
 0x392   :  { %6453 = vmatprep.subr.mxu1 %v7238_v34  ;;  %6468 = vmatprep.subr.mxu0 %v7238_v34 }
 0x393   :  { %6469 = vmatpush3.msra.mxu0 %v7429_v55 }
 0x394   :  { %6442 = vmatmul.mubr.msk.bf16.vlgmr.msra.gmra.mxu1 %vm638_vm5, %v616_v51  ;;  %6470 = vmatprep.subr.mxu0 %v7238_v34 }
 0x395   :  { %6461 = vmatprep.mubr.msk.f32.mxu1 %vm7239_vm10, %v7238_v34  ;;  %6454 = vmatpush3.msra.mxu1 %v7418_v53 }
 0x396   :  { %6455 = vmatprep.subr.mxu1 %v7238_v34  ;;  %6471 = vmatpush3.msra.mxu0 %v7435_v56 }
 0x397   :  { %6456 = vmatpush3.msra.mxu1 %v7423_v54  ;;  %6480 = vmatprep.subr.mxu0 %v7238_v34 }
 0x398   :  { %6457 = vmatprep.subr.mxu1 %v7238_v34 }
 0x399   :  { %6458 = vmatpush3.msra.mxu1 %v7429_v55 }
 0x39a   :  { %6459 = vmatprep.subr.mxu1 %v7238_v34 }
 0x39b   :  { %6460 = vmatpush3.msra.mxu1 %v7435_v56 }
 0x39c   :  { %6475 = vmatprep.subr.mxu1 %v7238_v34 }
 0x44c   :  { %v676_v57 = vpop.f32.mrf.mxu1  ;;  %v7442_v58 = vpop.f32.mrf.mxu0 }
 0x44d   :  { %v677_v8 = vadd.f32 %v5894_v61, %v676_v57  ;;  %v801_v42 = vadd.f32 %v5902_v41, %v7442_v58 }
 0x44e   :  { %v6435_v59 = vpop.f32.mrf.mxu1  ;;  %v6451_v60 = vpop.f32.mrf.mxu0 }
 0x450   :  { %v679_v62 = vpop.f32.mrf.mxu1  ;;  %v7444_v63 = vpop.f32.mrf.mxu0 }
 0x451   :  { %v680_v1 = vadd.f32 %v5894_v61, %v679_v62  ;;  %v804_v43 = vadd.f32 %v5902_v41, %v7444_v63 }
 0x452   :  { %v6436_v3 = vpop.f32.mrf.mxu1  ;;  %v6452_v5 = vpop.f32.mrf.mxu0 }
 0x454   :  { %v738_v7 = vpop.f32.mrf.mxu1 }
 0x455   :  { %v739_v10 = vadd.f32 %v5898_v6, %v738_v7 }
 0x456   :  { %v6443_v11 = vpop.f32.mrf.mxu1 }
 0x457   :  { %v807_v12 = vmul.f32 %v739_v10, %v677_v8  ;;  %v1120_v14 = vmul.f32 %v739_v10, %v680_v1  ;;  %v6978_v10 = vld [vmem:[#allocation2 + $0x3c] sm:$0xff]   ;;  %v6979_v11 = vld [vmem:[#allocation2 + $0x34] sm:$0xff]  }
 0x458   :  { %v741_v15 = vpop.f32.mrf.mxu1 }
 0x459   :  { %v742_v16 = vadd.f32 %v5898_v6, %v741_v15  ;;  %6462 = vmatmul.mubr.msk.f32.vlgmr.msra.gmra.mxu1 %vm638_vm5, %v807_v12 }
 0x45a   :  { %v6444_v17 = vpop.f32.mrf.mxu1  ;;  %6477 = vmatprep.mubr.msk.f32.mxu1 %vm7239_vm10, %v7238_v34  ;;  %6476 = vmatpush3.msk.msra.mxu1 %vm339_vm8, %v7452_v20 }
 0x45b   :  { %v881_v18 = vmul.f32 %v742_v16, %v677_v8  ;;  %v1194_v19 = vmul.f32 %v742_v16, %v680_v1  ;;  %6485 = vmatprep.subr.mxu1 %v7238_v34 }
 0x45d   :  { %6473 = vmatmul.mubr.msk.f32.vlgmr.msra.gmra.mxu0 %vm638_vm5, %v881_v18 }
 0x45e   :  { %6482 = vmatprep.mubr.msk.f32.mxu0 %vm7239_vm10, %v7238_v34  ;;  %6481 = vmatpush3.msk.msra.mxu0 %vm339_vm8, %v7452_v20 }
 0x45f   :  { %6496 = vmatprep.subr.mxu0 %v7238_v34 }
 0x519   :  { %v877_v21 = vpop.f32.mrf.mxu1 }
 0x51b   :  { %v6463_v22 = vpop.f32.mrf.mxu1 }
 0x51c   :  { %v5918_v22 = vld [vmem:[#allocation4 + $0x10] ss:$0 sm:$0xff] }
 0x51d   :  { %v951_v23 = vpop.f32.mrf.mxu0 }
 0x51e   :  { %v955_v24 = vmax.f32 %v877_v21, %v951_v23 }
 0x51f   :  { %v6474_v25 = vpop.f32.mrf.mxu0 }
 0x520   :  { %v956_v26 = vsub.f32 %v877_v21, %v955_v24  ;;  %v959_v28 = vsub.f32 %v951_v23, %v955_v24 }
 0x522   :  { %v957_v30 = vmul.f32 1.442695, %v956_v26  ;;  %v960_v31 = vmul.f32 1.442695, %v959_v28 }
 0x524   :  { %7072 = vpow2.f32 %v957_v30 }
 0x525   :  { %7074 = vpow2.f32 %v960_v31 }
 0x531   :  { %v7073_v33 = vpop.eup %7072 }
 0x532   :  { %v7075_v36 = vpop.eup %7074 }
 0x533   :  { %v962_v37 = vadd.f32 %v7075_v36, %v7073_v33 }
 0x535   :  { %7076 = vrcp.f32 %v962_v37 }
 0x542   :  { %v7077_v38 = vpop.eup %7076 }
 0x543   :  { %v965_v39 = vmul.f32 %v7077_v38, %v7073_v33  ;;  %v1044_v40 = vmul.f32 %v7077_v38, %v7075_v36 }
 0x545   :  { %6478 = vmatmul.mubr.msk.f32.vlgmr.msra.gmra.mxu1 %vm966_vm6, %v965_v39  ;;  %6483 = vmatmul.mubr.msk.f32.vlgmr.msra.gmra.mxu0 %vm966_vm6, %v1044_v40 }
 0x546   :  { %6486 = vmatpush3.msra.mxu1 %v7418_v53  ;;  %6497 = vmatpush3.msra.mxu0 %v7418_v53 }
 0x547   :  { %6487 = vmatprep.subr.mxu1 %v7238_v34  ;;  %6498 = vmatprep.subr.mxu0 %v7238_v34 }
 0x548   :  { %6488 = vmatpush3.msra.mxu1 %v7423_v54  ;;  %6499 = vmatpush3.msra.mxu0 %v7423_v54 }
 0x549   :  { %6489 = vmatprep.subr.mxu1 %v7238_v34  ;;  %6500 = vmatprep.subr.mxu0 %v7238_v34 }
 0x54a   :  { %6490 = vmatpush3.msra.mxu1 %v7429_v55  ;;  %6501 = vmatpush3.msra.mxu0 %v7429_v55 }
 0x54b   :  { %6491 = vmatprep.subr.mxu1 %v7238_v34  ;;  %6502 = vmatprep.subr.mxu0 %v7238_v34 }
 0x54c   :  { %6492 = vmatpush3.msra.mxu1 %v7435_v56  ;;  %6493 = vmatprep.mubr.msk.f32.mxu1 %vm7239_vm10, %v7238_v34 }
 0x54d   :  { %6503 = vmatpush3.msra.mxu0 %v7435_v56  ;;  %6504 = vmatprep.mubr.msk.f32.mxu0 %vm7239_vm10, %v7238_v34 }
 0x54e   :  { %6494 = vmatmul.mubr.msk.f32.vlgmr.msra.gmra.mxu1 %vm638_vm5, %v1120_v14  ;;  %6505 = vmatmul.mubr.msk.f32.vlgmr.msra.gmra.mxu0 %vm638_vm5, %v1194_v19 }
 0x54f   :  { %6507 = vmatprep.subr.mxu1 %v7238_v34  ;;  %6512 = vmatprep.subr.mxu0 %v7238_v34 }
 0x550   :  { %6508 = vmatpush3.msk.msra.mxu1 %vm339_vm8, %v7452_v20  ;;  %6509 = vmatprep.mubr.msk.f32.mxu1 %vm7239_vm10, %v7238_v34 }
 0x551   :  { %6513 = vmatpush3.msk.msra.mxu0 %vm339_vm8, %v7452_v20  ;;  %6514 = vmatprep.mubr.msk.f32.mxu0 %vm7239_vm10, %v7238_v34 }
 0x552   :  { %6517 = vmatprep.subr.bf16.mxu1 %v7238_v34  ;;  %6525 = vmatprep.subr.bf16.mxu0 %v7238_v34 }
 0x605   :  { %v1039_v44 = vpop.f32.mrf.mxu1  ;;  %v1114_v45 = vpop.f32.mrf.mxu0 }
 0x606   :  { %v1043_v46 = vmul.f32 %v1039_v44, %v801_v42  ;;  %v1118_v4 = vmul.f32 %v1114_v45, %v804_v43 }
 0x607   :  { %v6479_v47 = vpop.f32.mrf.mxu1  ;;  %v6484_v49 = vpop.f32.mrf.mxu0 }
 0x608   :  { %v1119_v50 = vadd.f32 %v1118_v4, %v1043_v46  ;;  %v6980_v4 = vld [vmem:[#allocation2 + $0x4c] sm:$0xff]   ;;  %v6983_v49 = vld [vmem:[#allocation2 + $0x84] sm:$0xff]  }
 0x609   :  { %v6982_v47 = vld [vmem:[#allocation2 + $0x8c] sm:$0xff]  }
 0x60e   :  { %v1190_v51 = vpop.f32.mrf.mxu1  ;;  %v1264_v52 = vpop.f32.mrf.mxu0 }
 0x60f   :  { %v1268_v57 = vmax.f32 %v1190_v51, %v1264_v52 }
 0x610   :  { %v6495_v59 = vpop.f32.mrf.mxu1  ;;  %v6506_v60 = vpop.f32.mrf.mxu0 }
 0x611   :  { %v1269_v61 = vsub.f32 %v1190_v51, %v1268_v57  ;;  %v1272_v62 = vsub.f32 %v1264_v52, %v1268_v57  ;;  %v6985_v51 = vld [vmem:[#allocation2 + $0x74] sm:$0xff]   ;;  %v6986_v52 = vld [vmem:[#allocation2 + $0x6c] sm:$0xff]  }
 0x613   :  { %v1270_v1 = vmul.f32 1.442695, %v1269_v61  ;;  %v1273_v3 = vmul.f32 1.442695, %v1272_v62 }
 0x615   :  { %7078 = vpow2.f32 %v1270_v1 }
 0x616   :  { %7080 = vpow2.f32 %v1273_v3 }
 0x622   :  { %v7079_v58 = vpop.eup %7078 }
 0x623   :  { %v7081_v63 = vpop.eup %7080 }
 0x624   :  { %v1275_v5 = vadd.f32 %v7081_v63, %v7079_v58 }
 0x626   :  { %7082 = vrcp.f32 %v1275_v5 }
 0x633   :  { %v7083_v6 = vpop.eup %7082 }
 0x634   :  { %v1278_v7 = vmul.f32 %v7083_v6, %v7079_v58  ;;  %v1353_v8 = vmul.f32 %v7083_v6, %v7081_v63  ;;  %v5922_v63 = vld [vmem:[#allocation4 + $0x11] ss:$0 sm:$0xff] }
 0x636   :  { %6510 = vmatmul.mubr.msk.f32.vlgmr.msra.gmra.mxu1 %vm966_vm6, %v1278_v7  ;;  %6515 = vmatmul.mubr.msk.f32.vlgmr.msra.gmra.mxu0 %vm966_vm6, %v1353_v8  ;;  %v5923_v8 = vld [vmem:[#allocation4 + $0x12] ss:$0 sm:$0xff] }
 0x637   :  { %6521 = vmatprep.mubr.msk.bf16.mxu1 %vm7239_vm10, %v7238_v34  ;;  %6529 = vmatprep.mubr.msk.bf16.mxu0 %vm7239_vm10, %v7238_v34 }
 0x638   :  { %6518 = vmatpush3.bf16.msra.mxu1 %v6978_v10  ;;  %6526 = vmatpush3.bf16.msra.mxu0 %v6980_v4 }
 0x639   :  { %6519 = vmatprep.subr.bf16.mxu1 %v7238_v34  ;;  %6527 = vmatprep.subr.bf16.mxu0 %v7238_v34 }
 0x63c   :  { %6520 = vmatpush3.bf16.msra.mxu1 %v6979_v11 }
 0x63d   :  { %6533 = vmatprep.subr.bf16.mxu1 %v7238_v34 }
 0x6f6   :  { %v1348_v12 = vpop.f32.mrf.mxu1  ;;  %v1423_v14 = vpop.f32.mrf.mxu0 }
 0x6f7   :  { %v1352_v15 = vmul.f32 %v1348_v12, %v801_v42  ;;  %v1427_v16 = vmul.f32 %v1423_v14, %v804_v43 }
 0x6f8   :  { %v6511_v17 = vpop.f32.mrf.mxu1  ;;  %v6516_v18 = vpop.f32.mrf.mxu0 }
 0x6f9   :  { %v1428_v19 = vadd.f32 %v1427_v16, %v1352_v15  ;;  %v6987_v15 = vld [vmem:[#allocation2 + $0x64] sm:$0xff]   ;;  %v6988_v16 = vld [vmem:[#allocation2 + $0x5c] sm:$0xff]   ;;  %v6989_v17 = vld [vmem:[#allocation2 + $0x54] sm:$0xff]  }
 0x6fa   :  { %v5924_v18 = vld [vmem:[#allocation4 + $0x13] ss:$0 sm:$0xff] }
 0x6fb   :  { %v1429_v21 = vpack.c.bf16 %v1428_v19, %v1119_v50  ;;  %v6984_v50 = vld [vmem:[#allocation2 + $0x7c] sm:$0xff]  }
 0x6fd   :  { %6522 = vmatmul.mubr.msk.bf16.vlgmr.msra.gmra.mxu1 %vm638_vm5, %v1429_v21 }
 0x6fe   :  { %6549 = vmatprep.mubr.msk.bf16.mxu1 %vm7239_vm10, %v7238_v34  ;;  %6534 = vmatpush3.bf16.msra.mxu1 %v6982_v47 }
 0x6ff   :  { %6535 = vmatprep.subr.bf16.mxu1 %v7238_v34 }
 0x702   :  { %6536 = vmatpush3.bf16.msra.mxu1 %v6983_v49 }
 0x703   :  { %6537 = vmatprep.subr.bf16.mxu1 %v7238_v34 }
 0x706   :  { %6538 = vmatpush3.bf16.msra.mxu1 %v6984_v50 }
 0x707   :  { %6539 = vmatprep.subr.bf16.mxu1 %v7238_v34 }
 0x70a   :  { %6540 = vmatpush3.bf16.msra.mxu1 %v6985_v51 }
 0x70b   :  { %6541 = vmatprep.subr.bf16.mxu1 %v7238_v34 }
 0x70e   :  { %6542 = vmatpush3.bf16.msra.mxu1 %v6986_v52 }
 0x70f   :  { %6543 = vmatprep.subr.bf16.mxu1 %v7238_v34 }
 0x712   :  { %6544 = vmatpush3.bf16.msra.mxu1 %v6987_v15 }
 0x713   :  { %6545 = vmatprep.subr.bf16.mxu1 %v7238_v34 }
 0x716   :  { %6546 = vmatpush3.bf16.msra.mxu1 %v6988_v16  ;;  %v6992_v16 = vld [vmem:[#allocation2 + $0xac] sm:$0xff]  }
 0x717   :  { %6547 = vmatprep.subr.bf16.mxu1 %v7238_v34 }
 0x71a   :  { %6548 = vmatpush3.bf16.msra.mxu1 %v6989_v17 }
 0x71b   :  { %6588 = vmatprep.subr.mxu1 %v7238_v34 }
 0x7bd   :  { %v1488_v23 = vpop.f32.mrf.mxu1 }
 0x7be   :  { %v1489_v24 = vadd.f32 %v5918_v22, %v1488_v23 }
 0x7bf   :  { %v6523_v25 = vpop.f32.mrf.mxu1 }
 0x7c0   :  { %v1495_v26 = vadd.f32 %v1489_v24, %v7401_v2 }
 0x7c1   :  { %v1491_v28 = vpop.f32.mrf.mxu1 }
 0x7c2   :  { %v1492_v30 = vadd.f32 %v5918_v22, %v1491_v28  ;;  %v1499_v31 = vsel %vm638_vm5, %v1495_v26, 0.0 }
 0x7c3   :  { %1500 = vadd.xlane.f32.xlu0 %v1499_v31  ;;  %v6524_v33 = vpop.f32.mrf.mxu1  ;;  %v5928_v31 = vld [vmem:[#allocation4 + $0x14] ss:$0 sm:$0xff] }
 0x7c4   :  { %v1496_v36 = vadd.f32 %v1492_v30, %v7403_v48  ;;  %v6981_v48 = vld [vmem:[#allocation2 + $0x44] sm:$0xff]  }
 0x7c5   :  { %6528 = vmatpush3.bf16.msra.mxu0 %v6981_v48 }
 0x7c6   :  { %v1502_v37 = vsel %vm638_vm5, %v1496_v36, 0.0  ;;  %6553 = vmatprep.subr.bf16.mxu0 %v7238_v34 }
 0x7c7   :  { %1503 = vadd.xlane.f32.xlu1 %v1502_v37 }
 0x84c   :  { %v1501_v38 = vpop.xlane.xlu0 %1500 }
 0x84d   :  { %v1506_v39 = vmul.f32 0.03125, %v1501_v38 }
 0x84f   :  { %v1508_v40 = vsub.f32 %v1495_v26, %v1506_v39 }
 0x850   :  { %v1504_v41 = vpop.xlane.xlu1 %1503 }
 0x851   :  { %v1507_v42 = vmul.f32 0.03125, %v1504_v41  ;;  %v1510_v43 = vmul.f32 %v1508_v40, %v1508_v40 }
 0x853   :  { %v1509_v44 = vsub.f32 %v1496_v36, %v1507_v42  ;;  %v1512_v2 = vsel %vm638_vm5, %v1510_v43, 0.0 }
 0x854   :  { %1513 = vadd.xlane.f32.xlu0 %v1512_v2 }
 0x855   :  { %v1511_v45 = vmul.f32 %v1509_v44, %v1509_v44 }
 0x857   :  { %v1515_v46 = vsel %vm638_vm5, %v1511_v45, 0.0 }
 0x858   :  { %1516 = vadd.xlane.f32.xlu0 %v1515_v46 }
 0x8dd   :  { %v1514_v57 = vpop.xlane.xlu0 %1513 }
 0x8de   :  { %v1518_v59 = vmul.f32 0.03125, %v1514_v57  ;;  %v6990_v57 = vld [vmem:[#allocation2 + $0x9c] sm:$0xff]  }
 0x8e0   :  { %v1520_v60 = vadd.f32 1e-05, %v1518_v59  ;;  %v6991_v59 = vld [vmem:[#allocation2 + $0x94] sm:$0xff]  }
 0x8e1   :  { %v1517_v61 = vpop.xlane.xlu0 %1516 }
 0x8e2   :  { %7084 = vrsqrt.f32 %v1520_v60  ;;  %v1519_v62 = vmul.f32 0.03125, %v1517_v61 }
 0x8e4   :  { %v1521_v1 = vadd.f32 1e-05, %v1519_v62 }
 0x8e6   :  { %7086 = vrsqrt.f32 %v1521_v1 }
 0x8ef   :  { %v7085_v3 = vpop.eup %7084 }
 0x8f0   :  { %v1524_v58 = vmul.f32 %v7085_v3, %v1508_v40 }
 0x8f2   :  { %v1530_v7 = vmul.f32 %v5922_v63, %v1524_v58 }
 0x8f3   :  { %v7087_v5 = vpop.eup %7086 }
 0x8f4   :  { %v1525_v6 = vmul.f32 %v7087_v5, %v1509_v44  ;;  %v1536_v11 = vadd.f32 %v5923_v8, %v1530_v7 }
 0x8f6   :  { %v1531_v10 = vmul.f32 %v5922_v63, %v1525_v6  ;;  %v5937_v6 = vld [vmem:[#allocation4 + $0x15] ss:$0 sm:$0xff] }
 0x8f8   :  { %v1537_v12 = vadd.f32 %v5923_v8, %v1531_v10 }
 0x8fa   :  { %v1538_v14 = vpack.c.bf16 %v1537_v12, %v1536_v11 }
 0x8fc   :  { %6530 = vmatmul.mubr.msk.bf16.vlgmr.msra.gmra.mxu0 %vm638_vm5, %v1538_v14 }
 0x8fd   :  { %6557 = vmatprep.mubr.msk.bf16.mxu0 %vm7239_vm10, %v7238_v34  ;;  %6554 = vmatpush3.bf16.msra.mxu0 %v6990_v57 }
 0x8fe   :  { %6555 = vmatprep.subr.bf16.mxu0 %v7238_v34 }
 0x901   :  { %6556 = vmatpush3.bf16.msra.mxu0 %v6991_v59 }
 0x902   :  { %6561 = vmatprep.subr.bf16.mxu0 %v7238_v34 }
 0x9bc   :  { %v1597_v19 = vpop.f32.mrf.mxu0 }
 0x9bd   :  { %v1598_v22 = vadd.f32 %v5924_v18, %v1597_v19  ;;  %v6994_v19 = vld [vmem:[#allocation2 + $0xbc] sm:$0xff]  }
 0x9be   :  { %v6531_v21 = vpop.f32.mrf.mxu0 }
 0x9bf   :  { %v1604_v26 = vmax.f32 %v1598_v22, 0.0  ;;  %v6995_v21 = vld [vmem:[#allocation2 + $0xb4] sm:$0xff]  }
 0x9c0   :  { %v1600_v23 = vpop.f32.mrf.mxu0 }
 0x9c1   :  { %v1601_v24 = vadd.f32 %v5924_v18, %v1600_v23  ;;  %v6993_v18 = vld [vmem:[#allocation2 + $0xa4] sm:$0xff]  }
 0x9c2   :  { %v6532_v25 = vpop.f32.mrf.mxu0 }
 0x9c3   :  { %v1605_v28 = vmax.f32 %v1601_v24, 0.0  ;;  %v5939_v25 = vld [vmem:[#allocation4 + $0x17] ss:$0 sm:$0xff] }
 0x9c5   :  { %v1606_v30 = vpack.c.bf16 %v1605_v28, %v1604_v26  ;;  %v5943_v28 = vld [vmem:[#allocation4 + $0x18] ss:$0 sm:$0xff] }
 0x9c7   :  { %6550 = vmatmul.mubr.bf16.vlgmr.msra.gmra.mxu1 %v1606_v30 }
 0x9c8   :  { %6589 = vmatpush3.msra.mxu1 %v7418_v53  ;;  %6596 = vmatprep.mubr.msk.f32.mxu1 %vm7239_vm10, %v7238_v34 }
 0x9c9   :  { %6590 = vmatprep.subr.mxu1 %v7238_v34 }
 0x9ca   :  { %6591 = vmatpush3.msra.mxu1 %v7423_v54 }
 0x9cb   :  { %6592 = vmatprep.subr.mxu1 %v7238_v34 }
 0x9cc   :  { %6593 = vmatpush3.msra.mxu1 %v7429_v55 }
 0x9cd   :  { %6594 = vmatprep.subr.mxu1 %v7238_v34 }
 0x9ce   :  { %6595 = vmatpush3.msra.mxu1 %v7435_v56 }
 0x9cf   :  { %6609 = vmatprep.subr.mxu1 %v7238_v34 }
 0xa87   :  { %v1710_v33 = vpop.f32.mrf.mxu1 }
 0xa88   :  { %v1711_v36 = vadd.f32 %v5928_v31, %v1710_v33 }
 0xa89   :  { %v6551_v37 = vpop.f32.mrf.mxu1 }
 0xa8a   :  { %v1717_v38 = vadd.f32 %v1711_v36, %v1536_v11  ;;  %v5938_v11 = vld [vmem:[#allocation4 + $0x16] ss:$0 sm:$0xff] }
 0xa8b   :  { %v1713_v39 = vpop.f32.mrf.mxu1 }
 0xa8c   :  { %v1714_v40 = vadd.f32 %v5928_v31, %v1713_v39  ;;  %v1721_v41 = vsel %vm638_vm5, %v1717_v38, 0.0 }
 0xa8d   :  { %1722 = vadd.xlane.f32.xlu1 %v1721_v41  ;;  %v6552_v42 = vpop.f32.mrf.mxu1 }
 0xa8e   :  { %v1718_v43 = vadd.f32 %v1714_v40, %v1537_v12 }
 0xa90   :  { %v1724_v44 = vsel %vm638_vm5, %v1718_v43, 0.0 }
 0xa91   :  { %1725 = vadd.xlane.f32.xlu0 %v1724_v44 }
 0xb16   :  { %v1723_v2 = vpop.xlane.xlu1 %1722 }
 0xb17   :  { %v1727_v45 = vmul.f32 0.03125, %v1723_v2 }
 0xb19   :  { %v1729_v46 = vsub.f32 %v1717_v38, %v1727_v45 }
 0xb1a   :  { %v1726_v4 = vpop.xlane.xlu0 %1725 }
 0xb1b   :  { %v1728_v48 = vmul.f32 0.03125, %v1726_v4  ;;  %v1731_v47 = vmul.f32 %v1729_v46, %v1729_v46 }
 0xb1d   :  { %v1730_v49 = vsub.f32 %v1718_v43, %v1728_v48  ;;  %v1733_v50 = vsel %vm638_vm5, %v1731_v47, 0.0 }
 0xb1e   :  { %1734 = vadd.xlane.f32.xlu1 %v1733_v50 }
 0xb1f   :  { %v1732_v51 = vmul.f32 %v1730_v49, %v1730_v49 }
 0xb21   :  { %v1736_v52 = vsel %vm638_vm5, %v1732_v51, 0.0 }
 0xb22   :  { %1737 = vadd.xlane.f32.xlu0 %v1736_v52 }
 0xba7   :  { %v1735_v60 = vpop.xlane.xlu1 %1734 }
 0xba8   :  { %v1739_v61 = vmul.f32 0.03125, %v1735_v60 }
 0xbaa   :  { %v1741_v62 = vadd.f32 1e-05, %v1739_v61 }
 0xbab   :  { %v1738_v1 = vpop.xlane.xlu0 %1737 }
 0xbac   :  { %7088 = vrsqrt.f32 %v1741_v62  ;;  %v1740_v3 = vmul.f32 0.03125, %v1738_v1 }
 0xbae   :  { %v1742_v58 = vadd.f32 1e-05, %v1740_v3 }
 0xbb0   :  { %7090 = vrsqrt.f32 %v1742_v58 }
 0xbb9   :  { %v7089_v63 = vpop.eup %7088 }
 0xbba   :  { %v1745_v5 = vmul.f32 %v7089_v63, %v1729_v46 }
 0xbbc   :  { %v1751_v10 = vmul.f32 %v5937_v6, %v1745_v5 }
 0xbbd   :  { %v7091_v7 = vpop.eup %7090 }
 0xbbe   :  { %v1746_v8 = vmul.f32 %v7091_v7, %v1730_v49  ;;  %v7542_v14 = vadd.f32 %v5938_v11, %v1751_v10 }
 0xbc0   :  { %v1752_v12 = vmul.f32 %v5937_v6, %v1746_v8 }
 0xbc2   :  { %v7544_v15 = vadd.f32 %v5938_v11, %v1752_v12 }
 0xbc4   :  { %v1759_v17 = vpack.c.bf16 %v7544_v15, %v7542_v14 }
 0xbc6   :  { %6558 = vmatmul.mubr.msk.bf16.vlgmr.msra.gmra.mxu0 %vm638_vm5, %v1759_v17 }
 0xbc7   :  { %6562 = vmatpush3.bf16.msra.mxu0 %v6992_v16  ;;  %6565 = vmatprep.mubr.msk.bf16.mxu0 %vm7239_vm10, %v7238_v34 }
 0xbc8   :  { %6563 = vmatprep.subr.bf16.mxu0 %v7238_v34 }
 0xbcb   :  { %6564 = vmatpush3.bf16.msra.mxu0 %v6993_v18 }
 0xbcc   :  { %6569 = vmatprep.subr.bf16.mxu0 %v7238_v34 }
 0xbce   :  { %6566 = vmatmul.mubr.msk.bf16.vlgmr.msra.gmra.mxu0 %vm638_vm5, %v1759_v17 }
 0xbcf   :  { %6570 = vmatpush3.bf16.msra.mxu0 %v6994_v19  ;;  %6573 = vmatprep.mubr.msk.bf16.mxu0 %vm7239_vm10, %v7238_v34 }
 0xbd0   :  { %6571 = vmatprep.subr.bf16.mxu0 %v7238_v34 }
 0xbd3   :  { %6572 = vmatpush3.bf16.msra.mxu0 %v6995_v21 }
 0xbd4   :  { %6577 = vmatprep.subr.mxu0 %v7238_v34 }
 0xbd6   :  { %6574 = vmatmul.mubr.msk.bf16.vlgmr.msra.gmra.mxu0 %vm638_vm5, %v1759_v17 }
 0xbd7   :  { %6578 = vmatpush3.msra.mxu0 %v7418_v53  ;;  %6585 = vmatprep.mubr.msk.f32.mxu0 %vm7239_vm10, %v7238_v34 }
 0xbd8   :  { %6579 = vmatprep.subr.mxu0 %v7238_v34 }
 0xbd9   :  { %6580 = vmatpush3.msra.mxu0 %v7423_v54 }
 0xbda   :  { %6581 = vmatprep.subr.mxu0 %v7238_v34 }
 0xbdb   :  { %6582 = vmatpush3.msra.mxu0 %v7429_v55 }
 0xbdc   :  { %6583 = vmatprep.subr.mxu0 %v7238_v34 }
 0xbdd   :  { %6584 = vmatpush3.msra.mxu0 %v7435_v56 }
 0xbde   :  { %6599 = vmatprep.subr.mxu0 %v7238_v34 }
 0xc86   :  { %v1818_v22 = vpop.f32.mrf.mxu0 }
 0xc87   :  { %v1819_v31 = vadd.f32 %v5939_v25, %v1818_v22 }
 0xc88   :  { %v6559_v23 = vpop.f32.mrf.mxu0 }
 0xc8a   :  { %v1821_v24 = vpop.f32.mrf.mxu0 }
 0xc8b   :  { %v1822_v39 = vadd.f32 %v5939_v25, %v1821_v24 }
 0xc8c   :  { %v6560_v26 = vpop.f32.mrf.mxu0 }
 0xc8e   :  { %v1880_v30 = vpop.f32.mrf.mxu0 }
 0xc8f   :  { %v1881_v33 = vadd.f32 %v5943_v28, %v1880_v30 }
 0xc90   :  { %v6567_v36 = vpop.f32.mrf.mxu0 }
 0xc91   :  { %v1949_v37 = vmul.f32 %v1881_v33, %v1819_v31  ;;  %v2258_v4 = vmul.f32 %v1881_v33, %v1822_v39  ;;  %v6996_v33 = vld [vmem:[#allocation2 + $0xcc] sm:$0xff]   ;;  %v6997_v36 = vld [vmem:[#allocation2 + $0xc4] sm:$0xff]  }
 0xc92   :  { %v1883_v38 = vpop.f32.mrf.mxu0 }
 0xc93   :  { %v1884_v40 = vadd.f32 %v5943_v28, %v1883_v38  ;;  %6586 = vmatmul.mubr.msk.f32.vlgmr.msra.gmra.mxu0 %vm638_vm5, %v1949_v37 }
 0xc94   :  { %v6568_v41 = vpop.f32.mrf.mxu0  ;;  %6600 = vmatpush3.msk.msra.mxu0 %vm339_vm8, %v7452_v20  ;;  %6601 = vmatprep.mubr.msk.f32.mxu0 %vm7239_vm10, %v7238_v34 }
 0xc95   :  { %v2023_v42 = vmul.f32 %v1884_v40, %v1819_v31  ;;  %v2332_v43 = vmul.f32 %v1884_v40, %v1822_v39  ;;  %6604 = vmatprep.subr.mxu0 %v7238_v34 }
 0xc96   :  { %v1942_v44 = vpop.f32.mrf.mxu0 }
 0xc97   :  { %6597 = vmatmul.mubr.msk.f32.vlgmr.msra.gmra.mxu1 %vm638_vm5, %v2023_v42 }
 0xc98   :  { %6610 = vmatpush3.msra.mxu1 %v7418_v53  ;;  %v6575_v2 = vpop.f32.mrf.mxu0  ;;  %6617 = vmatprep.mubr.msk.f32.mxu1 %vm7239_vm10, %v7238_v34 }
 0xc99   :  { %6611 = vmatprep.subr.mxu1 %v7238_v34  ;;  %v5963_v2 = vld [vmem:[#allocation4 + $0x1a] ss:$0 sm:$0xff] }
 0xc9a   :  { %6612 = vmatpush3.msra.mxu1 %v7423_v54  ;;  %v1945_v45 = vpop.f32.mrf.mxu0 }
 0xc9b   :  { %6613 = vmatprep.subr.mxu1 %v7238_v34 }
 0xc9c   :  { %6614 = vmatpush3.msra.mxu1 %v7429_v55  ;;  %v6576_v46 = vpop.f32.mrf.mxu0 }
 0xc9d   :  { %6615 = vmatprep.subr.mxu1 %v7238_v34 }
 0xc9e   :  { %6616 = vmatpush3.msra.mxu1 %v7435_v56 }
 0xc9f   :  { %6618 = vmatmul.mubr.msk.f32.vlgmr.msra.gmra.mxu1 %vm638_vm5, %v2258_v4  ;;  %6631 = vmatprep.subr.mxu1 %v7238_v34 }
 0xca0   :  { %6632 = vmatpush3.msk.msra.mxu1 %vm339_vm8, %v7452_v20  ;;  %6633 = vmatprep.mubr.msk.f32.mxu1 %vm7239_vm10, %v7238_v34 }
 0xca1   :  { %6641 = vmatprep.subr.bf16.mxu1 %v7238_v34 }
 0xd53   :  { %v2019_v48 = vpop.f32.mrf.mxu0 }
 0xd55   :  { %v6587_v47 = vpop.f32.mrf.mxu0 }
 0xd57   :  { %v2093_v49 = vpop.f32.mrf.mxu1 }
 0xd58   :  { %v2097_v50 = vmax.f32 %v2019_v48, %v2093_v49 }
 0xd59   :  { %v6598_v51 = vpop.f32.mrf.mxu1 }
 0xd5a   :  { %v2098_v52 = vsub.f32 %v2019_v48, %v2097_v50  ;;  %v2101_v57 = vsub.f32 %v2093_v49, %v2097_v50 }
 0xd5c   :  { %v2099_v59 = vmul.f32 1.442695, %v2098_v52  ;;  %v2102_v60 = vmul.f32 1.442695, %v2101_v57 }
 0xd5e   :  { %7092 = vpow2.f32 %v2099_v59 }
 0xd5f   :  { %7094 = vpow2.f32 %v2102_v60  ;;  %v2328_v61 = vpop.f32.mrf.mxu1 }
 0xd61   :  { %v6619_v62 = vpop.f32.mrf.mxu1 }
 0xd6b   :  { %v7093_v1 = vpop.eup %7092 }
 0xd6c   :  { %v7095_v3 = vpop.eup %7094 }
 0xd6d   :  { %v2104_v58 = vadd.f32 %v7095_v3, %v7093_v1 }
 0xd6f   :  { %7096 = vrcp.f32 %v2104_v58 }
 0xd7c   :  { %v7097_v63 = vpop.eup %7096 }
 0xd7d   :  { %v2107_v5 = vmul.f32 %v7097_v63, %v7093_v1  ;;  %v2182_v6 = vmul.f32 %v7097_v63, %v7095_v3 }
 0xd7f   :  { %6602 = vmatmul.mubr.msk.f32.vlgmr.msra.gmra.mxu0 %vm966_vm6, %v2107_v5 }
 0xd80   :  { %6605 = vmatpush3.msk.msra.mxu0 %vm339_vm8, %v7452_v20  ;;  %6606 = vmatprep.mubr.msk.f32.mxu0 %vm7239_vm10, %v7238_v34 }
 0xd81   :  { %6620 = vmatprep.subr.mxu0 %v7238_v34 }
 0xd83   :  { %6607 = vmatmul.mubr.msk.f32.vlgmr.msra.gmra.mxu0 %vm966_vm6, %v2182_v6  ;;  %v6998_v6 = vld [vmem:[#allocation2 + $0xdc] sm:$0xff]  }
 0xd84   :  { %6621 = vmatpush3.msra.mxu0 %v7418_v53  ;;  %6628 = vmatprep.mubr.msk.f32.mxu0 %vm7239_vm10, %v7238_v34  ;;  %v5947_v53 = vld [vmem:[#allocation4 + $0x19] ss:$0 sm:$0xff] }
 0xd85   :  { %6622 = vmatprep.subr.mxu0 %v7238_v34  ;;  %v1946_v10 = vadd.f32 %v5947_v53, %v1945_v45 }
 0xd86   :  { %6623 = vmatpush3.msra.mxu0 %v7423_v54  ;;  %v1943_v54 = vadd.f32 %v5947_v53, %v1942_v44  ;;  %v7000_v53 = vld [vmem:[#allocation2 + $0x11c] sm:$0xff]  }
 0xd87   :  { %6624 = vmatprep.subr.mxu0 %v7238_v34 }
 0xd88   :  { %6625 = vmatpush3.msra.mxu0 %v7429_v55 }
 0xd89   :  { %6626 = vmatprep.subr.mxu0 %v7238_v34 }
 0xd8a   :  { %6627 = vmatpush3.msra.mxu0 %v7435_v56 }
 0xd8b   :  { %6629 = vmatmul.mubr.msk.f32.vlgmr.msra.gmra.mxu0 %vm638_vm5, %v2332_v43  ;;  %6636 = vmatprep.subr.mxu0 %v7238_v34 }
 0xd8c   :  { %6637 = vmatpush3.msk.msra.mxu0 %vm339_vm8, %v7452_v20  ;;  %6638 = vmatprep.mubr.msk.f32.mxu0 %vm7239_vm10, %v7238_v34 }
 0xd8d   :  { %6649 = vmatprep.subr.bf16.mxu0 %v7238_v34 }
 0xe3f   :  { %v2177_v7 = vpop.f32.mrf.mxu0 }
 0xe40   :  { %v2181_v55 = vmul.f32 %v2177_v7, %v1943_v54  ;;  %v7002_v7 = vld [vmem:[#allocation2 + $0x10c] sm:$0xff]  }
 0xe41   :  { %v6603_v8 = vpop.f32.mrf.mxu0 }
 0xe42   :  { %v7004_v8 = vld [vmem:[#allocation2 + $0xfc] sm:$0xff]  }
 0xe43   :  { %v2252_v11 = vpop.f32.mrf.mxu0 }
 0xe44   :  { %v2256_v56 = vmul.f32 %v2252_v11, %v1946_v10 }
 0xe45   :  { %v6608_v12 = vpop.f32.mrf.mxu0 }
 0xe46   :  { %v2257_v16 = vadd.f32 %v2256_v56, %v2181_v55  ;;  %v7003_v55 = vld [vmem:[#allocation2 + $0x104] sm:$0xff]  }
 0xe4b   :  { %v2402_v17 = vpop.f32.mrf.mxu0 }
 0xe4c   :  { %v2406_v18 = vmax.f32 %v2328_v61, %v2402_v17 }
 0xe4d   :  { %v6630_v19 = vpop.f32.mrf.mxu0 }
 0xe4e   :  { %v2407_v21 = vsub.f32 %v2328_v61, %v2406_v18  ;;  %v2410_v20 = vsub.f32 %v2402_v17, %v2406_v18 }
 0xe50   :  { %v2408_v22 = vmul.f32 1.442695, %v2407_v21  ;;  %v2411_v23 = vmul.f32 1.442695, %v2410_v20  ;;  %v5967_v21 = vld [vmem:[#allocation4 + $0x1b] ss:$0 sm:$0xff] }
 0xe52   :  { %7098 = vpow2.f32 %v2408_v22 }
 0xe53   :  { %7100 = vpow2.f32 %v2411_v23 }
 0xe5f   :  { %v7099_v24 = vpop.eup %7098 }
 0xe60   :  { %v7101_v25 = vpop.eup %7100 }
 0xe61   :  { %v2413_v26 = vadd.f32 %v7101_v25, %v7099_v24 }
 0xe63   :  { %7102 = vrcp.f32 %v2413_v26 }
 0xe70   :  { %v7103_v28 = vpop.eup %7102 }
 0xe71   :  { %v2416_v30 = vmul.f32 %v7103_v28, %v7099_v24  ;;  %v2491_v31 = vmul.f32 %v7103_v28, %v7101_v25  ;;  %v5968_v24 = vld [vmem:[#allocation4 + $0x1c] ss:$0 sm:$0xff] }
 0xe73   :  { %6634 = vmatmul.mubr.msk.f32.vlgmr.msra.gmra.mxu1 %vm966_vm6, %v2416_v30  ;;  %6639 = vmatmul.mubr.msk.f32.vlgmr.msra.gmra.mxu0 %vm966_vm6, %v2491_v31  ;;  %v7005_v31 = vld [vmem:[#allocation2 + $0xf4] sm:$0xff]  }
 0xe74   :  { %6645 = vmatprep.mubr.msk.bf16.mxu1 %vm7239_vm10, %v7238_v34  ;;  %6653 = vmatprep.mubr.msk.bf16.mxu0 %vm7239_vm10, %v7238_v34 }
 0xe75   :  { %6642 = vmatpush3.bf16.msra.mxu1 %v6996_v33  ;;  %6650 = vmatpush3.bf16.msra.mxu0 %v6998_v6  ;;  %v7006_v33 = vld [vmem:[#allocation2 + $0xec] sm:$0xff]  }
 0xe76   :  { %6643 = vmatprep.subr.bf16.mxu1 %v7238_v34  ;;  %6651 = vmatprep.subr.bf16.mxu0 %v7238_v34 }
 0xe79   :  { %6644 = vmatpush3.bf16.msra.mxu1 %v6997_v36  ;;  %v7007_v36 = vld [vmem:[#allocation2 + $0xe4] sm:$0xff]  }
 0xe7a   :  { %6657 = vmatprep.subr.bf16.mxu1 %v7238_v34 }
 0xf33   :  { %v2486_v37 = vpop.f32.mrf.mxu1  ;;  %v2561_v38 = vpop.f32.mrf.mxu0 }
 0xf34   :  { %v2490_v39 = vmul.f32 %v2486_v37, %v1943_v54  ;;  %v2565_v40 = vmul.f32 %v2561_v38, %v1946_v10  ;;  %v7001_v54 = vld [vmem:[#allocation2 + $0x114] sm:$0xff]  }
 0xf35   :  { %v6635_v41 = vpop.f32.mrf.mxu1  ;;  %v6640_v42 = vpop.f32.mrf.mxu0  ;;  %v5969_v37 = vld [vmem:[#allocation4 + $0x1d] ss:$0 sm:$0xff] }
 0xf36   :  { %v2566_v43 = vadd.f32 %v2565_v40, %v2490_v39 }
 0xf38   :  { %v2567_v44 = vpack.c.bf16 %v2566_v43, %v2257_v16 }
 0xf3a   :  { %6646 = vmatmul.mubr.msk.bf16.vlgmr.msra.gmra.mxu1 %vm638_vm5, %v2567_v44 }
 0xf3b   :  { %6673 = vmatprep.mubr.msk.bf16.mxu1 %vm7239_vm10, %v7238_v34  ;;  %6658 = vmatpush3.bf16.msra.mxu1 %v7000_v53 }
 0xf3c   :  { %6659 = vmatprep.subr.bf16.mxu1 %v7238_v34 }
 0xf3f   :  { %6660 = vmatpush3.bf16.msra.mxu1 %v7001_v54 }
 0xf40   :  { %6661 = vmatprep.subr.bf16.mxu1 %v7238_v34 }
 0xf43   :  { %6662 = vmatpush3.bf16.msra.mxu1 %v7002_v7 }
 0xf44   :  { %6663 = vmatprep.subr.bf16.mxu1 %v7238_v34 }
 0xf47   :  { %6664 = vmatpush3.bf16.msra.mxu1 %v7003_v55 }
 0xf48   :  { %6665 = vmatprep.subr.bf16.mxu1 %v7238_v34 }
 0xf4b   :  { %6666 = vmatpush3.bf16.msra.mxu1 %v7004_v8 }
 0xf4c   :  { %6667 = vmatprep.subr.bf16.mxu1 %v7238_v34 }
 0xf4f   :  { %6668 = vmatpush3.bf16.msra.mxu1 %v7005_v31 }
 0xf50   :  { %6669 = vmatprep.subr.bf16.mxu1 %v7238_v34 }
 0xf53   :  { %6670 = vmatpush3.bf16.msra.mxu1 %v7006_v33 }
 0xf54   :  { %6671 = vmatprep.subr.bf16.mxu1 %v7238_v34 }
 0xf57   :  { %6672 = vmatpush3.bf16.msra.mxu1 %v7007_v36 }
 0xffa   :  { %v2626_v45 = vpop.f32.mrf.mxu1 }
 0xffb   :  { %v2627_v46 = vadd.f32 %v5963_v2, %v2626_v45 }
 0xffc   :  { %v6647_v4 = vpop.f32.mrf.mxu1 }
 0xffd   :  { %v2633_v48 = vadd.f32 %v2627_v46, %v7542_v14  ;;  %v5973_v46 = vld [vmem:[#allocation4 + $0x1e] ss:$0 sm:$0xff] }
 0xffe   :  { %v2629_v47 = vpop.f32.mrf.mxu1 }
 0xfff   :  { %v2630_v49 = vadd.f32 %v5963_v2, %v2629_v47  ;;  %v2637_v50 = vsel %vm638_vm5, %v2633_v48, 0.0 }
0x1000   :  { %2638 = vadd.xlane.f32.xlu1 %v2637_v50  ;;  %v6648_v51 = vpop.f32.mrf.mxu1 }
0x1001   :  { %v2634_v52 = vadd.f32 %v2630_v49, %v7544_v15  ;;  %v6999_v15 = vld [vmem:[#allocation2 + $0xd4] sm:$0xff]  }
0x1002   :  { %6652 = vmatpush3.bf16.msra.mxu0 %v6999_v15 }
0x1003   :  { %v2640_v57 = vsel %vm638_vm5, %v2634_v52, 0.0 }
0x1004   :  { %2641 = vadd.xlane.f32.xlu0 %v2640_v57 }
0x1089   :  { %v2639_v59 = vpop.xlane.xlu1 %2638 }
0x108a   :  { %v2643_v60 = vmul.f32 0.03125, %v2639_v59 }
0x108c   :  { %v2645_v61 = vsub.f32 %v2633_v48, %v2643_v60 }
0x108d   :  { %v2642_v62 = vpop.xlane.xlu0 %2641 }
0x108e   :  { %v2644_v1 = vmul.f32 0.03125, %v2642_v62  ;;  %v2647_v3 = vmul.f32 %v2645_v61, %v2645_v61 }
0x1090   :  { %v2646_v58 = vsub.f32 %v2634_v52, %v2644_v1  ;;  %v2649_v14 = vsel %vm638_vm5, %v2647_v3, 0.0  ;;  %v7652_v3 = vld [vmem:[%s8065_s2] ss:$0 sm:$0xff] }
0x1091   :  { %2650 = vadd.xlane.f32.xlu1 %v2649_v14  ;;  %v2902_v14 = vcvt.s32.f32 %v7378_v13 }
0x1092   :  { %v2648_v63 = vmul.f32 %v2646_v58, %v2646_v58 }
0x1094   :  { %v2652_v5 = vsel %vm638_vm5, %v2648_v63, 0.0 }
0x1095   :  { %2653 = vadd.xlane.f32.xlu0 %v2652_v5 }
0x111a   :  { %v2651_v10 = vpop.xlane.xlu1 %2650 }
0x111b   :  { %v2655_v11 = vmul.f32 0.03125, %v2651_v10 }
0x111d   :  { %v2657_v56 = vadd.f32 1e-05, %v2655_v11 }
0x111e   :  { %v2654_v12 = vpop.xlane.xlu0 %2653 }
0x111f   :  { %7104 = vrsqrt.f32 %v2657_v56  ;;  %v2656_v16 = vmul.f32 0.03125, %v2654_v12 }
0x1121   :  { %v2658_v17 = vadd.f32 1e-05, %v2656_v16 }
0x1123   :  { %7106 = vrsqrt.f32 %v2658_v17 }
0x112c   :  { %v7105_v18 = vpop.eup %7104 }
0x112d   :  { %v2661_v19 = vmul.f32 %v7105_v18, %v2645_v61  ;;  %v7644_v61 = vshrl.u32 %v496_v9, 7 }
0x112f   :  { %v2667_v23 = vmul.f32 %v5967_v21, %v2661_v19  ;;  %v7647_v62 = vadd.s32 8, %v7644_v61  ;;  %v7656_v63 = vadd.s32 24, %v7644_v61  ;;  %vm2907_vm11 = vcmp.eq.s32.totalorder %v7644_v61, %v7652_v3  ;;  %v7176_v19 = vld [vmem:[%s8063_s0 + $0x10] sm:$0xff] }
0x1130   :  { %v7107_v20 = vpop.eup %7106  ;;  %v7677_v7 = vadd.s32 16, %v7644_v61  ;;  %v2911_v11 = vsel %vm2907_vm11, %v2902_v14, -1.0  ;;  %vm402_vm13 = vcmp.eq.f32.partialorder %v7176_v19, 102.0  ;;  %vm449_vm0 = vcmp.eq.f32.partialorder %v7176_v19, 101.0 }
0x1131   :  { %v2662_v22 = vmul.f32 %v7107_v20, %v2646_v58  ;;  %v2673_v26 = vadd.f32 %v5968_v24, %v2667_v23  ;;  %vm2908_vm7 = vcmp.eq.s32.totalorder %v7647_v62, %v7652_v3  ;;  %vm2910_vm10 = vcmp.eq.s32.totalorder %v7656_v63, %v7652_v3  ;;  %v7178_v23 = vld [vmem:[%s8063_s0 + $0x20] sm:$0xff]  ;;  %v7008_v62 = vld [vmem:[#allocation2 + $0x24c] sm:$0xff]  }
0x1132   :  { %v7667_v53 = vsel %vm2908_vm7, %v2902_v14, -1.0  ;;  %v7686_v10 = vsel %vm2910_vm10, %v2902_v14, -1.0  ;;  %vm2909_vm12 = vcmp.eq.s32.totalorder %v7677_v7, %v7652_v3  ;;  %v2916_v16 = vsel %vm2915_vm9, %v2911_v11, -inf  ;;  %v7181_v7 = vld [vmem:[#allocation4 + $0xc] ss:$0 sm:$0xff] }
0x1133   :  { %v2668_v25 = vmul.f32 %v5967_v21, %v2662_v22  ;;  %v2919_v55 = vsel %vm2915_vm9, %v7667_v53, -inf  ;;  %v2925_v12 = vsel %vm2915_vm9, %v7686_v10, -inf  ;;  %v2913_v17 = vsel %vm2909_vm12, %v2902_v14, -1.0  ;;  %v7177_v21 = vld [vmem:[%s8063_s0 + $0x18] sm:$0xff] }
0x1134   :  { %v2922_v18 = vsel %vm2915_vm9, %v2913_v17, -inf  ;;  %vm403_vm14 = vcmp.eq.f32.partialorder %v7177_v21, 102.0  ;;  %v409_v20 = vsel %vm402_vm13, 1, %v7237_v0  ;;  %vm404_vm15 = vcmp.eq.f32.partialorder %v7178_v23, 102.0 }
0x1135   :  { %v2674_v28 = vadd.f32 %v5968_v24, %v2668_v25  ;;  %v410_v22 = vsel %vm403_vm14, 1, %v7237_v0  ;;  %v411_v24 = vsel %vm404_vm15, 1, %v7237_v0  ;;  %v456_v25 = vsel %vm449_vm0, 1, %v7237_v0 }
0x1136   :  { %vm451_vm2 = vcmp.eq.f32.partialorder %v7178_v23, 101.0  ;;  %vm450_vm3 = vcmp.eq.f32.partialorder %v7177_v21, 101.0 }
0x1137   :  { %v2675_v30 = vpack.c.bf16 %v2674_v28, %v2673_v26  ;;  %v457_v31 = vsel %vm450_vm3, 1, %v7237_v0 }
0x1139   :  { %6654 = vmatmul.mubr.msk.bf16.vlgmr.msra.gmra.mxu0 %vm638_vm5, %v2675_v30  ;;  %v458_v30 = vsel %vm451_vm2, 1, %v7237_v0 }
0x11f9   :  { %v2734_v38 = vpop.f32.mrf.mxu0 }
0x11fa   :  { %v2735_v40 = vadd.f32 %v5969_v37, %v2734_v38 }
0x11fb   :  { %v6655_v39 = vpop.f32.mrf.mxu0 }
0x11fc   :  { %v2741_v44 = vmax.f32 %v2735_v40, 0.0 }
0x11fd   :  { %v2737_v41 = vpop.f32.mrf.mxu0 }
0x11fe   :  { %v2738_v42 = vadd.f32 %v5969_v37, %v2737_v41 }
0x11ff   :  { %v6656_v43 = vpop.f32.mrf.mxu0 }
0x1200   :  { %v2742_v2 = vmax.f32 %v2738_v42, 0.0 }
0x1202   :  { %v2743_v45 = vpack.c.bf16 %v2742_v2, %v2741_v44 }
0x1204   :  { %6674 = vmatmul.mubr.bf16.vlgmr.msra.gmra.mxu1 %v2743_v45 }
0x12c4   :  { %v2847_v4 = vpop.f32.mrf.mxu1 }
0x12c5   :  { %v2848_v48 = vadd.f32 %v5973_v46, %v2847_v4 }
0x12c6   :  { %v6675_v47 = vpop.f32.mrf.mxu1 }
0x12c7   :  { %v2854_v49 = vadd.f32 %v2848_v48, %v2673_v26  ;;  %v7179_v26 = vld [vmem:[%s8063_s0 + $0x28] sm:$0xff] }
0x12c8   :  { %v2850_v50 = vpop.f32.mrf.mxu1  ;;  %vm405_vm1 = vcmp.eq.f32.partialorder %v7179_v26, 102.0  ;;  %vm452_vm4 = vcmp.eq.f32.partialorder %v7179_v26, 101.0 }
0x12c9   :  { %v2851_v51 = vadd.f32 %v5973_v46, %v2850_v50  ;;  %v2858_v52 = vsel %vm638_vm5, %v2854_v49, 0.0  ;;  %v459_v33 = vsel %vm452_vm4, 1, %v7237_v0  ;;  %v5982_v46 = vld [vmem:[#allocation4 + $0x1f] ss:$0 sm:$0xff]  ;;  %v5983_v50 = vld [vmem:[#allocation4 + $0x20] ss:$0 sm:$0xff] }
0x12ca   :  { %2859 = vadd.xlane.f32.xlu0 %v2858_v52  ;;  %v6676_v57 = vpop.f32.mrf.mxu1 }
0x12cb   :  { %v2855_v59 = vadd.f32 %v2851_v51, %v2674_v28  ;;  %v412_v28 = vsel %vm405_vm1, 1, %v7237_v0 }
0x12cd   :  { %v2861_v60 = vsel %vm638_vm5, %v2855_v59, 0.0 }
0x12ce   :  { %2862 = vadd.xlane.f32.xlu1 %v2861_v60 }
0x1353   :  { %v2860_v1 = vpop.xlane.xlu0 %2859 }
0x1354   :  { %v2864_v58 = vmul.f32 0.03125, %v2860_v1  ;;  %v7009_v1 = vld [vmem:[#allocation2 + $0x244] sm:$0xff]  }
0x1356   :  { %v7658_v5 = vsub.f32 %v2854_v49, %v2864_v58 }
0x1357   :  { %v2863_v9 = vpop.xlane.xlu1 %2862 }
0x1358   :  { %v2865_v6 = vmul.f32 0.03125, %v2863_v9  ;;  %v2868_v15 = vmul.f32 %v7658_v5, %v7658_v5 }
0x135a   :  { %v7671_v13 = vsub.f32 %v2855_v59, %v2865_v6  ;;  %v2870_v54 = vsel %vm638_vm5, %v2868_v15, 0.0 }
0x135b   :  { %2871 = vadd.xlane.f32.xlu0 %v2870_v54 }
0x135c   :  { %v2869_v8 = vmul.f32 %v7671_v13, %v7671_v13 }
0x135e   :  { %v2873_v56 = vsel %vm638_vm5, %v2869_v8, 0.0 }
0x135f   :  { %2920 = vmax.xlane.f32.xlu0 %v2919_v55  ;;  %2874 = vadd.xlane.f32.xlu1 %v2873_v56 }
0x1363   :  { %2926 = vmax.xlane.f32.xlu0 %v2925_v12  ;;  %2917 = vmax.xlane.f32.xlu1 %v2916_v16 }
0x1367   :  { %2923 = vmax.xlane.f32.xlu1 %v2922_v18 }
0x1378   :  { %420 = vperm.xlu1 %6964, %v409_v20  }
0x1379   :  { %423 = vperm.xlu0 %6963, %v410_v22  }
0x137c   :  { %426 = vperm.xlu1 %6964, %v411_v24   ;;  %v5993_v24 = vld [vmem:[#allocation4 + $0x2f] ss:$0 sm:$0xff] }
0x137d   :  { %467 = vperm.xlu0 %6963, %v456_v25  }
0x1380   :  { %429 = vperm.xlu1 %6964, %v412_v28  }
0x1381   :  { %473 = vperm.xlu0 %6963, %v458_v30  }
0x1384   :  { %470 = vperm.xlu1 %6964, %v457_v31  }
0x1388   :  { %476 = vperm.xlu1 %6964, %v459_v33  }
0x13e4   :  { %v2872_v36 = vpop.xlane.xlu0 %2871 }
0x13e5   :  { %v2876_v37 = vmul.f32 0.03125, %v2872_v36 }
0x13e7   :  { %v2878_v38 = vadd.f32 1e-05, %v2876_v37 }
0x13e8   :  { %v2875_v39 = vpop.xlane.xlu1 %2874  ;;  %v2921_v44 = vpop.xlane.xlu0 %2920 }
0x13e9   :  { %7108 = vrsqrt.f32 %v2878_v38  ;;  %v2877_v40 = vmul.f32 0.03125, %v2875_v39  ;;  %vm2929_vm15 = vcmp.eq.f32.partialorder %v7667_v53, %v2921_v44  ;;  %v7180_v53 = vld [vmem:[#allocation4 + $0xb] ss:$0 sm:$0xff] }
0x13eb   :  { %v2879_v41 = vadd.f32 1e-05, %v2877_v40 }
0x13ec   :  { %v7721_v42 = vpop.xlane.xlu1 %2917  ;;  %v2927_v51 = vpop.xlane.xlu0 %2926 }
0x13ed   :  { %7110 = vrsqrt.f32 %v2879_v41  ;;  %vm2928_vm13 = vcmp.eq.f32.partialorder %v2911_v11, %v7721_v42  ;;  %vm2931_vm1 = vcmp.eq.f32.partialorder %v7686_v10, %v2927_v51 }
0x13ee   :  { %vm2932_vm14 = vmand %vm2907_vm11, %vm2928_vm13  ;;  %vm3042_vm13 = vcmp.ge.f32.partialorder %v2921_v44, 0.0 }
0x13ef   :  { %v5985_v43 = vsel %vm2932_vm14, 1.0, %v7238_v34  ;;  %vm2933_vm11 = vmand %vm2908_vm7, %vm2929_vm15  ;;  %vm3041_vm14 = vcmp.ge.f32.partialorder %v7721_v42, 0.0 }
0x13f0   :  { %6681 = vmatprep.mubr.msk.f32.mxu0 %vm2915_vm9, %v5985_v43  ;;  %v7732_v48 = vpop.xlane.xlu1 %2923  ;;  %v5986_v59 = vsel %vm2933_vm11, 1.0, %v7238_v34  ;;  %vm2935_vm3 = vmand %vm2910_vm10, %vm2931_vm1 }
0x13f1   :  { %vm2930_vm0 = vcmp.eq.f32.partialorder %v2913_v17, %v7732_v48  ;;  %v5988_v61 = vsel %vm2935_vm3, 1.0, %v7238_v34  ;;  %vm3043_vm3 = vcmp.ge.f32.partialorder %v7732_v48, 0.0 }
0x13f2   :  { %vm2934_vm2 = vmand %vm2909_vm12, %vm2930_vm0 }
0x13f3   :  { %v5987_v60 = vsel %vm2934_vm2, 1.0, %v7238_v34  ;;  %vm3044_vm2 = vcmp.ge.f32.partialorder %v2927_v51, 0.0 }
0x13f4   :  { %v421_v3 = vpop.permute.xlu1 %420  ;;  %v424_v14 = vpop.permute.xlu0 %423 }
0x13f5   :  { %vm434_vm7 = vcmp.eq.s32.totalorder %v424_v14, 1  ;;  %vm433_vm10 = vcmp.eq.s32.totalorder %v421_v3, 1  ;;  %v7013_v3 = vld [vmem:[#allocation2 + $0x144] sm:$0xff]  }
0x13f6   :  { %v7109_v0 = vpop.eup %7108  ;;  %v443_v54 = vsel %vm433_vm10, %v7180_v53, %v7393_v27 }
0x13f7   :  { %v2882_v2 = vmul.f32 %v7109_v0, %v7658_v5 }
0x13f8   :  { %v427_v58 = vpop.permute.xlu1 %426  ;;  %v468_v5 = vpop.permute.xlu0 %467 }
0x13f9   :  { %v2888_v49 = vmul.f32 %v5982_v46, %v2882_v2  ;;  %vm480_vm12 = vcmp.eq.s32.totalorder %v468_v5, 1  ;;  %vm435_vm15 = vcmp.eq.s32.totalorder %v427_v58, 1  ;;  %v7014_v58 = vld [vmem:[#allocation2 + $0x13c] sm:$0xff]  }
0x13fa   :  { %v7111_v45 = vpop.eup %7110  ;;  %v490_v55 = vsel %vm480_vm12, %v7181_v7, %v443_v54  ;;  %v445_v17 = vsel %vm435_vm15, %v7180_v53, %v7397_v32 }
0x13fb   :  { %v2883_v4 = vmul.f32 %v7111_v45, %v7671_v13  ;;  %v2894_v57 = vadd.f32 %v5983_v50, %v2888_v49  ;;  %v444_v13 = vsel %vm434_vm7, %v7180_v53, %v7395_v29 }
0x13fc   :  { %v430_v63 = vpop.permute.xlu1 %429  ;;  %v474_v6 = vpop.permute.xlu0 %473 }
0x13fd   :  { %v2889_v47 = vmul.f32 %v5982_v46, %v2883_v4  ;;  %vm436_vm0 = vcmp.eq.s32.totalorder %v430_v63, 1  ;;  %vm482_vm11 = vcmp.eq.s32.totalorder %v474_v6, 1 }
0x13fe   :  { %v446_v18 = vsel %vm436_vm0, %v7180_v53, %v7399_v35  ;;  %v492_v27 = vsel %vm482_vm11, %v7181_v7, %v445_v17 }
0x13ff   :  { %v2895_v52 = vadd.f32 %v5983_v50, %v2889_v47 }
0x1400   :  { %v471_v9 = vpop.permute.xlu1 %470 }
0x1401   :  { %6677 = vmatprep.subr.mxu0 %v2895_v52  ;;  %vm481_vm4 = vcmp.eq.s32.totalorder %v471_v9, 1 }
0x1402   :  { %6678 = vmatpush3.msra.mxu0 %v2895_v52  ;;  %v491_v8 = vsel %vm481_vm4, %v7181_v7, %v444_v13 }
0x1403   :  { %6679 = vmatprep.subr.mxu0 %v2894_v57 }
0x1404   :  { %6680 = vmatpush3.msra.mxu0 %v2894_v57  ;;  %v477_v34 = vpop.permute.xlu1 %476 }
0x1405   :  { %6682 = vmatmul.mubr.msk.f32.vlgmr.msra.gmra.mxu0 %vm2915_vm9, %v5986_v59  ;;  %6687 = vmatprep.subr.bf16.mxu0 %v7008_v62  ;;  %vm483_vm1 = vcmp.eq.s32.totalorder %v477_v34, 1 }
0x1406   :  { %6684 = vmatprep.mubr.msk.f32.mxu0 %vm2915_vm9, %v5987_v60  ;;  %6688 = vmatpush3.bf16.msra.mxu0 %v7008_v62  ;;  %v493_v29 = vsel %vm483_vm1, %v7181_v7, %v446_v18  ;;  %v7011_v62 = vld [vmem:[#allocation2 + $0x14c] sm:$0xff]  }
0x1407   :  { %6689 = vmatprep.subr.bf16.mxu0 %v7009_v1  ;;  %6711 = vmatprep.subr.bf16.mxu1 %v7011_v62 }
0x1408   :  { %6712 = vmatpush3.bf16.msra.mxu1 %v7011_v62 }
0x1409   :  { %6685 = vmatmul.mubr.msk.f32.gmra.mxu0 %vm2915_vm9, %v5988_v61  ;;  %v7010_v61 = vld [vmem:[#allocation2 + $0x12c] sm:$0xff]   ;;  %6713 = vmatprep.subr.bf16.mxu1 %v7013_v3 }
0x140a   :  { %6690 = vmatpush3.bf16.msra.mxu0 %v7009_v1  ;;  %v7012_v1 = vld [vmem:[#allocation2 + $0x124] sm:$0xff]  }
0x140b   :  { %6695 = vmatprep.subr.bf16.mxu0 %v7010_v61 }
0x140c   :  { %6714 = vmatpush3.bf16.msra.mxu1 %v7013_v3 }
0x14c5   :  { %v6683_v15 = vpop.f32.mrf.mxu0 }
0x14c6   :  { %v3054_v11 = vsel %vm3042_vm13, %v6683_v15, %v491_v8 }
0x14c7   :  { %v3022_v10 = vpop.f32.mrf.mxu0 }
0x14c8   :  { %v3053_v56 = vsel %vm3041_vm14, %v3022_v10, %v490_v55 }
0x14c9   :  { %v3057_v12 = vpack.c.bf16 %v3054_v11, %v3053_v56  ;;  %v6686_v16 = vpop.f32.mrf.mxu0  ;;  %v5998_v11 = vld [vmem:[#allocation4 + $0x22] ss:$0 sm:$0xff] }
0x14ca   :  { %v3056_v21 = vsel %vm3044_vm2, %v6686_v16, %v493_v29 }
0x14cb   :  { %v3032_v19 = vpop.f32.mrf.mxu0  ;;  %6691 = vmatprep.mubr.msk.bf16.mxu0 %vm638_vm5, %v3057_v12 }
0x14cc   :  { %v3055_v20 = vsel %vm3043_vm3, %v3032_v19, %v492_v27  ;;  %v5999_v27 = vld [vmem:[#allocation4 + $0x23] ss:$0 sm:$0xff] }
0x14cd   :  { %v3058_v22 = vpack.c.bf16 %v3056_v21, %v3055_v20 }
0x14cf   :  { %6692 = vmatmul.mubr.msk.bf16.vlgmr.msra.gmra.mxu0 %vm638_vm5, %v3058_v22 }
0x14d0   :  { %6696 = vmatpush3.bf16.msra.mxu0 %v7010_v61 }
0x14d1   :  { %6697 = vmatprep.subr.bf16.mxu0 %v7012_v1 }
0x14d4   :  { %6698 = vmatpush3.bf16.msra.mxu0 %v7012_v1 }
0x14d5   :  { %6703 = vmatprep.subr.bf16.mxu0 %v7014_v58 }
0x158f   :  { %v6693_v23 = vpop.f32.mrf.mxu0 }
0x1590   :  { %v7761_v35 = vadd.f32 %v6693_v23, %v5993_v24 }
0x1591   :  { %v3120_v25 = vpop.f32.mrf.mxu0 }
0x1592   :  { %v7759_v26 = vadd.f32 %v5993_v24, %v3120_v25  ;;  %v3143_v37 = vsel %vm638_vm5, %v7761_v35, 0.0 }
0x1593   :  { %v6694_v32 = vpop.f32.mrf.mxu0 }
0x1594   :  { %v3137_v28 = vsel %vm638_vm5, %v7759_v26, 0.0  ;;  %v7767_v33 = vadd.f32 %v6694_v32, %v5993_v24 }
0x1595   :  { %v3123_v30 = vpop.f32.mrf.mxu0  ;;  %3138 = vadd.xlane.f32.xlu0 %v3137_v28 }
0x1596   :  { %v7765_v31 = vadd.f32 %v5993_v24, %v3123_v30  ;;  %v3146_v38 = vsel %vm638_vm5, %v7767_v33, 0.0 }
0x1598   :  { %v3140_v36 = vsel %vm638_vm5, %v7765_v31, 0.0 }
0x1599   :  { %3141 = vadd.xlane.f32.xlu1 %v3140_v36  ;;  %3144 = vadd.xlane.f32.xlu0 %v3143_v37  ;;  %v7015_v36 = vld [vmem:[#allocation2 + $0x134] sm:$0xff]  }
0x159d   :  { %3147 = vadd.xlane.f32.xlu0 %v3146_v38 }
0x161e   :  { %v3139_v39 = vpop.xlane.xlu0 %3138 }
0x161f   :  { %v3149_v40 = vmul.f32 0.03125, %v3139_v39 }
0x1621   :  { %v3153_v41 = vsub.f32 %v7759_v26, %v3149_v40 }
0x1622   :  { %v3142_v42 = vpop.xlane.xlu1 %3141  ;;  %v3145_v43 = vpop.xlane.xlu0 %3144 }
0x1623   :  { %v3150_v0 = vmul.f32 0.03125, %v3142_v42  ;;  %v3151_v44 = vmul.f32 0.03125, %v3145_v43  ;;  %v3157_v2 = vmul.f32 %v3153_v41, %v3153_v41 }
0x1625   :  { %v3154_v45 = vsub.f32 %v7765_v31, %v3150_v0  ;;  %v3155_v46 = vsub.f32 %v7761_v35, %v3151_v44  ;;  %v3161_v4 = vsel %vm638_vm5, %v3157_v2, 0.0 }
0x1626   :  { %3162 = vadd.xlane.f32.xlu1 %v3161_v4  ;;  %v3148_v48 = vpop.xlane.xlu0 %3147 }
0x1627   :  { %v3152_v47 = vmul.f32 0.03125, %v3148_v48  ;;  %v3158_v49 = vmul.f32 %v3154_v45, %v3154_v45  ;;  %v3159_v50 = vmul.f32 %v3155_v46, %v3155_v46 }
0x1629   :  { %v3156_v51 = vsub.f32 %v7767_v33, %v3152_v47  ;;  %v3164_v52 = vsel %vm638_vm5, %v3158_v49, 0.0  ;;  %v3167_v57 = vsel %vm638_vm5, %v3159_v50, 0.0 }
0x162a   :  { %3165 = vadd.xlane.f32.xlu0 %v3164_v52  ;;  %3168 = vadd.xlane.f32.xlu1 %v3167_v57 }
0x162b   :  { %v3160_v59 = vmul.f32 %v3156_v51, %v3156_v51 }
0x162d   :  { %v3170_v60 = vsel %vm638_vm5, %v3160_v59, 0.0 }
0x162e   :  { %3171 = vadd.xlane.f32.xlu0 %v3170_v60 }
0x16af   :  { %v3163_v14 = vpop.xlane.xlu1 %3162 }
0x16b0   :  { %v3173_v63 = vmul.f32 0.03125, %v3163_v14 }
0x16b2   :  { %v3177_v5 = vadd.f32 1e-05, %v3173_v63 }
0x16b3   :  { %v3169_v9 = vpop.xlane.xlu1 %3168  ;;  %v3166_v6 = vpop.xlane.xlu0 %3165 }
0x16b4   :  { %7112 = vrsqrt.f32 %v3177_v5  ;;  %v3175_v34 = vmul.f32 0.03125, %v3169_v9  ;;  %v3174_v15 = vmul.f32 0.03125, %v3166_v6 }
0x16b6   :  { %v3179_v53 = vadd.f32 1e-05, %v3175_v34  ;;  %v3178_v13 = vadd.f32 1e-05, %v3174_v15 }
0x16b7   :  { %v3172_v54 = vpop.xlane.xlu0 %3171 }
0x16b8   :  { %7114 = vrsqrt.f32 %v3179_v53  ;;  %v3176_v7 = vmul.f32 0.03125, %v3172_v54 }
0x16b9   :  { %7116 = vrsqrt.f32 %v3178_v13 }
0x16ba   :  { %v3180_v55 = vadd.f32 1e-05, %v3176_v7 }
0x16bc   :  { %7118 = vrsqrt.f32 %v3180_v55 }
0x16c1   :  { %v7113_v8 = vpop.eup %7112 }
0x16c2   :  { %v3185_v10 = vmul.f32 %v7113_v8, %v3153_v41 }
0x16c4   :  { %v3193_v18 = vmul.f32 %v5998_v11, %v3185_v10 }
0x16c5   :  { %v7115_v56 = vpop.eup %7114 }
0x16c6   :  { %v7117_v12 = vpop.eup %7116  ;;  %v3187_v16 = vmul.f32 %v7115_v56, %v3155_v46  ;;  %v3201_v22 = vadd.f32 %v5999_v27, %v3193_v18 }
0x16c7   :  { %v3186_v17 = vmul.f32 %v7117_v12, %v3154_v45 }
0x16c8   :  { %v3195_v20 = vmul.f32 %v5998_v11, %v3187_v16 }
0x16c9   :  { %v7119_v29 = vpop.eup %7118  ;;  %v3194_v19 = vmul.f32 %v5998_v11, %v3186_v17 }
0x16ca   :  { %v3188_v21 = vmul.f32 %v7119_v29, %v3156_v51  ;;  %v3203_v32 = vadd.f32 %v5999_v27, %v3195_v20  ;;  %v7826_v20 = vld [vmem:[#allocation4 + $0x6d] sm:$0xff] }
0x16cb   :  { %v3202_v23 = vadd.f32 %v5999_v27, %v3194_v19 }
0x16cc   :  { %v3196_v24 = vmul.f32 %v5998_v11, %v3188_v21 }
0x16cd   :  { %v3205_v25 = vpack.c.bf16 %v3202_v23, %v3201_v22 }
0x16ce   :  { %v3204_v28 = vadd.f32 %v5999_v27, %v3196_v24  ;;  %v7828_v24 = vld [vmem:[#allocation4 + $0x65] sm:$0xff] }
0x16cf   :  { %6699 = vmatprep.mubr.msk.bf16.mxu0 %vm638_vm5, %v3205_v25  ;;  %6715 = vmatprep.mubr.msk.bf16.mxu1 %vm638_vm5, %v3205_v25 }
0x16d0   :  { %v3206_v30 = vpack.c.bf16 %v3204_v28, %v3203_v32  ;;  %v7831_v32 = vld [vmem:[#allocation4 + $0x5d] sm:$0xff] }
0x16d2   :  { %6700 = vmatmul.mubr.msk.bf16.vlgmr.msra.gmra.mxu0 %vm638_vm5, %v3206_v30  ;;  %6716 = vmatmul.mubr.msk.bf16.vlgmr.msra.gmra.mxu1 %vm638_vm5, %v3206_v30 }
0x16d3   :  { %6704 = vmatpush3.bf16.msra.mxu0 %v7014_v58  ;;  %6707 = vmatprep.mubr.msk.bf16.mxu0 %vm638_vm5, %v3205_v25 }
0x16d4   :  { %6705 = vmatprep.subr.bf16.mxu0 %v7015_v36 }
0x16d7   :  { %6706 = vmatpush3.bf16.msra.mxu0 %v7015_v36 }
0x16da   :  { %6708 = vmatmul.mubr.msk.bf16.vlgmr.msra.gmra.mxu0 %vm638_vm5, %v3206_v30 }
0x1792   :  { %v7789_v37 = vpop.f32.mrf.mxu0  ;;  %v6717_v38 = vpop.f32.mrf.mxu1 }
0x1793   :  { %v3280_v16 = vmax.f32 %v7789_v37, 0.0 }
0x1794   :  { %v7791_v39 = vpop.f32.mrf.mxu0  ;;  %v3401_v40 = vpop.f32.mrf.mxu1 }
0x1795   :  { %v3278_v18 = vmax.f32 %v7791_v39, 0.0 }
0x1796   :  { %v7793_v41 = vpop.f32.mrf.mxu0  ;;  %v6718_v42 = vpop.f32.mrf.mxu1 }
0x1797   :  { %6729 = vmatprep.subr.mxu1 %v6718_v42  ;;  %v3281_v6 = vmax.f32 %v7793_v41, 0.0 }
0x1798   :  { %v7795_v43 = vpop.f32.mrf.mxu0  ;;  %v3404_v0 = vpop.f32.mrf.mxu1  ;;  %6730 = vmatpush3.msra.mxu1 %v6718_v42 }
0x1799   :  { %6719 = vmatprep.subr.mxu0 %v3404_v0  ;;  %6731 = vmatprep.subr.mxu1 %v6717_v38  ;;  %v3279_v53 = vmax.f32 %v7795_v43, 0.0  ;;  %v7861_v43 = vld [vmem:[#allocation4 + $0x39] sm:$0xff] }
0x179a   :  { %v6709_v44 = vpop.f32.mrf.mxu0  ;;  %6720 = vmatpush3.msra.mxu0 %v3404_v0  ;;  %6732 = vmatpush3.msra.mxu1 %v6717_v38 }
0x179b   :  { %v3349_v2 = vmax.f32 %v6709_v44, 0.0  ;;  %6721 = vmatprep.subr.mxu0 %v3401_v40 }
0x179c   :  { %v3332_v45 = vpop.f32.mrf.mxu0  ;;  %6722 = vmatpush3.msra.mxu0 %v3401_v40  ;;  %v7836_v40 = vld [vmem:[#allocation4 + $0x55] sm:$0xff] }
0x179d   :  { %v3347_v46 = vmax.f32 %v3332_v45, 0.0  ;;  %3448 = vxpose.xlu0.b32.start [1/2] (short) (narrow) %v3349_v2, 32  ;;  %v3853_v49 = vsel %vm638_vm5, %v3349_v2, 0.0 }
0x179e   :  { %v6710_v4 = vpop.f32.mrf.mxu0 }
0x179f   :  { %v3350_v48 = vmax.f32 %v6710_v4, 0.0  ;;  %3416 = vxpose.xlu1.b32.start [1/2] (short) (narrow) %v3347_v46, 32  ;;  %v3844_v57 = vsel %vm638_vm5, %v3347_v46, 0.0  ;;  %v7843_v46 = vld [vmem:[#allocation4 + $0x51] sm:$0xf]  ;;  %v7850_v4 = vld [vmem:[#allocation4 + $0x49] sm:$0xff] }
0x17a0   :  { %v3335_v47 = vpop.f32.mrf.mxu0 }
0x17a1   :  { %v3854_v50 = vsel %vm638_vm5, %v3350_v48, 0.0  ;;  %v3348_v51 = vmax.f32 %v3335_v47, 0.0  ;;  %3449 = vxpose.xlu0.b32.end [2/2] (short) (narrow) %v3350_v48, 32  ;;  %v7855_v48 = vld [vmem:[#allocation4 + $0x41] sm:$0xff]  ;;  %v7865_v47 = vld [vmem:[#allocation4 + $0x31] sm:$0xff] }
0x17a2   :  { %v3855_v52 = vadd.f32 %v3854_v50, %v3853_v49 }
0x17a3   :  { %v3845_v59 = vsel %vm638_vm5, %v3348_v51, 0.0  ;;  %3417 = vxpose.xlu1.b32.end [2/2] (short) (narrow) %v3348_v51, 32 }
0x17a4   :  { %v3856_v60 = vrot.slane %v3855_v52, 4  ;;  %v3846_v61 = vadd.f32 %v3845_v59, %v3844_v57 }
0x17a6   :  { %v3857_v62 = vadd.f32 %v3856_v60, %v3855_v52  ;;  %v3847_v1 = vrot.slane %v3846_v61, 4  ;;  %v7016_v60 = vld [vmem:[#allocation2 + $0x15c] sm:$0xff]  }
0x17a8   :  { %v3858_v3 = vrot.slane %v3857_v62, 2  ;;  %v3848_v58 = vadd.f32 %v3847_v1, %v3846_v61  ;;  %v7017_v61 = vld [vmem:[#allocation2 + $0x154] sm:$0xff]  }
0x17aa   :  { %v3859_v14 = vadd.f32 %v3858_v3, %v3857_v62  ;;  %v3849_v63 = vrot.slane %v3848_v58, 2 }
0x17ac   :  { %v3860_v5 = vrot.slane %v3859_v14, 1  ;;  %v3850_v9 = vadd.f32 %v3849_v63, %v3848_v58 }
0x17ae   :  { %v3851_v34 = vrot.slane %v3850_v9, 1  ;;  %v7802_v15 = vadd.f32 %v3860_v5, %v3859_v14 }
0x17b0   :  { %v3852_v13 = vadd.f32 %v3851_v34, %v3850_v9  ;;  %v7806_v54 = vmul.f32 %v7802_v15, %v3281_v6  ;;  %v3864_v49 = vmul.f32 %v7802_v15, %v3280_v16 }
0x17b2   :  { %v7810_v7 = vmul.f32 %v3852_v13, %v3279_v53  ;;  %v3862_v45 = vmul.f32 %v3852_v13, %v3278_v18 }
0x1819   :  { %v3464_v55 = vpop.trf.xlu0 }
0x181a   :  { %6733 = vmatprep.mubr.msk.f32.mxu1 %vm2915_vm9, %v3464_v55 }
0x181b   :  { %v3432_v8 = vpop.trf.xlu1 }
0x181c   :  { %6723 = vmatprep.mubr.msk.f32.mxu0 %vm2915_vm9, %v3432_v8 }
0x181d   :  { %v3465_v10 = vpop.trf.xlu0 }
0x181e   :  { %6734 = vmatmul.mubr.msk.f32.vlgmr.msra.gmra.mxu1 %vm2915_vm9, %v3465_v10 }
0x181f   :  { %v3433_v11 = vpop.trf.xlu1 }
0x1820   :  { %6724 = vmatmul.mubr.msk.f32.vlgmr.msra.gmra.mxu0 %vm2915_vm9, %v3433_v11 }
0x1821   :  { %v3466_v56 = vpop.trf.xlu0 }
0x1822   :  { %6736 = vmatprep.mubr.msk.f32.mxu1 %vm2915_vm9, %v3466_v56 }
0x1823   :  { %v3434_v12 = vpop.trf.xlu1 }
0x1824   :  { %6726 = vmatprep.mubr.msk.f32.mxu0 %vm2915_vm9, %v3434_v12 }
0x1825   :  { %v3467_v17 = vpop.trf.xlu0 }
0x1826   :  { %6737 = vmatmul.mubr.msk.f32.gmra.mxu1 %vm2915_vm9, %v3467_v17 }
0x1827   :  { %v3435_v27 = vpop.trf.xlu1  ;;  %6758 = vmatprep.mubr.msk.f32.mxu1 %vm638_vm5, %v3280_v16  ;;  %v6033_v16 = vld [vmem:[#allocation4 + $0x21] ss:$0 sm:$0xff] }
0x1828   :  { %6727 = vmatmul.mubr.msk.f32.gmra.mxu0 %vm2915_vm9, %v3435_v27 }
0x1829   :  { %6747 = vmatprep.mubr.msk.f32.mxu0 %vm638_vm5, %v3278_v18 }
0x18de   :  { %v6735_v29 = vpop.f32.mrf.mxu1 }
0x18df   :  { %v3679_v36 = vmul.f32 %v6735_v29, %v7831_v32 }
0x18e0   :  { %v6725_v19 = vpop.f32.mrf.mxu0  ;;  %v3655_v21 = vpop.f32.mrf.mxu1 }
0x18e1   :  { %v3678_v42 = vmul.f32 %v3655_v21, %v7836_v40  ;;  %v3675_v44 = vmul.f32 %v6725_v19, %v7831_v32 }
0x18e2   :  { %v3558_v22 = vpop.f32.mrf.mxu0 }
0x18e3   :  { %v3674_v2 = vmul.f32 %v3558_v22, %v7836_v40 }
0x18e6   :  { %v6738_v23 = vpop.f32.mrf.mxu1 }
0x18e7   :  { %v3681_v25 = vmul.f32 %v6738_v23, %v7826_v20 }
0x18e8   :  { %v6728_v28 = vpop.f32.mrf.mxu0  ;;  %v3665_v30 = vpop.f32.mrf.mxu1 }
0x18e9   :  { %v3677_v38 = vmul.f32 %v6728_v28, %v7826_v20  ;;  %v3680_v39 = vmul.f32 %v3665_v30, %v7828_v24  ;;  %6750 = vmatprep.subr.mxu1 %v3681_v25 }
0x18ea   :  { %v3568_v41 = vpop.f32.mrf.mxu0  ;;  %6751 = vmatpush3.msra.mxu1 %v3681_v25 }
0x18eb   :  { %v3676_v0 = vmul.f32 %v3568_v41, %v7828_v24  ;;  %6739 = vmatprep.subr.mxu0 %v3677_v38  ;;  %6752 = vmatprep.subr.mxu1 %v3680_v39 }
0x18ec   :  { %6740 = vmatpush3.msra.mxu0 %v3677_v38  ;;  %6753 = vmatpush3.msra.mxu1 %v3680_v39 }
0x18ed   :  { %6741 = vmatprep.subr.mxu0 %v3676_v0  ;;  %6754 = vmatprep.subr.mxu1 %v3679_v36 }
0x18ee   :  { %6742 = vmatpush3.msra.mxu0 %v3676_v0  ;;  %6755 = vmatpush3.msra.mxu1 %v3679_v36 }
0x18ef   :  { %6743 = vmatprep.subr.mxu0 %v3675_v44  ;;  %6756 = vmatprep.subr.mxu1 %v3678_v42 }
0x18f0   :  { %6744 = vmatpush3.msra.mxu0 %v3675_v44  ;;  %6757 = vmatpush3.msra.mxu1 %v3678_v42 }
0x18f1   :  { %6745 = vmatprep.subr.mxu0 %v3674_v2  ;;  %6759 = vmatmul.mubr.msk.f32.vlgmr.msra.gmra.mxu1 %vm638_vm5, %v3281_v6 }
0x18f2   :  { %6746 = vmatpush3.msra.mxu0 %v3674_v2  ;;  %6775 = vmatprep.subr.msk.mxu1 %vm339_vm8, %v7843_v46 }
0x18f3   :  { %6748 = vmatmul.mubr.msk.f32.vlgmr.msra.gmra.mxu0 %vm638_vm5, %v3279_v53  ;;  %6761 = vmatprep.subr.mxu0 %v7850_v4 }
0x18f4   :  { %6762 = vmatpush3.msra.mxu0 %v7850_v4  ;;  %6769 = vmatprep.mubr.msk.f32.mxu0 %vm638_vm5, %v3862_v45 }
0x18f5   :  { %6763 = vmatprep.subr.mxu0 %v7855_v48  ;;  %6776 = vmatpush3.msk.msra.mxu1 %vm339_vm8, %v7843_v46 }
0x18f6   :  { %6764 = vmatpush3.msra.mxu0 %v7855_v48 }
0x18f7   :  { %6765 = vmatprep.subr.mxu0 %v7861_v43 }
0x18f8   :  { %6766 = vmatpush3.msra.mxu0 %v7861_v43 }
0x18f9   :  { %6767 = vmatprep.subr.mxu0 %v7865_v47 }
0x18fa   :  { %6768 = vmatpush3.msra.mxu0 %v7865_v47 }
0x18fb   :  { %6770 = vmatmul.mubr.msk.f32.vlgmr.msra.gmra.mxu0 %vm638_vm5, %v7810_v7  ;;  %6783 = vmatprep.subr.bf16.mxu0 %v7016_v60 }
0x18fc   :  { %6772 = vmatprep.mubr.msk.f32.mxu0 %vm638_vm5, %v3864_v49  ;;  %6784 = vmatpush3.bf16.msra.mxu0 %v7016_v60 }
0x18fd   :  { %6785 = vmatprep.subr.bf16.mxu0 %v7017_v61 }
0x18ff   :  { %6773 = vmatmul.mubr.msk.f32.gmra.mxu0 %vm638_vm5, %v7806_v54 }
0x1900   :  { %6786 = vmatpush3.bf16.msra.mxu0 %v7017_v61 }
0x19b1   :  { %v6760_v62 = vpop.f32.mrf.mxu1 }
0x19b3   :  { %v6749_v50 = vpop.f32.mrf.mxu0  ;;  %v3835_v1 = vpop.f32.mrf.mxu1 }
0x19b5   :  { %v3754_v51 = vpop.f32.mrf.mxu0 }
0x19bb   :  { %v6771_v52 = vpop.f32.mrf.mxu0 }
0x19bd   :  { %v3944_v57 = vpop.f32.mrf.mxu0 }
0x19be   :  { %6777 = vmatprep.mubr.msk.f32.mxu1 %vm966_vm6, %v3944_v57 }
0x19bf   :  { %v6774_v59 = vpop.f32.mrf.mxu0  ;;  %6778 = vmatmul.mubr.msk.f32.vlgmr.msra.gmra.mxu1 %vm966_vm6, %v6771_v52 }
0x19c1   :  { %v3954_v37 = vpop.f32.mrf.mxu0 }
0x19c2   :  { %6780 = vmatprep.mubr.msk.f32.mxu1 %vm966_vm6, %v3954_v37 }
0x19c3   :  { %6781 = vmatmul.mubr.msk.f32.gmra.mxu1 %vm966_vm6, %v6774_v59 }
0x1a7f   :  { %v6779_v3 = vpop.f32.mrf.mxu1 }
0x1a80   :  { %v4047_v58 = vadd.f32 1e-06, %v6779_v3  ;;  %v7018_v3 = vld [vmem:[#allocation2 + $0x16c] sm:$0xff]  }
0x1a81   :  { %v4041_v14 = vpop.f32.mrf.mxu1  ;;  %6791 = vmatprep.subr.bf16.mxu1 %v7018_v3 }
0x1a82   :  { %7120 = vrcp.f32 %v4047_v58  ;;  %v4042_v63 = vadd.f32 1e-06, %v4041_v14  ;;  %v7019_v58 = vld [vmem:[#allocation2 + $0x164] sm:$0xff]   ;;  %6792 = vmatpush3.bf16.msra.mxu1 %v7018_v3 }
0x1a83   :  { %v6782_v5 = vpop.f32.mrf.mxu1  ;;  %6793 = vmatprep.subr.bf16.mxu1 %v7019_v58 }
0x1a84   :  { %7122 = vrcp.f32 %v4042_v63  ;;  %v4057_v9 = vadd.f32 1e-06, %v6782_v5 }
0x1a85   :  { %v4051_v6 = vpop.f32.mrf.mxu1 }
0x1a86   :  { %7124 = vrcp.f32 %v4057_v9  ;;  %v4052_v34 = vadd.f32 1e-06, %v4051_v6  ;;  %6794 = vmatpush3.bf16.msra.mxu1 %v7019_v58 }
0x1a88   :  { %7126 = vrcp.f32 %v4052_v34 }
0x1a8f   :  { %v7121_v15 = vpop.eup %7120 }
0x1a90   :  { %v4065_v54 = vmul.f32 %v7121_v15, %v6749_v50 }
0x1a91   :  { %v7123_v53 = vpop.eup %7122 }
0x1a92   :  { %v4064_v13 = vmul.f32 %v7123_v53, %v3754_v51 }
0x1a93   :  { %v7125_v7 = vpop.eup %7124 }
0x1a94   :  { %v4068_v55 = vpack.c.bf16 %v4065_v54, %v4064_v13  ;;  %v4067_v10 = vmul.f32 %v7125_v7, %v6760_v62 }
0x1a95   :  { %v7127_v8 = vpop.eup %7126 }
0x1a96   :  { %v4066_v11 = vmul.f32 %v7127_v8, %v3835_v1  ;;  %6787 = vmatprep.mubr.msk.bf16.mxu0 %vm638_vm5, %v4068_v55 }
0x1a98   :  { %v4069_v56 = vpack.c.bf16 %v4067_v10, %v4066_v11  ;;  %v6038_v11 = vld [vmem:[#allocation4 + $0x24] ss:$0 sm:$0xff] }
0x1a9a   :  { %6788 = vmatmul.mubr.msk.bf16.vlgmr.msra.gmra.mxu0 %vm638_vm5, %v4069_v56 }
0x1b5a   :  { %v6789_v12 = vpop.f32.mrf.mxu0 }
0x1b5b   :  { %v4140_v22 = vadd.f32 %v6789_v12, %v6033_v16 }
0x1b5c   :  { %v4131_v17 = vpop.f32.mrf.mxu0 }
0x1b5d   :  { %v4132_v18 = vadd.f32 %v6033_v16, %v4131_v17  ;;  %v7895_v36 = vadd.f32 %v4140_v22, %v7761_v35  ;;  %v6039_v17 = vld [vmem:[#allocation4 + $0x25] ss:$0 sm:$0xff] }
0x1b5e   :  { %v6790_v27 = vpop.f32.mrf.mxu0 }
0x1b5f   :  { %v7884_v29 = vadd.f32 %v4132_v18, %v7759_v26  ;;  %v4143_v19 = vadd.f32 %v6790_v27, %v6033_v16 }
0x1b60   :  { %v4134_v21 = vpop.f32.mrf.mxu0 }
0x1b61   :  { %v7887_v23 = vadd.f32 %v4143_v19, %v7767_v33  ;;  %v4135_v25 = vadd.f32 %v6033_v16, %v4134_v21  ;;  %v4152_v28 = vsel %vm638_vm5, %v7884_v29, 0.0  ;;  %v4158_v33 = vsel %vm638_vm5, %v7895_v36, 0.0 }
0x1b62   :  { %4153 = vadd.xlane.f32.xlu0 %v4152_v28 }
0x1b63   :  { %v7892_v30 = vadd.f32 %v4135_v25, %v7765_v31  ;;  %v4161_v38 = vsel %vm638_vm5, %v7887_v23, 0.0 }
0x1b65   :  { %v4155_v26 = vsel %vm638_vm5, %v7892_v30, 0.0 }
0x1b66   :  { %4156 = vadd.xlane.f32.xlu1 %v4155_v26  ;;  %4162 = vadd.xlane.f32.xlu0 %v4161_v38 }
0x1b6a   :  { %4159 = vadd.xlane.f32.xlu1 %v4158_v33 }
0x1beb   :  { %v4154_v39 = vpop.xlane.xlu0 %4153 }
0x1bec   :  { %v4164_v41 = vmul.f32 0.03125, %v4154_v39 }
0x1bee   :  { %v4168_v31 = vsub.f32 %v7884_v29, %v4164_v41 }
0x1bef   :  { %v4157_v42 = vpop.xlane.xlu1 %4156  ;;  %v4163_v0 = vpop.xlane.xlu0 %4162 }
0x1bf0   :  { %v4165_v35 = vmul.f32 0.03125, %v4157_v42  ;;  %v4167_v44 = vmul.f32 0.03125, %v4163_v0  ;;  %v4172_v2 = vmul.f32 %v4168_v31, %v4168_v31  ;;  %v7020_v42 = vld [vmem:[#allocation2 + $0x1ac] sm:$0xff]   ;;  %v7021_v0 = vld [vmem:[#allocation2 + $0x1a4] sm:$0xff]  }
0x1bf1   :  { %6799 = vmatprep.subr.bf16.mxu0 %v7020_v42 }
0x1bf2   :  { %v4169_v45 = vsub.f32 %v7892_v30, %v4165_v35  ;;  %v4171_v49 = vsub.f32 %v7887_v23, %v4167_v44  ;;  %v4176_v50 = vsel %vm638_vm5, %v4172_v2, 0.0  ;;  %6800 = vmatpush3.bf16.msra.mxu0 %v7020_v42  ;;  %v7022_v35 = vld [vmem:[#allocation2 + $0x19c] sm:$0xff]   ;;  %v7023_v44 = vld [vmem:[#allocation2 + $0x194] sm:$0xff]   ;;  %v7024_v2 = vld [vmem:[#allocation2 + $0x18c] sm:$0xff]  }
0x1bf3   :  { %v4160_v51 = vpop.xlane.xlu1 %4159  ;;  %4177 = vadd.xlane.f32.xlu1 %v4176_v50  ;;  %6801 = vmatprep.subr.bf16.mxu0 %v7021_v0  ;;  %v7027_v50 = vld [vmem:[#allocation2 + $0x174] sm:$0xff]  }
0x1bf4   :  { %v4166_v52 = vmul.f32 0.03125, %v4160_v51  ;;  %v4173_v57 = vmul.f32 %v4169_v45, %v4169_v45  ;;  %v4175_v60 = vmul.f32 %v4171_v49, %v4171_v49  ;;  %v6040_v51 = vld [vmem:[#allocation4 + $0x26] ss:$0 sm:$0xff] }
0x1bf6   :  { %v4170_v59 = vsub.f32 %v7895_v36, %v4166_v52  ;;  %v4179_v37 = vsel %vm638_vm5, %v4173_v57, 0.0  ;;  %v4185_v1 = vsel %vm638_vm5, %v4175_v60, 0.0  ;;  %6802 = vmatpush3.bf16.msra.mxu0 %v7021_v0 }
0x1bf7   :  { %4180 = vadd.xlane.f32.xlu0 %v4179_v37  ;;  %6803 = vmatprep.subr.bf16.mxu0 %v7022_v35 }
0x1bf8   :  { %v4174_v61 = vmul.f32 %v4170_v59, %v4170_v59 }
0x1bfa   :  { %v4182_v62 = vsel %vm638_vm5, %v4174_v61, 0.0  ;;  %6804 = vmatpush3.bf16.msra.mxu0 %v7022_v35 }
0x1bfb   :  { %4183 = vadd.xlane.f32.xlu1 %v4182_v62  ;;  %4186 = vadd.xlane.f32.xlu0 %v4185_v1 }
0x1bfc   :  { %6805 = vmatprep.subr.bf16.mxu0 %v7023_v44 }
0x1bfe   :  { %6806 = vmatpush3.bf16.msra.mxu0 %v7023_v44 }
0x1bff   :  { %6807 = vmatprep.subr.bf16.mxu0 %v7024_v2 }
0x1c02   :  { %6808 = vmatpush3.bf16.msra.mxu0 %v7024_v2 }
0x1c7c   :  { %v4178_v14 = vpop.xlane.xlu1 %4177 }
0x1c7d   :  { %v4188_v63 = vmul.f32 0.03125, %v4178_v14 }
0x1c7f   :  { %v4192_v5 = vadd.f32 1e-05, %v4188_v63 }
0x1c80   :  { %v4181_v9 = vpop.xlane.xlu0 %4180 }
0x1c81   :  { %7128 = vrsqrt.f32 %v4192_v5  ;;  %v4189_v6 = vmul.f32 0.03125, %v4181_v9 }
0x1c83   :  { %v4193_v34 = vadd.f32 1e-05, %v4189_v6 }
0x1c84   :  { %v4184_v15 = vpop.xlane.xlu1 %4183  ;;  %v4187_v53 = vpop.xlane.xlu0 %4186 }
0x1c85   :  { %7130 = vrsqrt.f32 %v4193_v34  ;;  %v4190_v13 = vmul.f32 0.03125, %v4184_v15  ;;  %v4191_v54 = vmul.f32 0.03125, %v4187_v53 }
0x1c87   :  { %v4194_v7 = vadd.f32 1e-05, %v4190_v13  ;;  %v4195_v55 = vadd.f32 1e-05, %v4191_v54 }
0x1c89   :  { %7132 = vrsqrt.f32 %v4194_v7 }
0x1c8a   :  { %7134 = vrsqrt.f32 %v4195_v55 }
0x1c8e   :  { %v7129_v8 = vpop.eup %7128 }
0x1c8f   :  { %v4200_v10 = vmul.f32 %v7129_v8, %v4168_v31 }
0x1c91   :  { %v4208_v16 = vmul.f32 %v6038_v11, %v4200_v10 }
0x1c92   :  { %v7131_v56 = vpop.eup %7130 }
0x1c93   :  { %v4201_v12 = vmul.f32 %v7131_v56, %v4169_v45  ;;  %v4216_v22 = vadd.f32 %v6039_v17, %v4208_v16  ;;  %v7025_v45 = vld [vmem:[#allocation2 + $0x184] sm:$0xff]  }
0x1c94   :  { %6809 = vmatprep.subr.bf16.mxu0 %v7025_v45 }
0x1c95   :  { %v4209_v18 = vmul.f32 %v6038_v11, %v4201_v12  ;;  %6810 = vmatpush3.bf16.msra.mxu0 %v7025_v45  ;;  %v6045_v45 = vld [vmem:[#allocation4 + $0x27] ss:$0 sm:$0xff] }
0x1c96   :  { %v7133_v27 = vpop.eup %7132 }
0x1c97   :  { %v7135_v19 = vpop.eup %7134  ;;  %v4202_v21 = vmul.f32 %v7133_v27, %v4170_v59  ;;  %v4217_v25 = vadd.f32 %v6039_v17, %v4209_v18 }
0x1c98   :  { %v4203_v28 = vmul.f32 %v7135_v19, %v4171_v49  ;;  %v7026_v49 = vld [vmem:[#allocation2 + $0x17c] sm:$0xff]  }
0x1c99   :  { %v4210_v26 = vmul.f32 %v6038_v11, %v4202_v21  ;;  %v4220_v38 = vpack.c.bf16 %v4217_v25, %v4216_v22  ;;  %6811 = vmatprep.subr.bf16.mxu0 %v7026_v49 }
0x1c9a   :  { %v4211_v33 = vmul.f32 %v6038_v11, %v4203_v28  ;;  %6812 = vmatpush3.bf16.msra.mxu0 %v7026_v49 }
0x1c9b   :  { %v4218_v39 = vadd.f32 %v6039_v17, %v4210_v26  ;;  %6795 = vmatprep.mubr.msk.bf16.mxu1 %vm638_vm5, %v4220_v38  ;;  %6813 = vmatprep.subr.bf16.mxu0 %v7027_v50 }
0x1c9c   :  { %v4219_v41 = vadd.f32 %v6039_v17, %v4211_v33 }
0x1c9e   :  { %v4221_v31 = vpack.c.bf16 %v4219_v41, %v4218_v39  ;;  %6814 = vmatpush3.bf16.msra.mxu0 %v7027_v50 }
0x1ca0   :  { %6796 = vmatmul.mubr.msk.bf16.vlgmr.msra.gmra.mxu1 %vm638_vm5, %v4221_v31 }
0x1d60   :  { %v6797_v52 = vpop.f32.mrf.mxu1 }
0x1d61   :  { %v4292_v57 = vadd.f32 %v6797_v52, %v6040_v51 }
0x1d62   :  { %v4283_v59 = vpop.f32.mrf.mxu1 }
0x1d63   :  { %v4304_v37 = vmul.f32 0.044715, %v4292_v57  ;;  %v4284_v60 = vadd.f32 %v6040_v51, %v4283_v59  ;;  %v4300_v39 = vmul.f32 0.5, %v4292_v57 }
0x1d64   :  { %v6798_v61 = vpop.f32.mrf.mxu1 }
0x1d65   :  { %v4308_v62 = vmul.f32 %v4304_v37, %v4292_v57  ;;  %v4302_v1 = vmul.f32 0.044715, %v4284_v60  ;;  %v4295_v3 = vadd.f32 %v6798_v61, %v6040_v51  ;;  %v4298_v26 = vmul.f32 0.5, %v4284_v60 }
0x1d66   :  { %v4286_v58 = vpop.f32.mrf.mxu1 }
0x1d67   :  { %v4312_v14 = vmul.f32 %v4308_v62, %v4292_v57  ;;  %v4306_v63 = vmul.f32 %v4302_v1, %v4284_v60  ;;  %v4305_v5 = vmul.f32 0.044715, %v4295_v3  ;;  %v4287_v9 = vadd.f32 %v6040_v51, %v4286_v58 }
0x1d68   :  { %v4301_v25 = vmul.f32 0.5, %v4295_v3 }
0x1d69   :  { %v4316_v6 = vadd.f32 %v4312_v14, %v4292_v57  ;;  %v4310_v34 = vmul.f32 %v4306_v63, %v4284_v60  ;;  %v4309_v15 = vmul.f32 %v4305_v5, %v4295_v3  ;;  %v4303_v53 = vmul.f32 0.044715, %v4287_v9 }
0x1d6a   :  { %v4299_v38 = vmul.f32 0.5, %v4287_v9 }
0x1d6b   :  { %v4313_v13 = vmul.f32 %v4309_v15, %v4295_v3  ;;  %v4307_v54 = vmul.f32 %v4303_v53, %v4287_v9  ;;  %v4314_v7 = vadd.f32 %v4310_v34, %v4284_v60  ;;  %v4320_v55 = vmul.f32 0.7978846, %v4316_v6 }
0x1d6d   :  { %v4317_v8 = vadd.f32 %v4313_v13, %v4295_v3  ;;  %v4311_v10 = vmul.f32 %v4307_v54, %v4287_v9  ;;  %v4318_v11 = vmul.f32 0.7978846, %v4314_v7 }
0x1d6f   :  { %v4321_v56 = vmul.f32 0.7978846, %v4317_v8  ;;  %v4315_v12 = vadd.f32 %v4311_v10, %v4287_v9  ;;  %7136 = vtanh.f32 %v4318_v11 }
0x1d70   :  { %7138 = vtanh.f32 %v4320_v55 }
0x1d71   :  { %7140 = vtanh.f32 %v4321_v56  ;;  %v4319_v16 = vmul.f32 0.7978846, %v4315_v12 }
0x1d73   :  { %7142 = vtanh.f32 %v4319_v16 }
0x1d7c   :  { %v7137_v17 = vpop.eup %7136 }
0x1d7d   :  { %v7139_v18 = vpop.eup %7138  ;;  %v4326_v19 = vadd.f32 1.0, %v7137_v17  ;;  %v7028_v17 = vld [vmem:[#allocation2 + $0x1bc] sm:$0xff]  }
0x1d7e   :  { %v7141_v27 = vpop.eup %7140  ;;  %v4328_v28 = vadd.f32 1.0, %v7139_v18  ;;  %v7029_v18 = vld [vmem:[#allocation2 + $0x1b4] sm:$0xff]   ;;  %6819 = vmatprep.subr.bf16.mxu1 %v7028_v17 }
0x1d7f   :  { %v4329_v21 = vadd.f32 1.0, %v7141_v27  ;;  %v4330_v31 = vmul.f32 %v4326_v19, %v4298_v26  ;;  %6820 = vmatpush3.bf16.msra.mxu1 %v7028_v17  ;;  %v7030_v27 = vld [vmem:[#allocation2 + $0x1cc] sm:$0xff]  }
0x1d80   :  { %v7143_v22 = vpop.eup %7142  ;;  %v4332_v0 = vmul.f32 %v4328_v28, %v4300_v39  ;;  %6821 = vmatprep.subr.bf16.mxu1 %v7029_v18 }
0x1d81   :  { %v4327_v33 = vadd.f32 1.0, %v7143_v22  ;;  %v4333_v41 = vmul.f32 %v4329_v21, %v4301_v25 }
0x1d83   :  { %v4331_v42 = vmul.f32 %v4327_v33, %v4299_v38  ;;  %v4335_v44 = vpack.c.bf16 %v4333_v41, %v4332_v0  ;;  %6822 = vmatpush3.bf16.msra.mxu1 %v7029_v18 }
0x1d84   :  { %6827 = vmatprep.subr.bf16.mxu1 %v7030_v27 }
0x1d85   :  { %v4334_v35 = vpack.c.bf16 %v4331_v42, %v4330_v31 }
0x1d87   :  { %6815 = vmatprep.mubr.bf16.mxu0 %v4334_v35 }
0x1d88   :  { %6816 = vmatmul.mubr.bf16.vlgmr.msra.gmra.mxu0 %v4335_v44  ;;  %v6054_v44 = vld [vmem:[#allocation4 + $0x29] ss:$0 sm:$0xff] }
0x1e48   :  { %v6817_v2 = vpop.f32.mrf.mxu0 }
0x1e49   :  { %v4448_v50 = vadd.f32 %v6817_v2, %v6045_v45 }
0x1e4a   :  { %v4439_v49 = vpop.f32.mrf.mxu0 }
0x1e4b   :  { %v4440_v51 = vadd.f32 %v6045_v45, %v4439_v49  ;;  %v7917_v57 = vadd.f32 %v4448_v50, %v7895_v36 }
0x1e4c   :  { %v6818_v52 = vpop.f32.mrf.mxu0 }
0x1e4d   :  { %v7914_v59 = vadd.f32 %v4440_v51, %v7884_v29  ;;  %v4451_v60 = vadd.f32 %v6818_v52, %v6045_v45  ;;  %v4466_v58 = vsel %vm638_vm5, %v7917_v57, 0.0  ;;  %v6055_v52 = vld [vmem:[#allocation4 + $0x2a] ss:$0 sm:$0xff] }
0x1e4e   :  { %v4442_v37 = vpop.f32.mrf.mxu0 }
0x1e4f   :  { %v4443_v61 = vadd.f32 %v6045_v45, %v4442_v37  ;;  %v4460_v62 = vsel %vm638_vm5, %v7914_v59, 0.0  ;;  %v7925_v3 = vadd.f32 %v4451_v60, %v7887_v23 }
0x1e50   :  { %4461 = vadd.xlane.f32.xlu1 %v4460_v62 }
0x1e51   :  { %v7922_v1 = vadd.f32 %v4443_v61, %v7892_v30  ;;  %v4469_v36 = vsel %vm638_vm5, %v7925_v3, 0.0 }
0x1e53   :  { %v4463_v29 = vsel %vm638_vm5, %v7922_v1, 0.0 }
0x1e54   :  { %4464 = vadd.xlane.f32.xlu0 %v4463_v29  ;;  %4467 = vadd.xlane.f32.xlu1 %v4466_v58 }
0x1e58   :  { %4470 = vadd.xlane.f32.xlu0 %v4469_v36 }
0x1ed9   :  { %v4462_v14 = vpop.xlane.xlu1 %4461 }
0x1eda   :  { %v4472_v63 = vmul.f32 0.03125, %v4462_v14 }
0x1edc   :  { %v4476_v30 = vsub.f32 %v7914_v59, %v4472_v63 }
0x1edd   :  { %v4465_v5 = vpop.xlane.xlu0 %4464  ;;  %v4468_v9 = vpop.xlane.xlu1 %4467 }
0x1ede   :  { %v4473_v23 = vmul.f32 0.03125, %v4465_v5  ;;  %v4474_v6 = vmul.f32 0.03125, %v4468_v9  ;;  %v4480_v34 = vmul.f32 %v4476_v30, %v4476_v30  ;;  %v7031_v9 = vld [vmem:[#allocation2 + $0x1c4] sm:$0xff]  }
0x1ee0   :  { %v4477_v15 = vsub.f32 %v7922_v1, %v4473_v23  ;;  %v4478_v53 = vsub.f32 %v7917_v57, %v4474_v6  ;;  %v4484_v13 = vsel %vm638_vm5, %v4480_v34, 0.0  ;;  %v7032_v23 = vld [vmem:[#allocation2 + $0x1dc] sm:$0xff]   ;;  %v7033_v6 = vld [vmem:[#allocation2 + $0x1d4] sm:$0xff]  }
0x1ee1   :  { %v4471_v54 = vpop.xlane.xlu0 %4470  ;;  %4485 = vadd.xlane.f32.xlu1 %v4484_v13 }
0x1ee2   :  { %v4475_v7 = vmul.f32 0.03125, %v4471_v54  ;;  %v4481_v55 = vmul.f32 %v4477_v15, %v4477_v15  ;;  %v4482_v8 = vmul.f32 %v4478_v53, %v4478_v53 }
0x1ee4   :  { %v4479_v10 = vsub.f32 %v7925_v3, %v4475_v7  ;;  %v4487_v11 = vsel %vm638_vm5, %v4481_v55, 0.0  ;;  %v4490_v56 = vsel %vm638_vm5, %v4482_v8, 0.0 }
0x1ee5   :  { %4488 = vadd.xlane.f32.xlu0 %v4487_v11  ;;  %4491 = vadd.xlane.f32.xlu1 %v4490_v56 }
0x1ee6   :  { %v4483_v12 = vmul.f32 %v4479_v10, %v4479_v10 }
0x1ee8   :  { %v4493_v16 = vsel %vm638_vm5, %v4483_v12, 0.0 }
0x1ee9   :  { %4494 = vadd.xlane.f32.xlu0 %v4493_v16 }
0x1f6a   :  { %v4486_v19 = vpop.xlane.xlu1 %4485 }
0x1f6b   :  { %v4496_v21 = vmul.f32 0.03125, %v4486_v19 }
0x1f6d   :  { %v4500_v22 = vadd.f32 1e-05, %v4496_v21 }
0x1f6e   :  { %v4489_v25 = vpop.xlane.xlu0 %4488  ;;  %v4492_v28 = vpop.xlane.xlu1 %4491 }
0x1f6f   :  { %7144 = vrsqrt.f32 %v4500_v22  ;;  %v4497_v26 = vmul.f32 0.03125, %v4489_v25  ;;  %v4498_v38 = vmul.f32 0.03125, %v4492_v28 }
0x1f71   :  { %v4501_v33 = vadd.f32 1e-05, %v4497_v26  ;;  %v4502_v39 = vadd.f32 1e-05, %v4498_v38 }
0x1f72   :  { %v4495_v41 = vpop.xlane.xlu0 %4494 }
0x1f73   :  { %7146 = vrsqrt.f32 %v4501_v33  ;;  %v4499_v31 = vmul.f32 0.03125, %v4495_v41 }
0x1f74   :  { %7148 = vrsqrt.f32 %v4502_v39 }
0x1f75   :  { %v4503_v42 = vadd.f32 1e-05, %v4499_v31 }
0x1f77   :  { %7150 = vrsqrt.f32 %v4503_v42 }
0x1f7c   :  { %v7145_v0 = vpop.eup %7144 }
0x1f7d   :  { %v4508_v35 = vmul.f32 %v7145_v0, %v4476_v30 }
0x1f7f   :  { %v4516_v50 = vmul.f32 %v6054_v44, %v4508_v35 }
0x1f80   :  { %v7147_v2 = vpop.eup %7146 }
0x1f81   :  { %v7149_v45 = vpop.eup %7148  ;;  %v4509_v49 = vmul.f32 %v7147_v2, %v4477_v15  ;;  %v4524_v62 = vadd.f32 %v6055_v52, %v4516_v50 }
0x1f82   :  { %v4510_v51 = vmul.f32 %v7149_v45, %v4478_v53 }
0x1f83   :  { %v4517_v37 = vmul.f32 %v6054_v44, %v4509_v49 }
0x1f84   :  { %v7151_v60 = vpop.eup %7150  ;;  %v4518_v58 = vmul.f32 %v6054_v44, %v4510_v51 }
0x1f85   :  { %v4511_v61 = vmul.f32 %v7151_v60, %v4479_v10  ;;  %v4525_v29 = vadd.f32 %v6055_v52, %v4517_v37 }
0x1f86   :  { %v4526_v63 = vadd.f32 %v6055_v52, %v4518_v58 }
0x1f87   :  { %v4528_v36 = vpack.c.bf16 %v4525_v29, %v4524_v62  ;;  %v4519_v14 = vmul.f32 %v6054_v44, %v4511_v61 }
0x1f89   :  { %6823 = vmatprep.mubr.msk.bf16.mxu1 %vm638_vm5, %v4528_v36  ;;  %v4527_v5 = vadd.f32 %v6055_v52, %v4519_v14 }
0x1f8b   :  { %v4529_v30 = vpack.c.bf16 %v4527_v5, %v4526_v63 }
0x1f8d   :  { %6824 = vmatmul.mubr.msk.bf16.vlgmr.msra.gmra.mxu1 %vm638_vm5, %v4529_v30 }
0x1f8e   :  { %6828 = vmatpush3.bf16.msra.mxu1 %v7030_v27  ;;  %6831 = vmatprep.mubr.msk.bf16.mxu1 %vm638_vm5, %v4528_v36 }
0x1f8f   :  { %6829 = vmatprep.subr.bf16.mxu1 %v7031_v9 }
0x1f92   :  { %6830 = vmatpush3.bf16.msra.mxu1 %v7031_v9 }
0x1f93   :  { %6835 = vmatprep.subr.bf16.mxu1 %v7032_v23 }
0x1f95   :  { %6832 = vmatmul.mubr.msk.bf16.vlgmr.msra.gmra.mxu1 %vm638_vm5, %v4529_v30 }
0x1f96   :  { %6836 = vmatpush3.bf16.msra.mxu1 %v7032_v23  ;;  %6839 = vmatprep.mubr.msk.bf16.mxu1 %vm638_vm5, %v4528_v36 }
0x1f97   :  { %6837 = vmatprep.subr.bf16.mxu1 %v7033_v6 }
0x1f9a   :  { %6838 = vmatpush3.bf16.msra.mxu1 %v7033_v6 }
0x1f9d   :  { %6840 = vmatmul.mubr.msk.bf16.vlgmr.msra.gmra.mxu1 %vm638_vm5, %v4529_v30 }
0x204d   :  { %v7947_v34 = vpop.f32.mrf.mxu1 }
0x204e   :  { %v4603_v14 = vmax.f32 %v7947_v34, 0.0 }
0x204f   :  { %v7949_v15 = vpop.f32.mrf.mxu1 }
0x2050   :  { %v4601_v5 = vmax.f32 %v7949_v15, 0.0 }
0x2051   :  { %v7951_v53 = vpop.f32.mrf.mxu1 }
0x2052   :  { %v4604_v2 = vmax.f32 %v7951_v53, 0.0 }
0x2053   :  { %v7953_v13 = vpop.f32.mrf.mxu1 }
0x2054   :  { %v4602_v50 = vmax.f32 %v7953_v13, 0.0 }
0x2055   :  { %v6833_v54 = vpop.f32.mrf.mxu1 }
0x2056   :  { %v4672_v7 = vmax.f32 %v6833_v54, 0.0 }
0x2057   :  { %v4655_v55 = vpop.f32.mrf.mxu1 }
0x2058   :  { %v4670_v8 = vmax.f32 %v4655_v55, 0.0  ;;  %4771 = vxpose.xlu0.b32.start [1/2] (short) (narrow) %v4672_v7, 32  ;;  %v5176_v12 = vsel %vm638_vm5, %v4672_v7, 0.0 }
0x2059   :  { %v6834_v10 = vpop.f32.mrf.mxu1 }
0x205a   :  { %v4673_v11 = vmax.f32 %v6834_v10, 0.0  ;;  %4739 = vxpose.xlu1.b32.start [1/2] (short) (narrow) %v4670_v8, 32  ;;  %v5167_v19 = vsel %vm638_vm5, %v4670_v8, 0.0 }
0x205b   :  { %v4658_v56 = vpop.f32.mrf.mxu1 }
0x205c   :  { %v5177_v16 = vsel %vm638_vm5, %v4673_v11, 0.0  ;;  %v4671_v17 = vmax.f32 %v4658_v56, 0.0  ;;  %4772 = vxpose.xlu0.b32.end [2/2] (short) (narrow) %v4673_v11, 32 }
0x205d   :  { %v5178_v18 = vadd.f32 %v5177_v16, %v5176_v12  ;;  %v6841_v27 = vpop.f32.mrf.mxu1  ;;  %v7034_v16 = vld [vmem:[#allocation2 + $0x1ec] sm:$0xff]  }
0x205e   :  { %v5168_v21 = vsel %vm638_vm5, %v4671_v17, 0.0  ;;  %4740 = vxpose.xlu1.b32.end [2/2] (short) (narrow) %v4671_v17, 32  ;;  %v7035_v17 = vld [vmem:[#allocation2 + $0x1e4] sm:$0xff]  }
0x205f   :  { %v5179_v22 = vrot.slane %v5178_v18, 4  ;;  %v5169_v25 = vadd.f32 %v5168_v21, %v5167_v19  ;;  %v4724_v28 = vpop.f32.mrf.mxu1 }
0x2061   :  { %v5180_v26 = vadd.f32 %v5179_v22, %v5178_v18  ;;  %v5170_v38 = vrot.slane %v5169_v25, 4  ;;  %v6842_v33 = vpop.f32.mrf.mxu1 }
0x2062   :  { %6853 = vmatprep.subr.mxu0 %v6842_v33 }
0x2063   :  { %v5181_v39 = vrot.slane %v5180_v26, 2  ;;  %v5171_v41 = vadd.f32 %v5170_v38, %v5169_v25  ;;  %v4727_v31 = vpop.f32.mrf.mxu1  ;;  %6854 = vmatpush3.msra.mxu0 %v6842_v33 }
0x2064   :  { %6843 = vmatprep.subr.mxu1 %v4727_v31  ;;  %6855 = vmatprep.subr.mxu0 %v6841_v27 }
0x2065   :  { %v5182_v42 = vadd.f32 %v5181_v39, %v5180_v26  ;;  %v5172_v0 = vrot.slane %v5171_v41, 2  ;;  %6844 = vmatpush3.msra.mxu1 %v4727_v31  ;;  %6856 = vmatpush3.msra.mxu0 %v6841_v27 }
0x2066   :  { %6845 = vmatprep.subr.mxu1 %v4724_v28 }
0x2067   :  { %v5183_v35 = vrot.slane %v5182_v42, 1  ;;  %v5173_v44 = vadd.f32 %v5172_v0, %v5171_v41  ;;  %6846 = vmatpush3.msra.mxu1 %v4724_v28 }
0x2069   :  { %v5174_v45 = vrot.slane %v5173_v44, 1  ;;  %v7960_v49 = vadd.f32 %v5183_v35, %v5182_v42 }
0x206b   :  { %v5175_v51 = vadd.f32 %v5174_v45, %v5173_v44  ;;  %v7964_v52 = vmul.f32 %v7960_v49, %v4604_v2 }
0x206d   :  { %v7966_v37 = vmul.f32 %v5175_v51, %v4602_v50 }
0x20d4   :  { %v4787_v60 = vpop.trf.xlu0 }
0x20d5   :  { %6857 = vmatprep.mubr.msk.f32.mxu0 %vm2915_vm9, %v4787_v60 }
0x20d6   :  { %v4755_v61 = vpop.trf.xlu1 }
0x20d7   :  { %6847 = vmatprep.mubr.msk.f32.mxu1 %vm2915_vm9, %v4755_v61 }
0x20d8   :  { %v4788_v62 = vpop.trf.xlu0 }
0x20d9   :  { %6858 = vmatmul.mubr.msk.f32.vlgmr.msra.gmra.mxu0 %vm2915_vm9, %v4788_v62 }
0x20da   :  { %v4756_v29 = vpop.trf.xlu1 }
0x20db   :  { %6848 = vmatmul.mubr.msk.f32.vlgmr.msra.gmra.mxu1 %vm2915_vm9, %v4756_v29 }
0x20dc   :  { %v4789_v58 = vpop.trf.xlu0 }
0x20dd   :  { %6860 = vmatprep.mubr.msk.f32.mxu0 %vm2915_vm9, %v4789_v58 }
0x20de   :  { %v4757_v36 = vpop.trf.xlu1 }
0x20df   :  { %6850 = vmatprep.mubr.msk.f32.mxu1 %vm2915_vm9, %v4757_v36 }
0x20e0   :  { %v4790_v63 = vpop.trf.xlu0 }
0x20e1   :  { %6861 = vmatmul.mubr.msk.f32.gmra.mxu0 %vm2915_vm9, %v4790_v63 }
0x20e2   :  { %6882 = vmatprep.mubr.msk.f32.mxu0 %vm638_vm5, %v4603_v14  ;;  %v4758_v30 = vpop.trf.xlu1 }
0x20e3   :  { %6851 = vmatmul.mubr.msk.f32.gmra.mxu1 %vm2915_vm9, %v4758_v30 }
0x20e4   :  { %6871 = vmatprep.mubr.msk.f32.mxu1 %vm638_vm5, %v4601_v5 }
0x2199   :  { %v6859_v9 = vpop.f32.mrf.mxu0 }
0x219a   :  { %v5002_v55 = vmul.f32 %v6859_v9, %v7831_v32 }
0x219b   :  { %v6849_v23 = vpop.f32.mrf.mxu1  ;;  %v4978_v6 = vpop.f32.mrf.mxu0 }
0x219c   :  { %v5001_v11 = vmul.f32 %v4978_v6, %v7836_v40  ;;  %v4998_v12 = vmul.f32 %v6849_v23, %v7831_v32  ;;  %v5187_v32 = vmul.f32 %v7960_v49, %v4603_v14 }
0x219d   :  { %v4881_v53 = vpop.f32.mrf.mxu1 }
0x21a1   :  { %v6862_v13 = vpop.f32.mrf.mxu0 }
0x21a2   :  { %v5004_v54 = vmul.f32 %v6862_v13, %v7826_v20 }
0x21a3   :  { %v6852_v34 = vpop.f32.mrf.mxu1  ;;  %v4988_v7 = vpop.f32.mrf.mxu0 }
0x21a4   :  { %v5000_v15 = vmul.f32 %v6852_v34, %v7826_v20  ;;  %v5003_v8 = vmul.f32 %v4988_v7, %v7828_v24  ;;  %6874 = vmatprep.subr.mxu0 %v5004_v54  ;;  %v4997_v20 = vmul.f32 %v4881_v53, %v7836_v40 }
0x21a5   :  { %v4891_v10 = vpop.f32.mrf.mxu1  ;;  %6875 = vmatpush3.msra.mxu0 %v5004_v54 }
0x21a6   :  { %v4999_v56 = vmul.f32 %v4891_v10, %v7828_v24  ;;  %6863 = vmatprep.subr.mxu1 %v5000_v15  ;;  %6876 = vmatprep.subr.mxu0 %v5003_v8  ;;  %v5185_v24 = vmul.f32 %v5175_v51, %v4601_v5  ;;  %v6089_v51 = vld [vmem:[#allocation4 + $0x28] ss:$0 sm:$0xff] }
0x21a7   :  { %6864 = vmatpush3.msra.mxu1 %v5000_v15  ;;  %6877 = vmatpush3.msra.mxu0 %v5003_v8 }
0x21a8   :  { %6865 = vmatprep.subr.mxu1 %v4999_v56  ;;  %6878 = vmatprep.subr.mxu0 %v5002_v55 }
0x21a9   :  { %6866 = vmatpush3.msra.mxu1 %v4999_v56  ;;  %6879 = vmatpush3.msra.mxu0 %v5002_v55 }
0x21aa   :  { %6867 = vmatprep.subr.mxu1 %v4998_v12  ;;  %6880 = vmatprep.subr.mxu0 %v5001_v11 }
0x21ab   :  { %6868 = vmatpush3.msra.mxu1 %v4998_v12  ;;  %6881 = vmatpush3.msra.mxu0 %v5001_v11 }
0x21ac   :  { %6869 = vmatprep.subr.mxu1 %v4997_v20  ;;  %6883 = vmatmul.mubr.msk.f32.vlgmr.msra.gmra.mxu0 %vm638_vm5, %v4604_v2 }
0x21ad   :  { %6870 = vmatpush3.msra.mxu1 %v4997_v20  ;;  %6899 = vmatprep.subr.msk.mxu0 %vm339_vm8, %v7843_v46 }
0x21ae   :  { %6872 = vmatmul.mubr.msk.f32.vlgmr.msra.gmra.mxu1 %vm638_vm5, %v4602_v50  ;;  %6885 = vmatprep.subr.mxu1 %v7850_v4 }
0x21af   :  { %6886 = vmatpush3.msra.mxu1 %v7850_v4  ;;  %6893 = vmatprep.mubr.msk.f32.mxu1 %vm638_vm5, %v5185_v24 }
0x21b0   :  { %6887 = vmatprep.subr.mxu1 %v7855_v48  ;;  %6900 = vmatpush3.msk.msra.mxu0 %vm339_vm8, %v7843_v46  ;;  %vm5859_vm8 = vcmask 80896  }
0x21b1   :  { %6888 = vmatpush3.msra.mxu1 %v7855_v48 }
0x21b2   :  { %6889 = vmatprep.subr.mxu1 %v7861_v43 }
0x21b3   :  { %6890 = vmatpush3.msra.mxu1 %v7861_v43 }
0x21b4   :  { %6891 = vmatprep.subr.mxu1 %v7865_v47 }
0x21b5   :  { %6892 = vmatpush3.msra.mxu1 %v7865_v47 }
0x21b6   :  { %6894 = vmatmul.mubr.msk.f32.vlgmr.msra.gmra.mxu1 %vm638_vm5, %v7966_v37  ;;  %6907 = vmatprep.subr.bf16.mxu1 %v7034_v16 }
0x21b7   :  { %6896 = vmatprep.mubr.msk.f32.mxu1 %vm638_vm5, %v5187_v32  ;;  %6908 = vmatpush3.bf16.msra.mxu1 %v7034_v16 }
0x21b8   :  { %6909 = vmatprep.subr.bf16.mxu1 %v7035_v17 }
0x21ba   :  { %6897 = vmatmul.mubr.msk.f32.gmra.mxu1 %vm638_vm5, %v7964_v52 }
0x21bb   :  { %6910 = vmatpush3.bf16.msra.mxu1 %v7035_v17 }
0x226c   :  { %v6884_v18 = vpop.f32.mrf.mxu0 }
0x226e   :  { %v6873_v40 = vpop.f32.mrf.mxu1  ;;  %v5158_v27 = vpop.f32.mrf.mxu0 }
0x2270   :  { %v5077_v46 = vpop.f32.mrf.mxu1 }
0x2276   :  { %v6895_v4 = vpop.f32.mrf.mxu1 }
0x2278   :  { %v5267_v48 = vpop.f32.mrf.mxu1 }
0x2279   :  { %6901 = vmatprep.mubr.msk.f32.mxu0 %vm966_vm6, %v5267_v48 }
0x227a   :  { %v6898_v43 = vpop.f32.mrf.mxu1  ;;  %6902 = vmatmul.mubr.msk.f32.vlgmr.msra.gmra.mxu0 %vm966_vm6, %v6895_v4  ;;  %v7037_v4 = vld [vmem:[#allocation2 + $0x1f4] sm:$0xff]  }
0x227c   :  { %v5277_v47 = vpop.f32.mrf.mxu1 }
0x227d   :  { %6904 = vmatprep.mubr.msk.f32.mxu0 %vm966_vm6, %v5277_v47 }
0x227e   :  { %6905 = vmatmul.mubr.msk.f32.gmra.mxu0 %vm966_vm6, %v6898_v43 }
0x233a   :  { %v6903_v19 = vpop.f32.mrf.mxu0 }
0x233b   :  { %v5370_v21 = vadd.f32 1e-06, %v6903_v19 }
0x233c   :  { %v5364_v22 = vpop.f32.mrf.mxu0 }
0x233d   :  { %7152 = vrcp.f32 %v5370_v21  ;;  %v5365_v25 = vadd.f32 1e-06, %v5364_v22 }
0x233e   :  { %v6906_v28 = vpop.f32.mrf.mxu0 }
0x233f   :  { %7154 = vrcp.f32 %v5365_v25  ;;  %v5380_v26 = vadd.f32 1e-06, %v6906_v28 }
0x2340   :  { %v5374_v38 = vpop.f32.mrf.mxu0 }
0x2341   :  { %7156 = vrcp.f32 %v5380_v26  ;;  %v5375_v33 = vadd.f32 1e-06, %v5374_v38 }
0x2343   :  { %7158 = vrcp.f32 %v5375_v33  ;;  %v6094_v33 = vld [vmem:[#allocation4 + $0x2b] ss:$0 sm:$0xff] }
0x234a   :  { %v7153_v39 = vpop.eup %7152 }
0x234b   :  { %v5388_v42 = vmul.f32 %v7153_v39, %v6873_v40 }
0x234c   :  { %v7155_v41 = vpop.eup %7154 }
0x234d   :  { %v5387_v31 = vmul.f32 %v7155_v41, %v5077_v46  ;;  %v7036_v46 = vld [vmem:[#allocation2 + $0x1fc] sm:$0xff]  }
0x234e   :  { %v7157_v0 = vpop.eup %7156  ;;  %6915 = vmatprep.subr.bf16.mxu0 %v7036_v46 }
0x234f   :  { %v5391_v35 = vpack.c.bf16 %v5388_v42, %v5387_v31  ;;  %v5390_v2 = vmul.f32 %v7157_v0, %v6884_v18  ;;  %6916 = vmatpush3.bf16.msra.mxu0 %v7036_v46  ;;  %v6095_v42 = vld [vmem:[#allocation4 + $0x2c] ss:$0 sm:$0xff] }
0x2350   :  { %v7159_v44 = vpop.eup %7158  ;;  %6917 = vmatprep.subr.bf16.mxu0 %v7037_v4 }
0x2351   :  { %v5389_v45 = vmul.f32 %v7159_v44, %v5158_v27  ;;  %6911 = vmatprep.mubr.msk.bf16.mxu1 %vm638_vm5, %v5391_v35 }
0x2353   :  { %v5392_v49 = vpack.c.bf16 %v5390_v2, %v5389_v45  ;;  %6918 = vmatpush3.bf16.msra.mxu0 %v7037_v4 }
0x2355   :  { %6912 = vmatmul.mubr.msk.bf16.vlgmr.msra.gmra.mxu1 %vm638_vm5, %v5392_v49 }
0x2415   :  { %v6913_v50 = vpop.f32.mrf.mxu1 }
0x2416   :  { %v5463_v58 = vadd.f32 %v6913_v50, %v6089_v51 }
0x2417   :  { %v5454_v52 = vpop.f32.mrf.mxu1 }
0x2418   :  { %v5455_v37 = vadd.f32 %v6089_v51, %v5454_v52  ;;  %v8027_v30 = vadd.f32 %v5463_v58, %v7917_v57  ;;  %v7038_v58 = vld [vmem:[#allocation2 + $0x23c] sm:$0xff]  }
0x2419   :  { %v6914_v60 = vpop.f32.mrf.mxu1  ;;  %6923 = vmatprep.subr.bf16.mxu1 %v7038_v58 }
0x241a   :  { %v8016_v61 = vadd.f32 %v5455_v37, %v7914_v59  ;;  %v5466_v62 = vadd.f32 %v6914_v60, %v6089_v51  ;;  %6924 = vmatpush3.bf16.msra.mxu1 %v7038_v58 }
0x241b   :  { %v5457_v29 = vpop.f32.mrf.mxu1 }
0x241c   :  { %v8019_v36 = vadd.f32 %v5466_v62, %v7925_v3  ;;  %v5458_v14 = vadd.f32 %v6089_v51, %v5457_v29  ;;  %v5475_v63 = vsel %vm638_vm5, %v8016_v61, 0.0  ;;  %v5481_v3 = vsel %vm638_vm5, %v8027_v30, 0.0 }
0x241d   :  { %5476 = vadd.xlane.f32.xlu0 %v5475_v63  ;;  %v7040_v63 = vld [vmem:[#allocation2 + $0x22c] sm:$0xff]  }
0x241e   :  { %v8024_v5 = vadd.f32 %v5458_v14, %v7922_v1  ;;  %v5484_v9 = vsel %vm638_vm5, %v8019_v36, 0.0  ;;  %v7039_v14 = vld [vmem:[#allocation2 + $0x234] sm:$0xff]  }
0x241f   :  { %6925 = vmatprep.subr.bf16.mxu1 %v7039_v14 }
0x2420   :  { %v5478_v59 = vsel %vm638_vm5, %v8024_v5, 0.0  ;;  %6926 = vmatpush3.bf16.msra.mxu1 %v7039_v14 }
0x2421   :  { %5479 = vadd.xlane.f32.xlu1 %v5478_v59  ;;  %5485 = vadd.xlane.f32.xlu0 %v5484_v9  ;;  %v7041_v59 = vld [vmem:[#allocation2 + $0x224] sm:$0xff]   ;;  %v7042_v9 = vld [vmem:[#allocation2 + $0x21c] sm:$0xff]  }
0x2422   :  { %6927 = vmatprep.subr.bf16.mxu1 %v7040_v63 }
0x2424   :  { %6928 = vmatpush3.bf16.msra.mxu1 %v7040_v63 }
0x2425   :  { %5482 = vadd.xlane.f32.xlu1 %v5481_v3  ;;  %6929 = vmatprep.subr.bf16.mxu1 %v7041_v59  ;;  %v7043_v3 = vld [vmem:[#allocation2 + $0x214] sm:$0xff]  }
0x2428   :  { %6930 = vmatpush3.bf16.msra.mxu1 %v7041_v59 }
0x2429   :  { %6931 = vmatprep.subr.bf16.mxu1 %v7042_v9 }
0x242c   :  { %6932 = vmatpush3.bf16.msra.mxu1 %v7042_v9 }
0x242d   :  { %6933 = vmatprep.subr.bf16.mxu1 %v7043_v3 }
0x2430   :  { %6934 = vmatpush3.bf16.msra.mxu1 %v7043_v3 }
0x24a6   :  { %v5477_v23 = vpop.xlane.xlu0 %5476 }
0x24a7   :  { %v5487_v6 = vmul.f32 0.03125, %v5477_v23  ;;  %v7044_v23 = vld [vmem:[#allocation2 + $0x20c] sm:$0xff]  }
0x24a8   :  { %6935 = vmatprep.subr.bf16.mxu1 %v7044_v23 }
0x24a9   :  { %v5491_v1 = vsub.f32 %v8016_v61, %v5487_v6  ;;  %v7045_v6 = vld [vmem:[#allocation2 + $0x204] sm:$0xff]   ;;  %6936 = vmatpush3.bf16.msra.mxu1 %v7044_v23 }
0x24aa   :  { %v5480_v53 = vpop.xlane.xlu1 %5479  ;;  %v5486_v13 = vpop.xlane.xlu0 %5485  ;;  %6937 = vmatprep.subr.bf16.mxu1 %v7045_v6 }
0x24ab   :  { %v5488_v57 = vmul.f32 0.03125, %v5480_v53  ;;  %v5490_v54 = vmul.f32 0.03125, %v5486_v13  ;;  %v5495_v34 = vmul.f32 %v5491_v1, %v5491_v1 }
0x24ad   :  { %v5492_v7 = vsub.f32 %v8024_v5, %v5488_v57  ;;  %v5494_v55 = vsub.f32 %v8019_v36, %v5490_v54  ;;  %v5499_v15 = vsel %vm638_vm5, %v5495_v34, 0.0  ;;  %6938 = vmatpush3.bf16.msra.mxu1 %v7045_v6 }
0x24ae   :  { %v5483_v8 = vpop.xlane.xlu1 %5482  ;;  %5500 = vadd.xlane.f32.xlu1 %v5499_v15 }
0x24af   :  { %v5489_v10 = vmul.f32 0.03125, %v5483_v8  ;;  %v5496_v11 = vmul.f32 %v5492_v7, %v5492_v7  ;;  %v5498_v20 = vmul.f32 %v5494_v55, %v5494_v55 }
0x24b1   :  { %v5493_v56 = vsub.f32 %v8027_v30, %v5489_v10  ;;  %v5502_v12 = vsel %vm638_vm5, %v5496_v11, 0.0  ;;  %v5508_v40 = vsel %vm638_vm5, %v5498_v20, 0.0 }
0x24b2   :  { %5503 = vadd.xlane.f32.xlu0 %v5502_v12 }
0x24b3   :  { %v5497_v24 = vmul.f32 %v5493_v56, %v5493_v56 }
0x24b5   :  { %v5505_v32 = vsel %vm638_vm5, %v5497_v24, 0.0 }
0x24b6   :  { %5506 = vadd.xlane.f32.xlu1 %v5505_v32  ;;  %5509 = vadd.xlane.f32.xlu0 %v5508_v40 }
0x2537   :  { %v5501_v48 = vpop.xlane.xlu1 %5500 }
0x2538   :  { %v5511_v43 = vmul.f32 0.03125, %v5501_v48 }
0x253a   :  { %v5515_v47 = vadd.f32 1e-05, %v5511_v43 }
0x253b   :  { %v5504_v16 = vpop.xlane.xlu0 %5503 }
0x253c   :  { %7160 = vrsqrt.f32 %v5515_v47  ;;  %v5512_v17 = vmul.f32 0.03125, %v5504_v16 }
0x253e   :  { %v5516_v18 = vadd.f32 1e-05, %v5512_v17 }
0x253f   :  { %v5507_v27 = vpop.xlane.xlu1 %5506  ;;  %v5510_v19 = vpop.xlane.xlu0 %5509 }
0x2540   :  { %7162 = vrsqrt.f32 %v5516_v18  ;;  %v5513_v21 = vmul.f32 0.03125, %v5507_v27  ;;  %v5514_v22 = vmul.f32 0.03125, %v5510_v19 }
0x2542   :  { %v5517_v25 = vadd.f32 1e-05, %v5513_v21  ;;  %v5518_v28 = vadd.f32 1e-05, %v5514_v22 }
0x2544   :  { %7164 = vrsqrt.f32 %v5517_v25 }
0x2545   :  { %7166 = vrsqrt.f32 %v5518_v28 }
0x2549   :  { %v7161_v26 = vpop.eup %7160 }
0x254a   :  { %v5523_v38 = vmul.f32 %v7161_v26, %v5491_v1  ;;  %v6096_v1 = vld [vmem:[#allocation4 + $0x2d] ss:$0 sm:$0xff] }
0x254c   :  { %v5531_v31 = vmul.f32 %v6094_v33, %v5523_v38 }
0x254d   :  { %v7163_v39 = vpop.eup %7162 }
0x254e   :  { %v5524_v41 = vmul.f32 %v7163_v39, %v5492_v7  ;;  %v5539_v45 = vadd.f32 %v6095_v42, %v5531_v31 }
0x2550   :  { %v5532_v0 = vmul.f32 %v6094_v33, %v5524_v41 }
0x2551   :  { %v7165_v35 = vpop.eup %7164 }
0x2552   :  { %v7167_v44 = vpop.eup %7166  ;;  %v5525_v2 = vmul.f32 %v7165_v35, %v5493_v56  ;;  %v5540_v49 = vadd.f32 %v6095_v42, %v5532_v0 }
0x2553   :  { %v5526_v50 = vmul.f32 %v7167_v44, %v5494_v55 }
0x2554   :  { %v5533_v51 = vmul.f32 %v6094_v33, %v5525_v2  ;;  %v5543_v52 = vpack.c.bf16 %v5540_v49, %v5539_v45 }
0x2555   :  { %v5534_v37 = vmul.f32 %v6094_v33, %v5526_v50 }
0x2556   :  { %v5541_v60 = vadd.f32 %v6095_v42, %v5533_v51  ;;  %6919 = vmatprep.mubr.msk.bf16.mxu0 %vm638_vm5, %v5543_v52  ;;  %v7046_v52 = vld [vmem:[#allocation2 + $0x25c] sm:$0xff]  }
0x2557   :  { %v5542_v62 = vadd.f32 %v6095_v42, %v5534_v37  ;;  %6943 = vmatprep.subr.bf16.mxu0 %v7046_v52  ;;  %v7047_v37 = vld [vmem:[#allocation2 + $0x254] sm:$0xff]  }
0x2559   :  { %v5544_v29 = vpack.c.bf16 %v5542_v62, %v5541_v60 }
0x255b   :  { %6920 = vmatmul.mubr.msk.bf16.vlgmr.msra.gmra.mxu0 %vm638_vm5, %v5544_v29  ;;  %v6101_v29 = vld [vmem:[#allocation4 + $0x2e] ss:$0 sm:$0xff] }
0x255c   :  { %6944 = vmatpush3.bf16.msra.mxu0 %v7046_v52 }
0x255d   :  { %6945 = vmatprep.subr.bf16.mxu0 %v7047_v37 }
0x2560   :  { %6946 = vmatpush3.bf16.msra.mxu0 %v7047_v37 }
0x261b   :  { %v6921_v53 = vpop.f32.mrf.mxu0 }
0x261c   :  { %v5615_v13 = vadd.f32 %v6921_v53, %v6096_v1 }
0x261d   :  { %v5606_v57 = vpop.f32.mrf.mxu0 }
0x261e   :  { %v5627_v54 = vmul.f32 0.044715, %v5615_v13  ;;  %v5607_v34 = vadd.f32 %v6096_v1, %v5606_v57  ;;  %v5623_v35 = vmul.f32 0.5, %v5615_v13 }
0x261f   :  { %v6922_v7 = vpop.f32.mrf.mxu0 }
0x2620   :  { %v5631_v55 = vmul.f32 %v5627_v54, %v5615_v13  ;;  %v5625_v15 = vmul.f32 0.044715, %v5607_v34  ;;  %v5618_v8 = vadd.f32 %v6922_v7, %v6096_v1  ;;  %v5621_v31 = vmul.f32 0.5, %v5607_v34  ;;  %v6110_v54 = vld [vmem:[#allocation4 + $0x30] ss:$0 sm:$0xff] }
0x2621   :  { %v5609_v10 = vpop.f32.mrf.mxu0 }
0x2622   :  { %v5635_v11 = vmul.f32 %v5631_v55, %v5615_v13  ;;  %v5629_v56 = vmul.f32 %v5625_v15, %v5607_v34  ;;  %v5628_v12 = vmul.f32 0.044715, %v5618_v8  ;;  %v5610_v20 = vadd.f32 %v6096_v1, %v5609_v10 }
0x2623   :  { %v5624_v39 = vmul.f32 0.5, %v5618_v8 }
0x2624   :  { %v5639_v24 = vadd.f32 %v5635_v11, %v5615_v13  ;;  %v5633_v32 = vmul.f32 %v5629_v56, %v5607_v34  ;;  %v5632_v40 = vmul.f32 %v5628_v12, %v5618_v8  ;;  %v5626_v46 = vmul.f32 0.044715, %v5610_v20 }
0x2625   :  { %v5622_v42 = vmul.f32 0.5, %v5610_v20 }
0x2626   :  { %v5636_v4 = vmul.f32 %v5632_v40, %v5618_v8  ;;  %v5630_v48 = vmul.f32 %v5626_v46, %v5610_v20  ;;  %v5637_v43 = vadd.f32 %v5633_v32, %v5607_v34  ;;  %v5643_v47 = vmul.f32 0.7978846, %v5639_v24 }
0x2628   :  { %v5640_v16 = vadd.f32 %v5636_v4, %v5618_v8  ;;  %v5634_v17 = vmul.f32 %v5630_v48, %v5610_v20  ;;  %v5641_v18 = vmul.f32 0.7978846, %v5637_v43 }
0x262a   :  { %v5644_v27 = vmul.f32 0.7978846, %v5640_v16  ;;  %v5638_v19 = vadd.f32 %v5634_v17, %v5610_v20  ;;  %7168 = vtanh.f32 %v5641_v18 }
0x262b   :  { %7170 = vtanh.f32 %v5643_v47 }
0x262c   :  { %7172 = vtanh.f32 %v5644_v27  ;;  %v5642_v21 = vmul.f32 0.7978846, %v5638_v19 }
0x262e   :  { %7174 = vtanh.f32 %v5642_v21 }
0x2637   :  { %v7169_v22 = vpop.eup %7168 }
0x2638   :  { %v7171_v25 = vpop.eup %7170  ;;  %v5649_v26 = vadd.f32 1.0, %v7169_v22 }
0x2639   :  { %v7173_v28 = vpop.eup %7172  ;;  %v5651_v41 = vadd.f32 1.0, %v7171_v25 }
0x263a   :  { %v5652_v38 = vadd.f32 1.0, %v7173_v28  ;;  %v5653_v2 = vmul.f32 %v5649_v26, %v5621_v31 }
0x263b   :  { %v7175_v33 = vpop.eup %7174  ;;  %v5655_v49 = vmul.f32 %v5651_v41, %v5623_v35 }
0x263c   :  { %v5650_v0 = vadd.f32 1.0, %v7175_v33  ;;  %v5656_v44 = vmul.f32 %v5652_v38, %v5624_v39 }
0x263e   :  { %v5654_v45 = vmul.f32 %v5650_v0, %v5622_v42  ;;  %v5658_v51 = vpack.c.bf16 %v5656_v44, %v5655_v49 }
0x2640   :  { %v5657_v50 = vpack.c.bf16 %v5654_v45, %v5653_v2 }
0x2642   :  { %6939 = vmatprep.mubr.bf16.mxu1 %v5657_v50 }
0x2643   :  { %6940 = vmatmul.mubr.bf16.vlgmr.msra.gmra.mxu1 %v5658_v51 }
0x2703   :  { %v6941_v60 = vpop.f32.mrf.mxu1 }
0x2704   :  { %v5771_v59 = vadd.f32 %v6941_v60, %v6101_v29 }
0x2705   :  { %v5762_v62 = vpop.f32.mrf.mxu1 }
0x2706   :  { %v5763_v14 = vadd.f32 %v6101_v29, %v5762_v62  ;;  %v5779_v53 = vadd.f32 %v5771_v59, %v8027_v30 }
0x2707   :  { %v6942_v58 = vpop.f32.mrf.mxu1 }
0x2708   :  { %v5774_v63 = vadd.f32 %v6942_v58, %v6101_v29  ;;  %v5777_v6 = vadd.f32 %v5763_v14, %v8016_v61 }
0x2709   :  { %v5765_v9 = vpop.f32.mrf.mxu1 }
0x270a   :  { %v5766_v3 = vadd.f32 %v6101_v29, %v5765_v9  ;;  %v5780_v23 = vadd.f32 %v5774_v63, %v8019_v36 }
0x270c   :  { %v5778_v1 = vadd.f32 %v5766_v3, %v8024_v5  ;;  %v5782_v57 = vpack.c.bf16 %v5780_v23, %v5779_v53 }
0x270e   :  { %v5781_v13 = vpack.c.bf16 %v5778_v1, %v5777_v6 }
0x2710   :  { %6947 = vmatprep.mubr.msk.bf16.mxu0 %vm638_vm5, %v5781_v13 }
0x2711   :  { %6948 = vmatmul.mubr.msk.bf16.vlgmr.msra.gmra.mxu0 %vm638_vm5, %v5782_v57 }
0x27d1   :  { %v6949_v34 = vpop.f32.mrf.mxu0 }
0x27d2   :  { %v5853_v7 = vadd.f32 %v6949_v34, %v6110_v54 }
0x27d3   :  { %v5844_v55 = vpop.f32.mrf.mxu0 }
0x27d4   :  { %5862 = vst.msk [vmem:[%s8068_s5 + $0x10] sm:$0xff] %vm5859_vm8, %v5853_v7  ;;  %v5845_v61 = vadd.f32 %v6110_v54, %v5844_v55 }
0x27d5   :  { %v6950_v36 = vpop.f32.mrf.mxu0 }
0x27d6   :  { %5860 = vst.msk [vmem:[%s8068_s5] sm:$0xff] %vm5859_vm8, %v5845_v61  ;;  %v5856_v5 = vadd.f32 %v6950_v36, %v6110_v54 }
0x27d7   :  { %v5847_v30 = vpop.f32.mrf.mxu0 }
0x27d8   :  { %5863 = vst.msk [vmem:[%s8068_s5 + $0x18] sm:$0xff] %vm5859_vm8, %v5856_v5  ;;  %v5848_v15 = vadd.f32 %v6110_v54, %v5847_v30 }
0x27da   :  { %5861 = vst.msk [vmem:[%s8068_s5 + $0x8] sm:$0xff] %vm5859_vm8, %v5848_v15 }
0x27db   :  { %5868 = vsyncpa [#allocation3], 1 }
0x27dc   :  { %5869 = vsyncpa [#allocation5], 1 }

</bundles_post_ra>
